<compile_context>
chip_gen: v7x
topology: tpu7x:2x2x1
jax: 0.10.0
libtpu: 0.0.40
codegen_flags: <defaults>
</compile_context>

<pallas_src>
import numpy as np
import jax
import jax.numpy as jnp
from jax.experimental import pallas as pl
from jax.experimental.pallas import tpu as pltpu

TB = 32   # batch tile (sublane dim of every activation slab)


# ------------------------------ fused kernel ------------------------------- #

def _lenet_kernel(x_ref,                       # (28*TB, 28)  bf16, row = h*TB+b
                  w1_ref, b1_ref,              # (140, 200) bf16, (1, 72)  f32
                  w2_ref, b2_ref,              # (360, 128) bf16, (1, 64)  f32
                  fw1_ref, fb1_ref,            # (256, 128) bf16, (1, 128) f32
                  fw2_ref, fb2_ref,            # (128, 128) bf16, (1, 128) f32
                  fw3_ref, fb3_ref,            # (128, 128) bf16, (1, 128) f32
                  out_ref,                     # (TB, 128) f32 logits
                  a1_ref,                      # (24*TB, 140) bf16 conv1 im2col
                  p1_ref,                      # (12*TB, 72)  bf16 pool1
                  a2_ref,                      # (8*TB, 360)  bf16 conv2 im2col
                  p2_ref):                     # (TB, 256)    bf16 pool2 = fc1 in

    # ---- conv1 im2col: K = (ky, ix); rows = (out_row, batch) ---------------
    for ky in range(5):
        a1_ref[:, ky * 28:(ky + 1) * 28] = x_ref[ky * TB:(ky + 24) * TB, :]

    # ---- conv1 (MXU) + bias + ReLU + 2x2 maxpool, one dot per pooled row ---
    # Weight columns: even conv-x at lanes [0:72], odd conv-x at [128:200]
    # (layout = parity*128 + pooled_x*6 + channel), so the pool's column max
    # is an elementwise max of two lane halves and the row max is a max of
    # the two TB-row chunks of the dot result.
    for r in range(12):
        lhs = a1_ref[2 * r * TB:(2 * r + 2) * TB, :]             # (2*TB, 140)
        y = jnp.dot(lhs, w1_ref[...],
                    preferred_element_type=jnp.float32)          # (2*TB, 200)
        m = jnp.maximum(jnp.maximum(y[:TB, 0:72], y[:TB, 128:200]),
                        jnp.maximum(y[TB:, 0:72], y[TB:, 128:200]))
        p1_ref[r * TB:(r + 1) * TB, :] = jnp.maximum(
            m + b1_ref[...], 0.0).astype(p1_ref.dtype)

    # ---- conv2 im2col: K = (ky, x, c_in) = 360, no zero-channel padding ----
    for ky in range(5):
        a2_ref[:, ky * 72:(ky + 1) * 72] = p1_ref[ky * TB:(ky + 8) * TB, :]

    # ---- conv2 (MXU) + bias + ReLU + 2x2 maxpool ---------------------------
    # N = parity*64 + pooled_x*16 + c_out = 128 exactly (one lane tile).
    for r in range(4):
        lhs = a2_ref[2 * r * TB:(2 * r + 2) * TB, :]             # (2*TB, 360)
        y = jnp.dot(lhs, w2_ref[...],
                    preferred_element_type=jnp.float32)          # (2*TB, 128)
        m = jnp.maximum(jnp.maximum(y[:TB, 0:64], y[:TB, 64:128]),
                        jnp.maximum(y[TB:, 0:64], y[TB:, 64:128]))
        p2_ref[:, r * 64:(r + 1) * 64] = jnp.maximum(
            m + b2_ref[...], 0.0).astype(p2_ref.dtype)

    # ---- fc1/fc2/fc3 (PyTorch NCHW flatten folded into fw1) ----------------
    h1 = jnp.maximum(
        jnp.dot(p2_ref[...], fw1_ref[...],
                preferred_element_type=jnp.float32) + fb1_ref[...],
        0.0).astype(jnp.bfloat16)
    h2 = jnp.maximum(
        jnp.dot(h1, fw2_ref[...],
                preferred_element_type=jnp.float32) + fb2_ref[...],
        0.0).astype(jnp.bfloat16)
    out_ref[...] = (jnp.dot(h2, fw3_ref[...],
                            preferred_element_type=jnp.float32)
                    + fb3_ref[...])


# --------------------------- weight preparation ----------------------------- #

def prepare_params(params):
    """Fold PyTorch-layout LeNet weights into the im2col / Toeplitz layouts the
    fused kernel consumes.  Done ONCE, outside the forward."""
    w1, b1, w2, b2, fw1, fb1, fw2, fb2, fw3, fb3 = [
        np.asarray(p, np.float32) for p in params]

    # conv1 (6,1,5,5) -> (140, 200): row = ky*28 + ix ; col = q*128 + px*6 + c
    # where conv output column ox = 2*px + q and kx = ix - ox.
    W1 = np.zeros((140, 200), np.float32)
    for c in range(6):
        for ky in range(5):
            for kx in range(5):
                for px in range(12):
                    for q in range(2):
                        ox = 2 * px + q
                        W1[ky * 28 + ox + kx, q * 128 + px * 6 + c] = w1[c, 0, ky, kx]
    B1 = np.tile(b1, 12).reshape(1, 72)

    # conv2 (16,6,5,5) -> (360, 128): row = ky*72 + x*6 + c_in (pool1 lanes),
    # col = q*64 + px*16 + c_out with ox = 2*px + q and kx = x - ox.
    W2 = np.zeros((360, 128), np.float32)
    for co in range(16):
        for ci in range(6):
            for ky in range(5):
                for kx in range(5):
                    for px in range(4):
                        for q in range(2):
                            ox = 2 * px + q
                            W2[ky * 72 + (ox + kx) * 6 + ci,
                               q * 64 + px * 16 + co] = w2[co, ci, ky, kx]
    B2 = np.tile(b2, 4).reshape(1, 64)

    # fc1 (120, 256): PyTorch NCHW flatten index = c*16 + h*4 + w;
    # kernel's p2 lane layout = h*64 + w*16 + c.
    FW1 = np.zeros((256, 128), np.float32)
    for h in range(4):
        for w in range(4):
            for c in range(16):
                FW1[h * 64 + w * 16 + c, :120] = fw1[:, c * 16 + h * 4 + w]
    FB1 = np.zeros((1, 128), np.float32); FB1[0, :120] = fb1

    FW2 = np.zeros((128, 128), np.float32); FW2[:120, :84] = fw2.T
    FB2 = np.zeros((1, 128), np.float32);   FB2[0, :84] = fb2
    FW3 = np.zeros((128, 128), np.float32); FW3[:84, :10] = fw3.T
    FB3 = np.zeros((1, 128), np.float32);   FB3[0, :10] = fb3

    bf = lambda a: jnp.asarray(a, jnp.bfloat16)
    f3 = lambda a: jnp.asarray(a, jnp.float32)
    return (bf(W1), f3(B1), bf(W2), f3(B2),
            bf(FW1), f3(FB1), bf(FW2), f3(FB2), bf(FW3), f3(FB3))


# -------------------------------- forward ----------------------------------- #

def lenet_forward(img, prepared):
    """img: (B, 1, 28, 28) NCHW -> (B, 10) logits, fully inside one kernel."""
    (w1, b1, w2, b2, fw1, fb1, fw2, fb2, fw3, fb3) = prepared
    B = img.shape[0]
    T = (B + TB - 1) // TB
    Bp = T * TB
    x = img.reshape(B, 28, 28).astype(jnp.bfloat16)
    if Bp != B:
        x = jnp.pad(x, ((0, Bp - B), (0, 0), (0, 0)))
    # (T, TB, 28, 28) -> (T, 28, TB, 28) -> (T, 28*TB, 28): row = h*TB + b.
    xt = x.reshape(T, TB, 28, 28).transpose(0, 2, 1, 3).reshape(T, 28 * TB, 28)

    def full(shape):
        return pl.BlockSpec(shape, lambda i: (0,) * len(shape))

    out = pl.pallas_call(
        _lenet_kernel,
        grid=(T,),
        in_specs=[
            pl.BlockSpec((None, 28 * TB, 28), lambda i: (i, 0, 0)),
            full((140, 200)), full((1, 72)),
            full((360, 128)), full((1, 64)),
            full((256, 128)), full((1, 128)),
            full((128, 128)), full((1, 128)),
            full((128, 128)), full((1, 128)),
        ],
        out_specs=pl.BlockSpec((TB, 128), lambda i: (i, 0)),
        out_shape=jax.ShapeDtypeStruct((Bp, 128), jnp.float32),
        scratch_shapes=[
            pltpu.VMEM((24 * TB, 140), jnp.bfloat16),   # conv1 im2col
            pltpu.VMEM((12 * TB, 72), jnp.bfloat16),    # pool1 output
            pltpu.VMEM((8 * TB, 360), jnp.bfloat16),    # conv2 im2col
            pltpu.VMEM((TB, 256), jnp.bfloat16),        # pool2 output / fc1 in
        ],
        compiler_params=pltpu.CompilerParams(
            dimension_semantics=("parallel",)),
    )(xt, w1, b1, w2, b2, fw1, fb1, fw2, fb2, fw3, fb3)
    return out[:B, :10]


# ------------------------------ model / reference --------------------------- #

def init_params(key):
    ks = jax.random.split(key, 10)
    scale = 0.1
    w1 = jax.random.normal(ks[0], (6, 1, 5, 5), jnp.float32) * scale
    b1 = jax.random.normal(ks[1], (6,), jnp.float32) * scale
    w2 = jax.random.normal(ks[2], (16, 6, 5, 5), jnp.float32) * scale
    b2 = jax.random.normal(ks[3], (16,), jnp.float32) * scale
    fw1 = jax.random.normal(ks[4], (120, 16 * 4 * 4), jnp.float32) * scale
    fb1 = jax.random.normal(ks[5], (120,), jnp.float32) * scale
    fw2 = jax.random.normal(ks[6], (84, 120), jnp.float32) * scale
    fb2 = jax.random.normal(ks[7], (84,), jnp.float32) * scale
    fw3 = jax.random.normal(ks[8], (10, 84), jnp.float32) * scale
    fb3 = jax.random.normal(ks[9], (10,), jnp.float32) * scale
    return (w1, b1, w2, b2, fw1, fb1, fw2, fb2, fw3, fb3)


def reference_forward(img, params):
    """Pure-JAX reference mirroring the PyTorch module (f32 end to end)."""
    w1, b1, w2, b2, fw1, fb1, fw2, fb2, fw3, fb3 = params
    dn = ('NCHW', 'OIHW', 'NCHW')
    y = jax.lax.conv_general_dilated(img, w1, (1, 1), 'VALID', dimension_numbers=dn)
    y = jax.nn.relu(y + b1.reshape(1, -1, 1, 1))
    y = jax.lax.reduce_window(y, -jnp.inf, jax.lax.max, (1, 1, 2, 2), (1, 1, 2, 2), 'VALID')
    y = jax.lax.conv_general_dilated(y, w2, (1, 1), 'VALID', dimension_numbers=dn)
    y = jax.nn.relu(y + b2.reshape(1, -1, 1, 1))
    y = jax.lax.reduce_window(y, -jnp.inf, jax.lax.max, (1, 1, 2, 2), (1, 1, 2, 2), 'VALID')
    f = y.reshape(img.shape[0], -1)
    h = jax.nn.relu(f @ fw1.T + fb1)
    h = jax.nn.relu(h @ fw2.T + fb2)
    return h @ fw3.T + fb3


if __name__ == "__main__":
    key = jax.random.PRNGKey(0)
    k_params, k_x = jax.random.split(key)
    params = init_params(k_params)
    prepared = prepare_params(params)

    # LeNet's fc stack (16*4*4) fixes the spatial size at 28x28.  Batch is
    # deliberately NOT a multiple of the batch tile (exercises padding) and
    # spans two grid steps (exercises the batch-parallel pipeline / megacore).
    B = 48
    x = jax.random.normal(k_x, (B, 1, 28, 28), jnp.float32)

    fwd = jax.jit(lenet_forward)
    out = jax.block_until_ready(fwd(x, prepared))
    assert out.shape == (B, 10), out.shape

    ref = jax.block_until_ready(reference_forward(x, params))
    # bf16 MXU operands (f32 accumulation) -> slightly looser tolerance than f32.
    assert jnp.allclose(out, ref, rtol=2e-2, atol=2e-2), \
        float(jnp.max(jnp.abs(out - ref)))

    print("KERNEL_OK")
</pallas_src>

<mosaic_0001>
module attributes {stable_mosaic.version = 11 : i64} {
  func.func @_lenet_kernel(%arg0: i32, %arg1: memref<1x896x28xbf16, #tpu.memory_space<vmem>>, %arg2: memref<140x200xbf16, #tpu.memory_space<vmem>>, %arg3: memref<1x72xf32, #tpu.memory_space<vmem>>, %arg4: memref<360x128xbf16, #tpu.memory_space<vmem>>, %arg5: memref<1x64xf32, #tpu.memory_space<vmem>>, %arg6: memref<256x128xbf16, #tpu.memory_space<vmem>>, %arg7: memref<1x128xf32, #tpu.memory_space<vmem>>, %arg8: memref<128x128xbf16, #tpu.memory_space<vmem>>, %arg9: memref<1x128xf32, #tpu.memory_space<vmem>>, %arg10: memref<128x128xbf16, #tpu.memory_space<vmem>>, %arg11: memref<1x128xf32, #tpu.memory_space<vmem>>, %arg12: memref<32x128xf32, #tpu.memory_space<vmem>>, %arg13: memref<768x140xbf16, #tpu.memory_space<vmem>>, %arg14: memref<384x72xbf16, #tpu.memory_space<vmem>>, %arg15: memref<256x360xbf16, #tpu.memory_space<vmem>>, %arg16: memref<32x256xbf16, #tpu.memory_space<vmem>>) attributes {dimension_semantics = [#tpu.dimension_semantics<parallel>], iteration_bounds = array<i64: 2>, scalar_prefetch = 0 : i64, scratch_operands = 4 : i64, tpu.core_type = #tpu.core_type<tc>, window_params = [{transform_indices = @transform_0, window_bounds = array<i64: 1, 896, 28>}, {pipeline_mode = #tpu.pipeline_mode<synchronous>, transform_indices = @transform_1, window_bounds = array<i64: 140, 200>}, {pipeline_mode = #tpu.pipeline_mode<synchronous>, transform_indices = @transform_2, window_bounds = array<i64: 1, 72>}, {pipeline_mode = #tpu.pipeline_mode<synchronous>, transform_indices = @transform_3, window_bounds = array<i64: 360, 128>}, {pipeline_mode = #tpu.pipeline_mode<synchronous>, transform_indices = @transform_4, window_bounds = array<i64: 1, 64>}, {pipeline_mode = #tpu.pipeline_mode<synchronous>, transform_indices = @transform_5, window_bounds = array<i64: 256, 128>}, {pipeline_mode = #tpu.pipeline_mode<synchronous>, transform_indices = @transform_6, window_bounds = array<i64: 1, 128>}, {pipeline_mode = #tpu.pipeline_mode<synchronous>, transform_indices = @transform_7, window_bounds = array<i64: 128, 128>}, {pipeline_mode = #tpu.pipeline_mode<synchronous>, transform_indices = @transform_8, window_bounds = array<i64: 1, 128>}, {pipeline_mode = #tpu.pipeline_mode<synchronous>, transform_indices = @transform_9, window_bounds = array<i64: 128, 128>}, {pipeline_mode = #tpu.pipeline_mode<synchronous>, transform_indices = @transform_10, window_bounds = array<i64: 1, 128>}, {transform_indices = @transform_11, window_bounds = array<i64: 32, 128>}]} {
    %c0 = arith.constant 0 : index
    %c0_0 = arith.constant 0 : index
    %c0_1 = arith.constant 0 : index
    %0 = vector.load %arg1[%c0, %c0_0, %c0_1] : memref<1x896x28xbf16, #tpu.memory_space<vmem>>, vector<1x768x28xbf16>
    %1 = vector.shape_cast %0 : vector<1x768x28xbf16> to vector<768x28xbf16>
    %c0_2 = arith.constant 0 : index
    %c0_3 = arith.constant 0 : index
    %2 = vector.load %arg13[%c0_2, %c0_3] : memref<768x140xbf16, #tpu.memory_space<vmem>>, vector<768x28xbf16>
    tpu.vector_store %arg13[%c0_2, %c0_3], %1 {strides = array<i32>} : memref<768x140xbf16, #tpu.memory_space<vmem>>, vector<768x28xbf16>,
    %c0_4 = arith.constant 0 : index
    %c32 = arith.constant 32 : index
    %c0_5 = arith.constant 0 : index
    %3 = vector.load %arg1[%c0_4, %c32, %c0_5] : memref<1x896x28xbf16, #tpu.memory_space<vmem>>, vector<1x768x28xbf16>
    %4 = vector.shape_cast %3 : vector<1x768x28xbf16> to vector<768x28xbf16>
    %c0_6 = arith.constant 0 : index
    %c28 = arith.constant 28 : index
    %5 = vector.load %arg13[%c0_6, %c28] : memref<768x140xbf16, #tpu.memory_space<vmem>>, vector<768x28xbf16>
    tpu.vector_store %arg13[%c0_6, %c28], %4 {strides = array<i32>} : memref<768x140xbf16, #tpu.memory_space<vmem>>, vector<768x28xbf16>,
    %c0_7 = arith.constant 0 : index
    %c64 = arith.constant 64 : index
    %c0_8 = arith.constant 0 : index
    %6 = vector.load %arg1[%c0_7, %c64, %c0_8] : memref<1x896x28xbf16, #tpu.memory_space<vmem>>, vector<1x768x28xbf16>
    %7 = vector.shape_cast %6 : vector<1x768x28xbf16> to vector<768x28xbf16>
    %c0_9 = arith.constant 0 : index
    %c56 = arith.constant 56 : index
    %8 = vector.load %arg13[%c0_9, %c56] : memref<768x140xbf16, #tpu.memory_space<vmem>>, vector<768x28xbf16>
    tpu.vector_store %arg13[%c0_9, %c56], %7 {strides = array<i32>} : memref<768x140xbf16, #tpu.memory_space<vmem>>, vector<768x28xbf16>,
    %c0_10 = arith.constant 0 : index
    %c96 = arith.constant 96 : index
    %c0_11 = arith.constant 0 : index
    %9 = vector.load %arg1[%c0_10, %c96, %c0_11] : memref<1x896x28xbf16, #tpu.memory_space<vmem>>, vector<1x768x28xbf16>
    %10 = vector.shape_cast %9 : vector<1x768x28xbf16> to vector<768x28xbf16>
    %c0_12 = arith.constant 0 : index
    %c84 = arith.constant 84 : index
    %11 = vector.load %arg13[%c0_12, %c84] : memref<768x140xbf16, #tpu.memory_space<vmem>>, vector<768x28xbf16>
    tpu.vector_store %arg13[%c0_12, %c84], %10 {strides = array<i32>} : memref<768x140xbf16, #tpu.memory_space<vmem>>, vector<768x28xbf16>,
    %c0_13 = arith.constant 0 : index
    %c128 = arith.constant 128 : index
    %c0_14 = arith.constant 0 : index
    %12 = vector.load %arg1[%c0_13, %c128, %c0_14] : memref<1x896x28xbf16, #tpu.memory_space<vmem>>, vector<1x768x28xbf16>
    %13 = vector.shape_cast %12 : vector<1x768x28xbf16> to vector<768x28xbf16>
    %c0_15 = arith.constant 0 : index
    %c112 = arith.constant 112 : index
    %14 = vector.load %arg13[%c0_15, %c112] : memref<768x140xbf16, #tpu.memory_space<vmem>>, vector<768x28xbf16>
    tpu.vector_store %arg13[%c0_15, %c112], %13 {strides = array<i32>} : memref<768x140xbf16, #tpu.memory_space<vmem>>, vector<768x28xbf16>,
    %c0_16 = arith.constant 0 : index
    %c0_17 = arith.constant 0 : index
    %15 = vector.load %arg13[%c0_16, %c0_17] : memref<768x140xbf16, #tpu.memory_space<vmem>>, vector<64x140xbf16>
    %c0_18 = arith.constant 0 : index
    %c0_19 = arith.constant 0 : index
    %16 = vector.load %arg2[%c0_18, %c0_19] : memref<140x200xbf16, #tpu.memory_space<vmem>>, vector<140x200xbf16>
    %cst = arith.constant dense<0.000000e+00> : vector<64x200xf32>
    %17 = tpu.matmul %15, %16, %cst {dimension_numbers = #tpu.dot_dimension_numbers<[1], [0], [0], [1], [0, 0, 1, 1], [], []>} : vector<64x140xbf16>, vector<140x200xbf16>, vector<64x200xf32> -> vector<64x200xf32>
    %18 = vector.extract_strided_slice %17 {offsets = [0, 0], sizes = [32, 72], strides = [1, 1]} : vector<64x200xf32> to vector<32x72xf32>
    %19 = vector.extract_strided_slice %17 {offsets = [0, 128], sizes = [32, 72], strides = [1, 1]} : vector<64x200xf32> to vector<32x72xf32>
    %20 = arith.maximumf %18, %19 : vector<32x72xf32>
    %21 = vector.extract_strided_slice %17 {offsets = [32, 0], sizes = [32, 72], strides = [1, 1]} : vector<64x200xf32> to vector<32x72xf32>
    %22 = vector.extract_strided_slice %17 {offsets = [32, 128], sizes = [32, 72], strides = [1, 1]} : vector<64x200xf32> to vector<32x72xf32>
    %23 = arith.maximumf %21, %22 : vector<32x72xf32>
    %24 = arith.maximumf %20, %23 : vector<32x72xf32>
    %c0_20 = arith.constant 0 : index
    %c0_21 = arith.constant 0 : index
    %25 = vector.load %arg3[%c0_20, %c0_21] : memref<1x72xf32, #tpu.memory_space<vmem>>, vector<1x72xf32>
    %26 = vector.broadcast %25 : vector<1x72xf32> to vector<32x72xf32>
    %27 = arith.addf %24, %26 : vector<32x72xf32>
    %cst_22 = arith.constant 0.000000e+00 : f32
    %28 = vector.broadcast %cst_22 : f32 to vector<32x72xf32>
    %29 = arith.maximumf %27, %28 : vector<32x72xf32>
    %30 = arith.truncf %29 : vector<32x72xf32> to vector<32x72xbf16>
    %c0_23 = arith.constant 0 : index
    %c0_24 = arith.constant 0 : index
    %31 = vector.load %arg14[%c0_23, %c0_24] : memref<384x72xbf16, #tpu.memory_space<vmem>>, vector<32x72xbf16>
    tpu.vector_store %arg14[%c0_23, %c0_24], %30 {strides = array<i32>} : memref<384x72xbf16, #tpu.memory_space<vmem>>, vector<32x72xbf16>,
    %c64_25 = arith.constant 64 : index
    %c0_26 = arith.constant 0 : index
    %32 = vector.load %arg13[%c64_25, %c0_26] : memref<768x140xbf16, #tpu.memory_space<vmem>>, vector<64x140xbf16>
    %c0_27 = arith.constant 0 : index
    %c0_28 = arith.constant 0 : index
    %33 = vector.load %arg2[%c0_27, %c0_28] : memref<140x200xbf16, #tpu.memory_space<vmem>>, vector<140x200xbf16>
    %cst_29 = arith.constant dense<0.000000e+00> : vector<64x200xf32>
    %34 = tpu.matmul %32, %33, %cst_29 {dimension_numbers = #tpu.dot_dimension_numbers<[1], [0], [0], [1], [0, 0, 1, 1], [], []>} : vector<64x140xbf16>, vector<140x200xbf16>, vector<64x200xf32> -> vector<64x200xf32>
    %35 = vector.extract_strided_slice %34 {offsets = [0, 0], sizes = [32, 72], strides = [1, 1]} : vector<64x200xf32> to vector<32x72xf32>
    %36 = vector.extract_strided_slice %34 {offsets = [0, 128], sizes = [32, 72], strides = [1, 1]} : vector<64x200xf32> to vector<32x72xf32>
    %37 = arith.maximumf %35, %36 : vector<32x72xf32>
    %38 = vector.extract_strided_slice %34 {offsets = [32, 0], sizes = [32, 72], strides = [1, 1]} : vector<64x200xf32> to vector<32x72xf32>
    %39 = vector.extract_strided_slice %34 {offsets = [32, 128], sizes = [32, 72], strides = [1, 1]} : vector<64x200xf32> to vector<32x72xf32>
    %40 = arith.maximumf %38, %39 : vector<32x72xf32>
    %41 = arith.maximumf %37, %40 : vector<32x72xf32>
    %c0_30 = arith.constant 0 : index
    %c0_31 = arith.constant 0 : index
    %42 = vector.load %arg3[%c0_30, %c0_31] : memref<1x72xf32, #tpu.memory_space<vmem>>, vector<1x72xf32>
    %43 = vector.broadcast %42 : vector<1x72xf32> to vector<32x72xf32>
    %44 = arith.addf %41, %43 : vector<32x72xf32>
    %cst_32 = arith.constant 0.000000e+00 : f32
    %45 = vector.broadcast %cst_32 : f32 to vector<32x72xf32>
    %46 = arith.maximumf %44, %45 : vector<32x72xf32>
    %47 = arith.truncf %46 : vector<32x72xf32> to vector<32x72xbf16>
    %c32_33 = arith.constant 32 : index
    %c0_34 = arith.constant 0 : index
    %48 = vector.load %arg14[%c32_33, %c0_34] : memref<384x72xbf16, #tpu.memory_space<vmem>>, vector<32x72xbf16>
    tpu.vector_store %arg14[%c32_33, %c0_34], %47 {strides = array<i32>} : memref<384x72xbf16, #tpu.memory_space<vmem>>, vector<32x72xbf16>,
    %c128_35 = arith.constant 128 : index
    %c0_36 = arith.constant 0 : index
    %49 = vector.load %arg13[%c128_35, %c0_36] : memref<768x140xbf16, #tpu.memory_space<vmem>>, vector<64x140xbf16>
    %c0_37 = arith.constant 0 : index
    %c0_38 = arith.constant 0 : index
    %50 = vector.load %arg2[%c0_37, %c0_38] : memref<140x200xbf16, #tpu.memory_space<vmem>>, vector<140x200xbf16>
    %cst_39 = arith.constant dense<0.000000e+00> : vector<64x200xf32>
    %51 = tpu.matmul %49, %50, %cst_39 {dimension_numbers = #tpu.dot_dimension_numbers<[1], [0], [0], [1], [0, 0, 1, 1], [], []>} : vector<64x140xbf16>, vector<140x200xbf16>, vector<64x200xf32> -> vector<64x200xf32>
    %52 = vector.extract_strided_slice %51 {offsets = [0, 0], sizes = [32, 72], strides = [1, 1]} : vector<64x200xf32> to vector<32x72xf32>
    %53 = vector.extract_strided_slice %51 {offsets = [0, 128], sizes = [32, 72], strides = [1, 1]} : vector<64x200xf32> to vector<32x72xf32>
    %54 = arith.maximumf %52, %53 : vector<32x72xf32>
    %55 = vector.extract_strided_slice %51 {offsets = [32, 0], sizes = [32, 72], strides = [1, 1]} : vector<64x200xf32> to vector<32x72xf32>
    %56 = vector.extract_strided_slice %51 {offsets = [32, 128], sizes = [32, 72], strides = [1, 1]} : vector<64x200xf32> to vector<32x72xf32>
    %57 = arith.maximumf %55, %56 : vector<32x72xf32>
    %58 = arith.maximumf %54, %57 : vector<32x72xf32>
    %c0_40 = arith.constant 0 : index
    %c0_41 = arith.constant 0 : index
    %59 = vector.load %arg3[%c0_40, %c0_41] : memref<1x72xf32, #tpu.memory_space<vmem>>, vector<1x72xf32>
    %60 = vector.broadcast %59 : vector<1x72xf32> to vector<32x72xf32>
    %61 = arith.addf %58, %60 : vector<32x72xf32>
    %cst_42 = arith.constant 0.000000e+00 : f32
    %62 = vector.broadcast %cst_42 : f32 to vector<32x72xf32>
    %63 = arith.maximumf %61, %62 : vector<32x72xf32>
    %64 = arith.truncf %63 : vector<32x72xf32> to vector<32x72xbf16>
    %c64_43 = arith.constant 64 : index
    %c0_44 = arith.constant 0 : index
    %65 = vector.load %arg14[%c64_43, %c0_44] : memref<384x72xbf16, #tpu.memory_space<vmem>>, vector<32x72xbf16>
    tpu.vector_store %arg14[%c64_43, %c0_44], %64 {strides = array<i32>} : memref<384x72xbf16, #tpu.memory_space<vmem>>, vector<32x72xbf16>,
    %c192 = arith.constant 192 : index
    %c0_45 = arith.constant 0 : index
    %66 = vector.load %arg13[%c192, %c0_45] : memref<768x140xbf16, #tpu.memory_space<vmem>>, vector<64x140xbf16>
    %c0_46 = arith.constant 0 : index
    %c0_47 = arith.constant 0 : index
    %67 = vector.load %arg2[%c0_46, %c0_47] : memref<140x200xbf16, #tpu.memory_space<vmem>>, vector<140x200xbf16>
    %cst_48 = arith.constant dense<0.000000e+00> : vector<64x200xf32>
    %68 = tpu.matmul %66, %67, %cst_48 {dimension_numbers = #tpu.dot_dimension_numbers<[1], [0], [0], [1], [0, 0, 1, 1], [], []>} : vector<64x140xbf16>, vector<140x200xbf16>, vector<64x200xf32> -> vector<64x200xf32>
    %69 = vector.extract_strided_slice %68 {offsets = [0, 0], sizes = [32, 72], strides = [1, 1]} : vector<64x200xf32> to vector<32x72xf32>
    %70 = vector.extract_strided_slice %68 {offsets = [0, 128], sizes = [32, 72], strides = [1, 1]} : vector<64x200xf32> to vector<32x72xf32>
    %71 = arith.maximumf %69, %70 : vector<32x72xf32>
    %72 = vector.extract_strided_slice %68 {offsets = [32, 0], sizes = [32, 72], strides = [1, 1]} : vector<64x200xf32> to vector<32x72xf32>
    %73 = vector.extract_strided_slice %68 {offsets = [32, 128], sizes = [32, 72], strides = [1, 1]} : vector<64x200xf32> to vector<32x72xf32>
    %74 = arith.maximumf %72, %73 : vector<32x72xf32>
    %75 = arith.maximumf %71, %74 : vector<32x72xf32>
    %c0_49 = arith.constant 0 : index
    %c0_50 = arith.constant 0 : index
    %76 = vector.load %arg3[%c0_49, %c0_50] : memref<1x72xf32, #tpu.memory_space<vmem>>, vector<1x72xf32>
    %77 = vector.broadcast %76 : vector<1x72xf32> to vector<32x72xf32>
    %78 = arith.addf %75, %77 : vector<32x72xf32>
    %cst_51 = arith.constant 0.000000e+00 : f32
    %79 = vector.broadcast %cst_51 : f32 to vector<32x72xf32>
    %80 = arith.maximumf %78, %79 : vector<32x72xf32>
    %81 = arith.truncf %80 : vector<32x72xf32> to vector<32x72xbf16>
    %c96_52 = arith.constant 96 : index
    %c0_53 = arith.constant 0 : index
    %82 = vector.load %arg14[%c96_52, %c0_53] : memref<384x72xbf16, #tpu.memory_space<vmem>>, vector<32x72xbf16>
    tpu.vector_store %arg14[%c96_52, %c0_53], %81 {strides = array<i32>} : memref<384x72xbf16, #tpu.memory_space<vmem>>, vector<32x72xbf16>,
    %c256 = arith.constant 256 : index
    %c0_54 = arith.constant 0 : index
    %83 = vector.load %arg13[%c256, %c0_54] : memref<768x140xbf16, #tpu.memory_space<vmem>>, vector<64x140xbf16>
    %c0_55 = arith.constant 0 : index
    %c0_56 = arith.constant 0 : index
    %84 = vector.load %arg2[%c0_55, %c0_56] : memref<140x200xbf16, #tpu.memory_space<vmem>>, vector<140x200xbf16>
    %cst_57 = arith.constant dense<0.000000e+00> : vector<64x200xf32>
    %85 = tpu.matmul %83, %84, %cst_57 {dimension_numbers = #tpu.dot_dimension_numbers<[1], [0], [0], [1], [0, 0, 1, 1], [], []>} : vector<64x140xbf16>, vector<140x200xbf16>, vector<64x200xf32> -> vector<64x200xf32>
    %86 = vector.extract_strided_slice %85 {offsets = [0, 0], sizes = [32, 72], strides = [1, 1]} : vector<64x200xf32> to vector<32x72xf32>
    %87 = vector.extract_strided_slice %85 {offsets = [0, 128], sizes = [32, 72], strides = [1, 1]} : vector<64x200xf32> to vector<32x72xf32>
    %88 = arith.maximumf %86, %87 : vector<32x72xf32>
    %89 = vector.extract_strided_slice %85 {offsets = [32, 0], sizes = [32, 72], strides = [1, 1]} : vector<64x200xf32> to vector<32x72xf32>
    %90 = vector.extract_strided_slice %85 {offsets = [32, 128], sizes = [32, 72], strides = [1, 1]} : vector<64x200xf32> to vector<32x72xf32>
    %91 = arith.maximumf %89, %90 : vector<32x72xf32>
    %92 = arith.maximumf %88, %91 : vector<32x72xf32>
    %c0_58 = arith.constant 0 : index
    %c0_59 = arith.constant 0 : index
    %93 = vector.load %arg3[%c0_58, %c0_59] : memref<1x72xf32, #tpu.memory_space<vmem>>, vector<1x72xf32>
    %94 = vector.broadcast %93 : vector<1x72xf32> to vector<32x72xf32>
    %95 = arith.addf %92, %94 : vector<32x72xf32>
    %cst_60 = arith.constant 0.000000e+00 : f32
    %96 = vector.broadcast %cst_60 : f32 to vector<32x72xf32>
    %97 = arith.maximumf %95, %96 : vector<32x72xf32>
    %98 = arith.truncf %97 : vector<32x72xf32> to vector<32x72xbf16>
    %c128_61 = arith.constant 128 : index
    %c0_62 = arith.constant 0 : index
    %99 = vector.load %arg14[%c128_61, %c0_62] : memref<384x72xbf16, #tpu.memory_space<vmem>>, vector<32x72xbf16>
    tpu.vector_store %arg14[%c128_61, %c0_62], %98 {strides = array<i32>} : memref<384x72xbf16, #tpu.memory_space<vmem>>, vector<32x72xbf16>,
    %c320 = arith.constant 320 : index
    %c0_63 = arith.constant 0 : index
    %100 = vector.load %arg13[%c320, %c0_63] : memref<768x140xbf16, #tpu.memory_space<vmem>>, vector<64x140xbf16>
    %c0_64 = arith.constant 0 : index
    %c0_65 = arith.constant 0 : index
    %101 = vector.load %arg2[%c0_64, %c0_65] : memref<140x200xbf16, #tpu.memory_space<vmem>>, vector<140x200xbf16>
    %cst_66 = arith.constant dense<0.000000e+00> : vector<64x200xf32>
    %102 = tpu.matmul %100, %101, %cst_66 {dimension_numbers = #tpu.dot_dimension_numbers<[1], [0], [0], [1], [0, 0, 1, 1], [], []>} : vector<64x140xbf16>, vector<140x200xbf16>, vector<64x200xf32> -> vector<64x200xf32>
    %103 = vector.extract_strided_slice %102 {offsets = [0, 0], sizes = [32, 72], strides = [1, 1]} : vector<64x200xf32> to vector<32x72xf32>
    %104 = vector.extract_strided_slice %102 {offsets = [0, 128], sizes = [32, 72], strides = [1, 1]} : vector<64x200xf32> to vector<32x72xf32>
    %105 = arith.maximumf %103, %104 : vector<32x72xf32>
    %106 = vector.extract_strided_slice %102 {offsets = [32, 0], sizes = [32, 72], strides = [1, 1]} : vector<64x200xf32> to vector<32x72xf32>
    %107 = vector.extract_strided_slice %102 {offsets = [32, 128], sizes = [32, 72], strides = [1, 1]} : vector<64x200xf32> to vector<32x72xf32>
    %108 = arith.maximumf %106, %107 : vector<32x72xf32>
    %109 = arith.maximumf %105, %108 : vector<32x72xf32>
    %c0_67 = arith.constant 0 : index
    %c0_68 = arith.constant 0 : index
    %110 = vector.load %arg3[%c0_67, %c0_68] : memref<1x72xf32, #tpu.memory_space<vmem>>, vector<1x72xf32>
    %111 = vector.broadcast %110 : vector<1x72xf32> to vector<32x72xf32>
    %112 = arith.addf %109, %111 : vector<32x72xf32>
    %cst_69 = arith.constant 0.000000e+00 : f32
    %113 = vector.broadcast %cst_69 : f32 to vector<32x72xf32>
    %114 = arith.maximumf %112, %113 : vector<32x72xf32>
    %115 = arith.truncf %114 : vector<32x72xf32> to vector<32x72xbf16>
    %c160 = arith.constant 160 : index
    %c0_70 = arith.constant 0 : index
    %116 = vector.load %arg14[%c160, %c0_70] : memref<384x72xbf16, #tpu.memory_space<vmem>>, vector<32x72xbf16>
    tpu.vector_store %arg14[%c160, %c0_70], %115 {strides = array<i32>} : memref<384x72xbf16, #tpu.memory_space<vmem>>, vector<32x72xbf16>,
    %c384 = arith.constant 384 : index
    %c0_71 = arith.constant 0 : index
    %117 = vector.load %arg13[%c384, %c0_71] : memref<768x140xbf16, #tpu.memory_space<vmem>>, vector<64x140xbf16>
    %c0_72 = arith.constant 0 : index
    %c0_73 = arith.constant 0 : index
    %118 = vector.load %arg2[%c0_72, %c0_73] : memref<140x200xbf16, #tpu.memory_space<vmem>>, vector<140x200xbf16>
    %cst_74 = arith.constant dense<0.000000e+00> : vector<64x200xf32>
    %119 = tpu.matmul %117, %118, %cst_74 {dimension_numbers = #tpu.dot_dimension_numbers<[1], [0], [0], [1], [0, 0, 1, 1], [], []>} : vector<64x140xbf16>, vector<140x200xbf16>, vector<64x200xf32> -> vector<64x200xf32>
    %120 = vector.extract_strided_slice %119 {offsets = [0, 0], sizes = [32, 72], strides = [1, 1]} : vector<64x200xf32> to vector<32x72xf32>
    %121 = vector.extract_strided_slice %119 {offsets = [0, 128], sizes = [32, 72], strides = [1, 1]} : vector<64x200xf32> to vector<32x72xf32>
    %122 = arith.maximumf %120, %121 : vector<32x72xf32>
    %123 = vector.extract_strided_slice %119 {offsets = [32, 0], sizes = [32, 72], strides = [1, 1]} : vector<64x200xf32> to vector<32x72xf32>
    %124 = vector.extract_strided_slice %119 {offsets = [32, 128], sizes = [32, 72], strides = [1, 1]} : vector<64x200xf32> to vector<32x72xf32>
    %125 = arith.maximumf %123, %124 : vector<32x72xf32>
    %126 = arith.maximumf %122, %125 : vector<32x72xf32>
    %c0_75 = arith.constant 0 : index
    %c0_76 = arith.constant 0 : index
    %127 = vector.load %arg3[%c0_75, %c0_76] : memref<1x72xf32, #tpu.memory_space<vmem>>, vector<1x72xf32>
    %128 = vector.broadcast %127 : vector<1x72xf32> to vector<32x72xf32>
    %129 = arith.addf %126, %128 : vector<32x72xf32>
    %cst_77 = arith.constant 0.000000e+00 : f32
    %130 = vector.broadcast %cst_77 : f32 to vector<32x72xf32>
    %131 = arith.maximumf %129, %130 : vector<32x72xf32>
    %132 = arith.truncf %131 : vector<32x72xf32> to vector<32x72xbf16>
    %c192_78 = arith.constant 192 : index
    %c0_79 = arith.constant 0 : index
    %133 = vector.load %arg14[%c192_78, %c0_79] : memref<384x72xbf16, #tpu.memory_space<vmem>>, vector<32x72xbf16>
    tpu.vector_store %arg14[%c192_78, %c0_79], %132 {strides = array<i32>} : memref<384x72xbf16, #tpu.memory_space<vmem>>, vector<32x72xbf16>,
    %c448 = arith.constant 448 : index
    %c0_80 = arith.constant 0 : index
    %134 = vector.load %arg13[%c448, %c0_80] : memref<768x140xbf16, #tpu.memory_space<vmem>>, vector<64x140xbf16>
    %c0_81 = arith.constant 0 : index
    %c0_82 = arith.constant 0 : index
    %135 = vector.load %arg2[%c0_81, %c0_82] : memref<140x200xbf16, #tpu.memory_space<vmem>>, vector<140x200xbf16>
    %cst_83 = arith.constant dense<0.000000e+00> : vector<64x200xf32>
    %136 = tpu.matmul %134, %135, %cst_83 {dimension_numbers = #tpu.dot_dimension_numbers<[1], [0], [0], [1], [0, 0, 1, 1], [], []>} : vector<64x140xbf16>, vector<140x200xbf16>, vector<64x200xf32> -> vector<64x200xf32>
    %137 = vector.extract_strided_slice %136 {offsets = [0, 0], sizes = [32, 72], strides = [1, 1]} : vector<64x200xf32> to vector<32x72xf32>
    %138 = vector.extract_strided_slice %136 {offsets = [0, 128], sizes = [32, 72], strides = [1, 1]} : vector<64x200xf32> to vector<32x72xf32>
    %139 = arith.maximumf %137, %138 : vector<32x72xf32>
    %140 = vector.extract_strided_slice %136 {offsets = [32, 0], sizes = [32, 72], strides = [1, 1]} : vector<64x200xf32> to vector<32x72xf32>
    %141 = vector.extract_strided_slice %136 {offsets = [32, 128], sizes = [32, 72], strides = [1, 1]} : vector<64x200xf32> to vector<32x72xf32>
    %142 = arith.maximumf %140, %141 : vector<32x72xf32>
    %143 = arith.maximumf %139, %142 : vector<32x72xf32>
    %c0_84 = arith.constant 0 : index
    %c0_85 = arith.constant 0 : index
    %144 = vector.load %arg3[%c0_84, %c0_85] : memref<1x72xf32, #tpu.memory_space<vmem>>, vector<1x72xf32>
    %145 = vector.broadcast %144 : vector<1x72xf32> to vector<32x72xf32>
    %146 = arith.addf %143, %145 : vector<32x72xf32>
    %cst_86 = arith.constant 0.000000e+00 : f32
    %147 = vector.broadcast %cst_86 : f32 to vector<32x72xf32>
    %148 = arith.maximumf %146, %147 : vector<32x72xf32>
    %149 = arith.truncf %148 : vector<32x72xf32> to vector<32x72xbf16>
    %c224 = arith.constant 224 : index
    %c0_87 = arith.constant 0 : index
    %150 = vector.load %arg14[%c224, %c0_87] : memref<384x72xbf16, #tpu.memory_space<vmem>>, vector<32x72xbf16>
    tpu.vector_store %arg14[%c224, %c0_87], %149 {strides = array<i32>} : memref<384x72xbf16, #tpu.memory_space<vmem>>, vector<32x72xbf16>,
    %c512 = arith.constant 512 : index
    %c0_88 = arith.constant 0 : index
    %151 = vector.load %arg13[%c512, %c0_88] : memref<768x140xbf16, #tpu.memory_space<vmem>>, vector<64x140xbf16>
    %c0_89 = arith.constant 0 : index
    %c0_90 = arith.constant 0 : index
    %152 = vector.load %arg2[%c0_89, %c0_90] : memref<140x200xbf16, #tpu.memory_space<vmem>>, vector<140x200xbf16>
    %cst_91 = arith.constant dense<0.000000e+00> : vector<64x200xf32>
    %153 = tpu.matmul %151, %152, %cst_91 {dimension_numbers = #tpu.dot_dimension_numbers<[1], [0], [0], [1], [0, 0, 1, 1], [], []>} : vector<64x140xbf16>, vector<140x200xbf16>, vector<64x200xf32> -> vector<64x200xf32>
    %154 = vector.extract_strided_slice %153 {offsets = [0, 0], sizes = [32, 72], strides = [1, 1]} : vector<64x200xf32> to vector<32x72xf32>
    %155 = vector.extract_strided_slice %153 {offsets = [0, 128], sizes = [32, 72], strides = [1, 1]} : vector<64x200xf32> to vector<32x72xf32>
    %156 = arith.maximumf %154, %155 : vector<32x72xf32>
    %157 = vector.extract_strided_slice %153 {offsets = [32, 0], sizes = [32, 72], strides = [1, 1]} : vector<64x200xf32> to vector<32x72xf32>
    %158 = vector.extract_strided_slice %153 {offsets = [32, 128], sizes = [32, 72], strides = [1, 1]} : vector<64x200xf32> to vector<32x72xf32>
    %159 = arith.maximumf %157, %158 : vector<32x72xf32>
    %160 = arith.maximumf %156, %159 : vector<32x72xf32>
    %c0_92 = arith.constant 0 : index
    %c0_93 = arith.constant 0 : index
    %161 = vector.load %arg3[%c0_92, %c0_93] : memref<1x72xf32, #tpu.memory_space<vmem>>, vector<1x72xf32>
    %162 = vector.broadcast %161 : vector<1x72xf32> to vector<32x72xf32>
    %163 = arith.addf %160, %162 : vector<32x72xf32>
    %cst_94 = arith.constant 0.000000e+00 : f32
    %164 = vector.broadcast %cst_94 : f32 to vector<32x72xf32>
    %165 = arith.maximumf %163, %164 : vector<32x72xf32>
    %166 = arith.truncf %165 : vector<32x72xf32> to vector<32x72xbf16>
    %c256_95 = arith.constant 256 : index
    %c0_96 = arith.constant 0 : index
    %167 = vector.load %arg14[%c256_95, %c0_96] : memref<384x72xbf16, #tpu.memory_space<vmem>>, vector<32x72xbf16>
    tpu.vector_store %arg14[%c256_95, %c0_96], %166 {strides = array<i32>} : memref<384x72xbf16, #tpu.memory_space<vmem>>, vector<32x72xbf16>,
    %c576 = arith.constant 576 : index
    %c0_97 = arith.constant 0 : index
    %168 = vector.load %arg13[%c576, %c0_97] : memref<768x140xbf16, #tpu.memory_space<vmem>>, vector<64x140xbf16>
    %c0_98 = arith.constant 0 : index
    %c0_99 = arith.constant 0 : index
    %169 = vector.load %arg2[%c0_98, %c0_99] : memref<140x200xbf16, #tpu.memory_space<vmem>>, vector<140x200xbf16>
    %cst_100 = arith.constant dense<0.000000e+00> : vector<64x200xf32>
    %170 = tpu.matmul %168, %169, %cst_100 {dimension_numbers = #tpu.dot_dimension_numbers<[1], [0], [0], [1], [0, 0, 1, 1], [], []>} : vector<64x140xbf16>, vector<140x200xbf16>, vector<64x200xf32> -> vector<64x200xf32>
    %171 = vector.extract_strided_slice %170 {offsets = [0, 0], sizes = [32, 72], strides = [1, 1]} : vector<64x200xf32> to vector<32x72xf32>
    %172 = vector.extract_strided_slice %170 {offsets = [0, 128], sizes = [32, 72], strides = [1, 1]} : vector<64x200xf32> to vector<32x72xf32>
    %173 = arith.maximumf %171, %172 : vector<32x72xf32>
    %174 = vector.extract_strided_slice %170 {offsets = [32, 0], sizes = [32, 72], strides = [1, 1]} : vector<64x200xf32> to vector<32x72xf32>
    %175 = vector.extract_strided_slice %170 {offsets = [32, 128], sizes = [32, 72], strides = [1, 1]} : vector<64x200xf32> to vector<32x72xf32>
    %176 = arith.maximumf %174, %175 : vector<32x72xf32>
    %177 = arith.maximumf %173, %176 : vector<32x72xf32>
    %c0_101 = arith.constant 0 : index
    %c0_102 = arith.constant 0 : index
    %178 = vector.load %arg3[%c0_101, %c0_102] : memref<1x72xf32, #tpu.memory_space<vmem>>, vector<1x72xf32>
    %179 = vector.broadcast %178 : vector<1x72xf32> to vector<32x72xf32>
    %180 = arith.addf %177, %179 : vector<32x72xf32>
    %cst_103 = arith.constant 0.000000e+00 : f32
    %181 = vector.broadcast %cst_103 : f32 to vector<32x72xf32>
    %182 = arith.maximumf %180, %181 : vector<32x72xf32>
    %183 = arith.truncf %182 : vector<32x72xf32> to vector<32x72xbf16>
    %c288 = arith.constant 288 : index
    %c0_104 = arith.constant 0 : index
    %184 = vector.load %arg14[%c288, %c0_104] : memref<384x72xbf16, #tpu.memory_space<vmem>>, vector<32x72xbf16>
    tpu.vector_store %arg14[%c288, %c0_104], %183 {strides = array<i32>} : memref<384x72xbf16, #tpu.memory_space<vmem>>, vector<32x72xbf16>,
    %c640 = arith.constant 640 : index
    %c0_105 = arith.constant 0 : index
    %185 = vector.load %arg13[%c640, %c0_105] : memref<768x140xbf16, #tpu.memory_space<vmem>>, vector<64x140xbf16>
    %c0_106 = arith.constant 0 : index
    %c0_107 = arith.constant 0 : index
    %186 = vector.load %arg2[%c0_106, %c0_107] : memref<140x200xbf16, #tpu.memory_space<vmem>>, vector<140x200xbf16>
    %cst_108 = arith.constant dense<0.000000e+00> : vector<64x200xf32>
    %187 = tpu.matmul %185, %186, %cst_108 {dimension_numbers = #tpu.dot_dimension_numbers<[1], [0], [0], [1], [0, 0, 1, 1], [], []>} : vector<64x140xbf16>, vector<140x200xbf16>, vector<64x200xf32> -> vector<64x200xf32>
    %188 = vector.extract_strided_slice %187 {offsets = [0, 0], sizes = [32, 72], strides = [1, 1]} : vector<64x200xf32> to vector<32x72xf32>
    %189 = vector.extract_strided_slice %187 {offsets = [0, 128], sizes = [32, 72], strides = [1, 1]} : vector<64x200xf32> to vector<32x72xf32>
    %190 = arith.maximumf %188, %189 : vector<32x72xf32>
    %191 = vector.extract_strided_slice %187 {offsets = [32, 0], sizes = [32, 72], strides = [1, 1]} : vector<64x200xf32> to vector<32x72xf32>
    %192 = vector.extract_strided_slice %187 {offsets = [32, 128], sizes = [32, 72], strides = [1, 1]} : vector<64x200xf32> to vector<32x72xf32>
    %193 = arith.maximumf %191, %192 : vector<32x72xf32>
    %194 = arith.maximumf %190, %193 : vector<32x72xf32>
    %c0_109 = arith.constant 0 : index
    %c0_110 = arith.constant 0 : index
    %195 = vector.load %arg3[%c0_109, %c0_110] : memref<1x72xf32, #tpu.memory_space<vmem>>, vector<1x72xf32>
    %196 = vector.broadcast %195 : vector<1x72xf32> to vector<32x72xf32>
    %197 = arith.addf %194, %196 : vector<32x72xf32>
    %cst_111 = arith.constant 0.000000e+00 : f32
    %198 = vector.broadcast %cst_111 : f32 to vector<32x72xf32>
    %199 = arith.maximumf %197, %198 : vector<32x72xf32>
    %200 = arith.truncf %199 : vector<32x72xf32> to vector<32x72xbf16>
    %c320_112 = arith.constant 320 : index
    %c0_113 = arith.constant 0 : index
    %201 = vector.load %arg14[%c320_112, %c0_113] : memref<384x72xbf16, #tpu.memory_space<vmem>>, vector<32x72xbf16>
    tpu.vector_store %arg14[%c320_112, %c0_113], %200 {strides = array<i32>} : memref<384x72xbf16, #tpu.memory_space<vmem>>, vector<32x72xbf16>,
    %c704 = arith.constant 704 : index
    %c0_114 = arith.constant 0 : index
    %202 = vector.load %arg13[%c704, %c0_114] : memref<768x140xbf16, #tpu.memory_space<vmem>>, vector<64x140xbf16>
    %c0_115 = arith.constant 0 : index
    %c0_116 = arith.constant 0 : index
    %203 = vector.load %arg2[%c0_115, %c0_116] : memref<140x200xbf16, #tpu.memory_space<vmem>>, vector<140x200xbf16>
    %cst_117 = arith.constant dense<0.000000e+00> : vector<64x200xf32>
    %204 = tpu.matmul %202, %203, %cst_117 {dimension_numbers = #tpu.dot_dimension_numbers<[1], [0], [0], [1], [0, 0, 1, 1], [], []>} : vector<64x140xbf16>, vector<140x200xbf16>, vector<64x200xf32> -> vector<64x200xf32>
    %205 = vector.extract_strided_slice %204 {offsets = [0, 0], sizes = [32, 72], strides = [1, 1]} : vector<64x200xf32> to vector<32x72xf32>
    %206 = vector.extract_strided_slice %204 {offsets = [0, 128], sizes = [32, 72], strides = [1, 1]} : vector<64x200xf32> to vector<32x72xf32>
    %207 = arith.maximumf %205, %206 : vector<32x72xf32>
    %208 = vector.extract_strided_slice %204 {offsets = [32, 0], sizes = [32, 72], strides = [1, 1]} : vector<64x200xf32> to vector<32x72xf32>
    %209 = vector.extract_strided_slice %204 {offsets = [32, 128], sizes = [32, 72], strides = [1, 1]} : vector<64x200xf32> to vector<32x72xf32>
    %210 = arith.maximumf %208, %209 : vector<32x72xf32>
    %211 = arith.maximumf %207, %210 : vector<32x72xf32>
    %c0_118 = arith.constant 0 : index
    %c0_119 = arith.constant 0 : index
    %212 = vector.load %arg3[%c0_118, %c0_119] : memref<1x72xf32, #tpu.memory_space<vmem>>, vector<1x72xf32>
    %213 = vector.broadcast %212 : vector<1x72xf32> to vector<32x72xf32>
    %214 = arith.addf %211, %213 : vector<32x72xf32>
    %cst_120 = arith.constant 0.000000e+00 : f32
    %215 = vector.broadcast %cst_120 : f32 to vector<32x72xf32>
    %216 = arith.maximumf %214, %215 : vector<32x72xf32>
    %217 = arith.truncf %216 : vector<32x72xf32> to vector<32x72xbf16>
    %c352 = arith.constant 352 : index
    %c0_121 = arith.constant 0 : index
    %218 = vector.load %arg14[%c352, %c0_121] : memref<384x72xbf16, #tpu.memory_space<vmem>>, vector<32x72xbf16>
    tpu.vector_store %arg14[%c352, %c0_121], %217 {strides = array<i32>} : memref<384x72xbf16, #tpu.memory_space<vmem>>, vector<32x72xbf16>,
    %c0_122 = arith.constant 0 : index
    %c0_123 = arith.constant 0 : index
    %219 = vector.load %arg14[%c0_122, %c0_123] : memref<384x72xbf16, #tpu.memory_space<vmem>>, vector<256x72xbf16>
    %c0_124 = arith.constant 0 : index
    %c0_125 = arith.constant 0 : index
    %220 = vector.load %arg15[%c0_124, %c0_125] : memref<256x360xbf16, #tpu.memory_space<vmem>>, vector<256x72xbf16>
    tpu.vector_store %arg15[%c0_124, %c0_125], %219 {strides = array<i32>} : memref<256x360xbf16, #tpu.memory_space<vmem>>, vector<256x72xbf16>,
    %c32_126 = arith.constant 32 : index
    %c0_127 = arith.constant 0 : index
    %221 = vector.load %arg14[%c32_126, %c0_127] : memref<384x72xbf16, #tpu.memory_space<vmem>>, vector<256x72xbf16>
    %c0_128 = arith.constant 0 : index
    %c72 = arith.constant 72 : index
    %222 = vector.load %arg15[%c0_128, %c72] : memref<256x360xbf16, #tpu.memory_space<vmem>>, vector<256x72xbf16>
    tpu.vector_store %arg15[%c0_128, %c72], %221 {strides = array<i32>} : memref<256x360xbf16, #tpu.memory_space<vmem>>, vector<256x72xbf16>,
    %c64_129 = arith.constant 64 : index
    %c0_130 = arith.constant 0 : index
    %223 = vector.load %arg14[%c64_129, %c0_130] : memref<384x72xbf16, #tpu.memory_space<vmem>>, vector<256x72xbf16>
    %c0_131 = arith.constant 0 : index
    %c144 = arith.constant 144 : index
    %224 = vector.load %arg15[%c0_131, %c144] : memref<256x360xbf16, #tpu.memory_space<vmem>>, vector<256x72xbf16>
    tpu.vector_store %arg15[%c0_131, %c144], %223 {strides = array<i32>} : memref<256x360xbf16, #tpu.memory_space<vmem>>, vector<256x72xbf16>,
    %c96_132 = arith.constant 96 : index
    %c0_133 = arith.constant 0 : index
    %225 = vector.load %arg14[%c96_132, %c0_133] : memref<384x72xbf16, #tpu.memory_space<vmem>>, vector<256x72xbf16>
    %c0_134 = arith.constant 0 : index
    %c216 = arith.constant 216 : index
    %226 = vector.load %arg15[%c0_134, %c216] : memref<256x360xbf16, #tpu.memory_space<vmem>>, vector<256x72xbf16>
    tpu.vector_store %arg15[%c0_134, %c216], %225 {strides = array<i32>} : memref<256x360xbf16, #tpu.memory_space<vmem>>, vector<256x72xbf16>,
    %c128_135 = arith.constant 128 : index
    %c0_136 = arith.constant 0 : index
    %227 = vector.load %arg14[%c128_135, %c0_136] : memref<384x72xbf16, #tpu.memory_space<vmem>>, vector<256x72xbf16>
    %c0_137 = arith.constant 0 : index
    %c288_138 = arith.constant 288 : index
    %228 = vector.load %arg15[%c0_137, %c288_138] : memref<256x360xbf16, #tpu.memory_space<vmem>>, vector<256x72xbf16>
    tpu.vector_store %arg15[%c0_137, %c288_138], %227 {strides = array<i32>} : memref<256x360xbf16, #tpu.memory_space<vmem>>, vector<256x72xbf16>,
    %c0_139 = arith.constant 0 : index
    %c0_140 = arith.constant 0 : index
    %229 = vector.load %arg15[%c0_139, %c0_140] : memref<256x360xbf16, #tpu.memory_space<vmem>>, vector<64x360xbf16>
    %c0_141 = arith.constant 0 : index
    %c0_142 = arith.constant 0 : index
    %230 = vector.load %arg4[%c0_141, %c0_142] : memref<360x128xbf16, #tpu.memory_space<vmem>>, vector<360x128xbf16>
    %cst_143 = arith.constant dense<0.000000e+00> : vector<64x128xf32>
    %231 = tpu.matmul %229, %230, %cst_143 {dimension_numbers = #tpu.dot_dimension_numbers<[1], [0], [0], [1], [0, 0, 1, 1], [], []>} : vector<64x360xbf16>, vector<360x128xbf16>, vector<64x128xf32> -> vector<64x128xf32>
    %232 = vector.extract_strided_slice %231 {offsets = [0, 0], sizes = [32, 64], strides = [1, 1]} : vector<64x128xf32> to vector<32x64xf32>
    %233 = vector.extract_strided_slice %231 {offsets = [0, 64], sizes = [32, 64], strides = [1, 1]} : vector<64x128xf32> to vector<32x64xf32>
    %234 = arith.maximumf %232, %233 : vector<32x64xf32>
    %235 = vector.extract_strided_slice %231 {offsets = [32, 0], sizes = [32, 64], strides = [1, 1]} : vector<64x128xf32> to vector<32x64xf32>
    %236 = vector.extract_strided_slice %231 {offsets = [32, 64], sizes = [32, 64], strides = [1, 1]} : vector<64x128xf32> to vector<32x64xf32>
    %237 = arith.maximumf %235, %236 : vector<32x64xf32>
    %238 = arith.maximumf %234, %237 : vector<32x64xf32>
    %c0_144 = arith.constant 0 : index
    %c0_145 = arith.constant 0 : index
    %239 = vector.load %arg5[%c0_144, %c0_145] : memref<1x64xf32, #tpu.memory_space<vmem>>, vector<1x64xf32>
    %240 = vector.broadcast %239 : vector<1x64xf32> to vector<32x64xf32>
    %241 = arith.addf %238, %240 : vector<32x64xf32>
    %cst_146 = arith.constant 0.000000e+00 : f32
    %242 = vector.broadcast %cst_146 : f32 to vector<32x64xf32>
    %243 = arith.maximumf %241, %242 : vector<32x64xf32>
    %244 = arith.truncf %243 : vector<32x64xf32> to vector<32x64xbf16>
    %c0_147 = arith.constant 0 : index
    %c0_148 = arith.constant 0 : index
    %245 = vector.load %arg16[%c0_147, %c0_148] : memref<32x256xbf16, #tpu.memory_space<vmem>>, vector<32x64xbf16>
    tpu.vector_store %arg16[%c0_147, %c0_148], %244 {strides = array<i32>} : memref<32x256xbf16, #tpu.memory_space<vmem>>, vector<32x64xbf16>,
    %c64_149 = arith.constant 64 : index
    %c0_150 = arith.constant 0 : index
    %246 = vector.load %arg15[%c64_149, %c0_150] : memref<256x360xbf16, #tpu.memory_space<vmem>>, vector<64x360xbf16>
    %c0_151 = arith.constant 0 : index
    %c0_152 = arith.constant 0 : index
    %247 = vector.load %arg4[%c0_151, %c0_152] : memref<360x128xbf16, #tpu.memory_space<vmem>>, vector<360x128xbf16>
    %cst_153 = arith.constant dense<0.000000e+00> : vector<64x128xf32>
    %248 = tpu.matmul %246, %247, %cst_153 {dimension_numbers = #tpu.dot_dimension_numbers<[1], [0], [0], [1], [0, 0, 1, 1], [], []>} : vector<64x360xbf16>, vector<360x128xbf16>, vector<64x128xf32> -> vector<64x128xf32>
    %249 = vector.extract_strided_slice %248 {offsets = [0, 0], sizes = [32, 64], strides = [1, 1]} : vector<64x128xf32> to vector<32x64xf32>
    %250 = vector.extract_strided_slice %248 {offsets = [0, 64], sizes = [32, 64], strides = [1, 1]} : vector<64x128xf32> to vector<32x64xf32>
    %251 = arith.maximumf %249, %250 : vector<32x64xf32>
    %252 = vector.extract_strided_slice %248 {offsets = [32, 0], sizes = [32, 64], strides = [1, 1]} : vector<64x128xf32> to vector<32x64xf32>
    %253 = vector.extract_strided_slice %248 {offsets = [32, 64], sizes = [32, 64], strides = [1, 1]} : vector<64x128xf32> to vector<32x64xf32>
    %254 = arith.maximumf %252, %253 : vector<32x64xf32>
    %255 = arith.maximumf %251, %254 : vector<32x64xf32>
    %c0_154 = arith.constant 0 : index
    %c0_155 = arith.constant 0 : index
    %256 = vector.load %arg5[%c0_154, %c0_155] : memref<1x64xf32, #tpu.memory_space<vmem>>, vector<1x64xf32>
    %257 = vector.broadcast %256 : vector<1x64xf32> to vector<32x64xf32>
    %258 = arith.addf %255, %257 : vector<32x64xf32>
    %cst_156 = arith.constant 0.000000e+00 : f32
    %259 = vector.broadcast %cst_156 : f32 to vector<32x64xf32>
    %260 = arith.maximumf %258, %259 : vector<32x64xf32>
    %261 = arith.truncf %260 : vector<32x64xf32> to vector<32x64xbf16>
    %c0_157 = arith.constant 0 : index
    %c64_158 = arith.constant 64 : index
    %262 = vector.load %arg16[%c0_157, %c64_158] : memref<32x256xbf16, #tpu.memory_space<vmem>>, vector<32x64xbf16>
    tpu.vector_store %arg16[%c0_157, %c64_158], %261 {strides = array<i32>} : memref<32x256xbf16, #tpu.memory_space<vmem>>, vector<32x64xbf16>,
    %c128_159 = arith.constant 128 : index
    %c0_160 = arith.constant 0 : index
    %263 = vector.load %arg15[%c128_159, %c0_160] : memref<256x360xbf16, #tpu.memory_space<vmem>>, vector<64x360xbf16>
    %c0_161 = arith.constant 0 : index
    %c0_162 = arith.constant 0 : index
    %264 = vector.load %arg4[%c0_161, %c0_162] : memref<360x128xbf16, #tpu.memory_space<vmem>>, vector<360x128xbf16>
    %cst_163 = arith.constant dense<0.000000e+00> : vector<64x128xf32>
    %265 = tpu.matmul %263, %264, %cst_163 {dimension_numbers = #tpu.dot_dimension_numbers<[1], [0], [0], [1], [0, 0, 1, 1], [], []>} : vector<64x360xbf16>, vector<360x128xbf16>, vector<64x128xf32> -> vector<64x128xf32>
    %266 = vector.extract_strided_slice %265 {offsets = [0, 0], sizes = [32, 64], strides = [1, 1]} : vector<64x128xf32> to vector<32x64xf32>
    %267 = vector.extract_strided_slice %265 {offsets = [0, 64], sizes = [32, 64], strides = [1, 1]} : vector<64x128xf32> to vector<32x64xf32>
    %268 = arith.maximumf %266, %267 : vector<32x64xf32>
    %269 = vector.extract_strided_slice %265 {offsets = [32, 0], sizes = [32, 64], strides = [1, 1]} : vector<64x128xf32> to vector<32x64xf32>
    %270 = vector.extract_strided_slice %265 {offsets = [32, 64], sizes = [32, 64], strides = [1, 1]} : vector<64x128xf32> to vector<32x64xf32>
    %271 = arith.maximumf %269, %270 : vector<32x64xf32>
    %272 = arith.maximumf %268, %271 : vector<32x64xf32>
    %c0_164 = arith.constant 0 : index
    %c0_165 = arith.constant 0 : index
    %273 = vector.load %arg5[%c0_164, %c0_165] : memref<1x64xf32, #tpu.memory_space<vmem>>, vector<1x64xf32>
    %274 = vector.broadcast %273 : vector<1x64xf32> to vector<32x64xf32>
    %275 = arith.addf %272, %274 : vector<32x64xf32>
    %cst_166 = arith.constant 0.000000e+00 : f32
    %276 = vector.broadcast %cst_166 : f32 to vector<32x64xf32>
    %277 = arith.maximumf %275, %276 : vector<32x64xf32>
    %278 = arith.truncf %277 : vector<32x64xf32> to vector<32x64xbf16>
    %c0_167 = arith.constant 0 : index
    %c128_168 = arith.constant 128 : index
    %279 = vector.load %arg16[%c0_167, %c128_168] : memref<32x256xbf16, #tpu.memory_space<vmem>>, vector<32x64xbf16>
    tpu.vector_store %arg16[%c0_167, %c128_168], %278 {strides = array<i32>} : memref<32x256xbf16, #tpu.memory_space<vmem>>, vector<32x64xbf16>,
    %c192_169 = arith.constant 192 : index
    %c0_170 = arith.constant 0 : index
    %280 = vector.load %arg15[%c192_169, %c0_170] : memref<256x360xbf16, #tpu.memory_space<vmem>>, vector<64x360xbf16>
    %c0_171 = arith.constant 0 : index
    %c0_172 = arith.constant 0 : index
    %281 = vector.load %arg4[%c0_171, %c0_172] : memref<360x128xbf16, #tpu.memory_space<vmem>>, vector<360x128xbf16>
    %cst_173 = arith.constant dense<0.000000e+00> : vector<64x128xf32>
    %282 = tpu.matmul %280, %281, %cst_173 {dimension_numbers = #tpu.dot_dimension_numbers<[1], [0], [0], [1], [0, 0, 1, 1], [], []>} : vector<64x360xbf16>, vector<360x128xbf16>, vector<64x128xf32> -> vector<64x128xf32>
    %283 = vector.extract_strided_slice %282 {offsets = [0, 0], sizes = [32, 64], strides = [1, 1]} : vector<64x128xf32> to vector<32x64xf32>
    %284 = vector.extract_strided_slice %282 {offsets = [0, 64], sizes = [32, 64], strides = [1, 1]} : vector<64x128xf32> to vector<32x64xf32>
    %285 = arith.maximumf %283, %284 : vector<32x64xf32>
    %286 = vector.extract_strided_slice %282 {offsets = [32, 0], sizes = [32, 64], strides = [1, 1]} : vector<64x128xf32> to vector<32x64xf32>
    %287 = vector.extract_strided_slice %282 {offsets = [32, 64], sizes = [32, 64], strides = [1, 1]} : vector<64x128xf32> to vector<32x64xf32>
    %288 = arith.maximumf %286, %287 : vector<32x64xf32>
    %289 = arith.maximumf %285, %288 : vector<32x64xf32>
    %c0_174 = arith.constant 0 : index
    %c0_175 = arith.constant 0 : index
    %290 = vector.load %arg5[%c0_174, %c0_175] : memref<1x64xf32, #tpu.memory_space<vmem>>, vector<1x64xf32>
    %291 = vector.broadcast %290 : vector<1x64xf32> to vector<32x64xf32>
    %292 = arith.addf %289, %291 : vector<32x64xf32>
    %cst_176 = arith.constant 0.000000e+00 : f32
    %293 = vector.broadcast %cst_176 : f32 to vector<32x64xf32>
    %294 = arith.maximumf %292, %293 : vector<32x64xf32>
    %295 = arith.truncf %294 : vector<32x64xf32> to vector<32x64xbf16>
    %c0_177 = arith.constant 0 : index
    %c192_178 = arith.constant 192 : index
    %296 = vector.load %arg16[%c0_177, %c192_178] : memref<32x256xbf16, #tpu.memory_space<vmem>>, vector<32x64xbf16>
    tpu.vector_store %arg16[%c0_177, %c192_178], %295 {strides = array<i32>} : memref<32x256xbf16, #tpu.memory_space<vmem>>, vector<32x64xbf16>,
    %c0_179 = arith.constant 0 : index
    %c0_180 = arith.constant 0 : index
    %297 = vector.load %arg16[%c0_179, %c0_180] : memref<32x256xbf16, #tpu.memory_space<vmem>>, vector<32x256xbf16>
    %c0_181 = arith.constant 0 : index
    %c0_182 = arith.constant 0 : index
    %298 = vector.load %arg6[%c0_181, %c0_182] : memref<256x128xbf16, #tpu.memory_space<vmem>>, vector<256x128xbf16>
    %cst_183 = arith.constant dense<0.000000e+00> : vector<32x128xf32>
    %299 = tpu.matmul %297, %298, %cst_183 {dimension_numbers = #tpu.dot_dimension_numbers<[1], [0], [0], [1], [0, 0, 1, 1], [], []>} : vector<32x256xbf16>, vector<256x128xbf16>, vector<32x128xf32> -> vector<32x128xf32>
    %c0_184 = arith.constant 0 : index
    %c0_185 = arith.constant 0 : index
    %300 = vector.load %arg7[%c0_184, %c0_185] : memref<1x128xf32, #tpu.memory_space<vmem>>, vector<1x128xf32>
    %301 = vector.broadcast %300 : vector<1x128xf32> to vector<32x128xf32>
    %302 = arith.addf %299, %301 : vector<32x128xf32>
    %cst_186 = arith.constant 0.000000e+00 : f32
    %303 = vector.broadcast %cst_186 : f32 to vector<32x128xf32>
    %304 = arith.maximumf %302, %303 : vector<32x128xf32>
    %305 = arith.truncf %304 : vector<32x128xf32> to vector<32x128xbf16>
    %c0_187 = arith.constant 0 : index
    %c0_188 = arith.constant 0 : index
    %306 = vector.load %arg8[%c0_187, %c0_188] : memref<128x128xbf16, #tpu.memory_space<vmem>>, vector<128x128xbf16>
    %cst_189 = arith.constant dense<0.000000e+00> : vector<32x128xf32>
    %307 = tpu.matmul %305, %306, %cst_189 {dimension_numbers = #tpu.dot_dimension_numbers<[1], [0], [0], [1], [0, 0, 1, 1], [], []>} : vector<32x128xbf16>, vector<128x128xbf16>, vector<32x128xf32> -> vector<32x128xf32>
    %c0_190 = arith.constant 0 : index
    %c0_191 = arith.constant 0 : index
    %308 = vector.load %arg9[%c0_190, %c0_191] : memref<1x128xf32, #tpu.memory_space<vmem>>, vector<1x128xf32>
    %309 = vector.broadcast %308 : vector<1x128xf32> to vector<32x128xf32>
    %310 = arith.addf %307, %309 : vector<32x128xf32>
    %cst_192 = arith.constant 0.000000e+00 : f32
    %311 = vector.broadcast %cst_192 : f32 to vector<32x128xf32>
    %312 = arith.maximumf %310, %311 : vector<32x128xf32>
    %313 = arith.truncf %312 : vector<32x128xf32> to vector<32x128xbf16>
    %c0_193 = arith.constant 0 : index
    %c0_194 = arith.constant 0 : index
    %314 = vector.load %arg10[%c0_193, %c0_194] : memref<128x128xbf16, #tpu.memory_space<vmem>>, vector<128x128xbf16>
    %cst_195 = arith.constant dense<0.000000e+00> : vector<32x128xf32>
    %315 = tpu.matmul %313, %314, %cst_195 {dimension_numbers = #tpu.dot_dimension_numbers<[1], [0], [0], [1], [0, 0, 1, 1], [], []>} : vector<32x128xbf16>, vector<128x128xbf16>, vector<32x128xf32> -> vector<32x128xf32>
    %c0_196 = arith.constant 0 : index
    %c0_197 = arith.constant 0 : index
    %316 = vector.load %arg11[%c0_196, %c0_197] : memref<1x128xf32, #tpu.memory_space<vmem>>, vector<1x128xf32>
    %317 = vector.broadcast %316 : vector<1x128xf32> to vector<32x128xf32>
    %318 = arith.addf %315, %317 : vector<32x128xf32>
    %c0_198 = arith.constant 0 : index
    %c0_199 = arith.constant 0 : index
    %319 = vector.load %arg12[%c0_198, %c0_199] : memref<32x128xf32, #tpu.memory_space<vmem>>, vector<32x128xf32>
    tpu.vector_store %arg12[%c0_198, %c0_199], %318 {strides = array<i32>} : memref<32x128xf32, #tpu.memory_space<vmem>>, vector<32x128xf32>,
    return
  }
  func.func @transform_0(%arg0: i32) -> (i32, i32, i32) {
    %c0_i32 = arith.constant 0 : i32
    %c0_i32_0 = arith.constant 0 : i32
    %c0_i32_1 = arith.constant 0 : i32
    return %arg0, %c0_i32, %c0_i32_0 : i32, i32, i32
  }
  func.func @transform_1(%arg0: i32) -> (i32, i32) {
    %c0_i32 = arith.constant 0 : i32
    %c0_i32_0 = arith.constant 0 : i32
    %c0_i32_1 = arith.constant 0 : i32
    return %c0_i32, %c0_i32_0 : i32, i32
  }
  func.func @transform_2(%arg0: i32) -> (i32, i32) {
    %c0_i32 = arith.constant 0 : i32
    %c0_i32_0 = arith.constant 0 : i32
    %c0_i32_1 = arith.constant 0 : i32
    return %c0_i32, %c0_i32_0 : i32, i32
  }
  func.func @transform_3(%arg0: i32) -> (i32, i32) {
    %c0_i32 = arith.constant 0 : i32
    %c0_i32_0 = arith.constant 0 : i32
    %c0_i32_1 = arith.constant 0 : i32
    return %c0_i32, %c0_i32_0 : i32, i32
  }
  func.func @transform_4(%arg0: i32) -> (i32, i32) {
    %c0_i32 = arith.constant 0 : i32
    %c0_i32_0 = arith.constant 0 : i32
    %c0_i32_1 = arith.constant 0 : i32
    return %c0_i32, %c0_i32_0 : i32, i32
  }
  func.func @transform_5(%arg0: i32) -> (i32, i32) {
    %c0_i32 = arith.constant 0 : i32
    %c0_i32_0 = arith.constant 0 : i32
    %c0_i32_1 = arith.constant 0 : i32
    return %c0_i32, %c0_i32_0 : i32, i32
  }
  func.func @transform_6(%arg0: i32) -> (i32, i32) {
    %c0_i32 = arith.constant 0 : i32
    %c0_i32_0 = arith.constant 0 : i32
    %c0_i32_1 = arith.constant 0 : i32
    return %c0_i32, %c0_i32_0 : i32, i32
  }
  func.func @transform_7(%arg0: i32) -> (i32, i32) {
    %c0_i32 = arith.constant 0 : i32
    %c0_i32_0 = arith.constant 0 : i32
    %c0_i32_1 = arith.constant 0 : i32
    return %c0_i32, %c0_i32_0 : i32, i32
  }
  func.func @transform_8(%arg0: i32) -> (i32, i32) {
    %c0_i32 = arith.constant 0 : i32
    %c0_i32_0 = arith.constant 0 : i32
    %c0_i32_1 = arith.constant 0 : i32
    return %c0_i32, %c0_i32_0 : i32, i32
  }
  func.func @transform_9(%arg0: i32) -> (i32, i32) {
    %c0_i32 = arith.constant 0 : i32
    %c0_i32_0 = arith.constant 0 : i32
    %c0_i32_1 = arith.constant 0 : i32
    return %c0_i32, %c0_i32_0 : i32, i32
  }
  func.func @transform_10(%arg0: i32) -> (i32, i32) {
    %c0_i32 = arith.constant 0 : i32
    %c0_i32_0 = arith.constant 0 : i32
    %c0_i32_1 = arith.constant 0 : i32
    return %c0_i32, %c0_i32_0 : i32, i32
  }
  func.func @transform_11(%arg0: i32) -> (i32, i32) {
    %c0_i32 = arith.constant 0 : i32
    %c0_i32_0 = arith.constant 0 : i32
    return %arg0, %c0_i32 : i32, i32
  }
}

</mosaic_0001>

<bundles_post_ra>
// kernel: lenet_forward.1
= control target key start
LH: loop header
LB: loop body
LE: loop exit
PB: predicated region body
PF: predicated region fallthrough
CT: control target
= control target key end

     0   :  { %s10014_s17 = smov 0   ;;  %s12677_s0 = inlined_call_operand.vmem [shape: bf16[2,896,28], index: 0, kind: input, shape index: {}]   ;;  %s12678_s1 = inlined_call_operand.vmem [shape: bf16[140,200], index: 1, kind: input, shape index: {}]   ;;  %s12679_s2 = inlined_call_operand.vmem [shape: f32[1,72], index: 2, kind: input, shape index: {}]   ;;  %s12680_s3 = inlined_call_operand.vmem [shape: bf16[360,128], index: 3, kind: input, shape index: {}]   ;;  %s12681_s4 = inlined_call_operand.vmem [shape: f32[1,64], index: 4, kind: input, shape index: {}]   ;;  %s12682_s5 = inlined_call_operand.vmem [shape: bf16[256,128], index: 5, kind: input, shape index: {}]   ;;  %s12683_s6 = inlined_call_operand.vmem [shape: f32[1,128], index: 6, kind: input, shape index: {}]   ;;  %s12684_s7 = inlined_call_operand.vmem [shape: bf16[128,128], index: 7, kind: input, shape index: {}]   ;;  %s12685_s8 = inlined_call_operand.vmem [shape: f32[1,128], index: 8, kind: input, shape index: {}]   ;;  %s12686_s9 = inlined_call_operand.vmem [shape: bf16[128,128], index: 9, kind: input, shape index: {}]   ;;  %s12687_s10 = inlined_call_operand.vmem [shape: f32[1,128], index: 10, kind: input, shape index: {}]   ;;  %s12688_s11 = inlined_call_operand.vmem [shape: f32[64,128], index: 11, kind: output, shape index: {}]  }
   0x1 LB: > { %s10020_s18 = sadd.s32 4294967295, %s9943_s17   ;;  %p8399_p0 = scmp.ge.s32.totalorder %s9943_s17, 1  ;;  %s9943_s17 = sphi %s10014_s17, %s21_s17  }
   0x2   : > { %p337_p1 = scmp.lt.s32.totalorder %s9943_s17, 3 }
   0x4   : > { %p338_p2 = pnand %p8399_p0, %p337_p1 }
   0x5   : > { %p377_p3 = scmp.lt.s32.totalorder (!%p338_p2), %s10020_s18, 1  ;;  %v10028_v0 = vld [vmem:[%s12678_s1 + $0x4] ss:$8 sps:$4 sm:$0xff] (!%p338_p2)   ;;  %v9532_v1 = vld [vmem:[%s12678_s1] ss:$8 sps:$4 sm:$0xff] (!%p338_p2)   ;;  %s9945_s21 = smov (!%p338_p2), 84  }
   0x6   : > { %341 = sbr.rel (%p338_p2) target bundleno = 2022 (0x7e6), region = 64  ;;  %3120 = vmatprep.subr.bf16.mxu0 (!%p338_p2), %v10028_v0  ;;  %v9535_v2 = vld [vmem:[%s12678_s1 + $0x14] ss:$8 sps:$4 sm:$0xff] (!%p338_p2)   ;;  %3357 = vmatprep.subr.bf16.mxu1 (!%p338_p2), %v10028_v0  ;;  %v9537_v3 = vld [vmem:[%s12678_s1 + $0x10] ss:$8 sps:$4 sm:$0xff] (!%p338_p2)   ;;  %s9946_s22 = smov (!%p338_p2), 28  }
   0x7   : > { %3121 = vmatpush1.bf16.msra.mxu0 (!%p338_p2), %v9532_v1  ;;  %3358 = vmatpush1.bf16.msra.mxu1 (!%p338_p2), %v9532_v1  ;;  %v9540_v4 = vld [vmem:[%s12678_s1 + $0x24] ss:$8 sps:$4 sm:$0xff] (!%p338_p2)   ;;  %v9542_v5 = vld [vmem:[%s12678_s1 + $0x20] ss:$8 sps:$4 sm:$0xff] (!%p338_p2)   ;;  %v9545_v6 = vld [vmem:[%s12678_s1 + $0x34] ss:$8 sps:$4 sm:$0xff] (!%p338_p2)  }
   0x8   : > { %3122 = vmatprep.subr.bf16.mxu0 (!%p338_p2), %v9535_v2  ;;  %3359 = vmatprep.subr.bf16.mxu1 (!%p338_p2), %v9535_v2  ;;  %v9547_v11 = vld [vmem:[%s12678_s1 + $0x30] ss:$8 sps:$4 sm:$0xff] (!%p338_p2)   ;;  %v9550_v12 = vld [vmem:[%s12678_s1 + $0x44] ss:$8 sps:$4 sm:$0xff] (!%p338_p2)   ;;  %s9947_s27 = smov (!%p338_p2), 112   ;;  %vm773_vm0 = vcmask (!%p338_p2), 228352  }
   0x9   : > { %v9552_v15 = vld [vmem:[%s12678_s1 + $0x40] ss:$8 sps:$4 sm:$0xff] (!%p338_p2)   ;;  %v10129_v42 = vld [vmem:[%s12678_s1 + $0x54] ss:$8 sps:$4 sm:$0xff] (!%p338_p2)   ;;  %v10134_v43 = vld [vmem:[%s12678_s1 + $0x50] ss:$8 sps:$4 sm:$0xff] (!%p338_p2)  }
   0xa   : > { %v10149_v47 = vld [vmem:[%s12678_s1 + $0x64] ss:$8 sps:$4 sm:$0xff] (!%p338_p2)   ;;  %v10155_v48 = vld [vmem:[%s12678_s1 + $0x60] ss:$8 sps:$4 sm:$0xff] (!%p338_p2)   ;;  %v10167_v51 = vld [vmem:[%s12678_s1 + $0x74] ss:$8 sps:$4 sm:$0xff] (!%p338_p2)  }
   0xb   : > { %3123 = vmatpush1.bf16.msra.mxu0 (!%p338_p2), %v9537_v3  ;;  %3360 = vmatpush1.bf16.msra.mxu1 (!%p338_p2), %v9537_v3  ;;  %v10172_v52 = vld [vmem:[%s12678_s1 + $0x70] ss:$8 sps:$4 sm:$0xff] (!%p338_p2)   ;;  %v10184_v55 = vld [vmem:[%s12678_s1 + $0x80] sm:$0xff] (!%p338_p2)  ;;  %vm3113_vm1 = vcmask (!%p338_p2), 1045504   ;;  %v3012_v56 = vld [vmem:[%s12678_s1 + $0x88] sm:$0x33] (!%p338_p2) }
   0xc   : > { %3124 = vmatprep.subr.bf16.mxu0 (!%p338_p2), %v9540_v4  ;;  %3361 = vmatprep.subr.bf16.mxu1 (!%p338_p2), %v9540_v4  ;;  %v8660_v58 = vcombine.high (!%p338_p2), %v10184_v55, %v3012_v56  ;;  %v8659_v59 = vcombine.low (!%p338_p2), %v10184_v55, %v3012_v56  ;;  %v3250_v62 = vld [vmem:[%s12678_s1 + $0x88] sm:$0x33] (!%p338_p2)  ;;  %vm1302_vm2 = vcmask (!%p338_p2), 457952   ;;  %vm2891_vm3 = vcmask (!%p338_p2), 97280   ;;  %s9949_s20 = smov (!%p338_p2), 72   ;;  %s9951_s25 = smov (!%p338_p2), 88  }
   0xd   : > { %s378_s23 = scalar_select %p377_p3, %s10020_s18, 1  ;;  %v8684_v1 = vcombine.high %v10184_v55, %v3250_v62  ;;  %v8683_v2 = vcombine.low %v10184_v55, %v3250_v62  ;;  %vm1831_vm4 = vcmask 687552   ;;  %vm2360_vm5 = vcmask 917152  }
   0xe   : > { %v3115_v60 = vsel %vm3113_vm1, %v8659_v59, 0  ;;  %vm2889_vm6 = vcmask 1048448   ;;  %vm3222_vm7 = vcmask 588800   ;;  %s9952_s26 = smov 32   ;;  %vm5933_vm8 = vcmask 1048128   ;;  %s9953_s29 = smov 64  }
   0xf   : > { %s9464_s28 = smul.u32 448, %s378_s23  ;;  %3125 = vmatpush1.bf16.msra.mxu0 %v9542_v5  ;;  %3362 = vmatpush1.bf16.msra.mxu1 %v9542_v5  ;;  %v3352_v5 = vsel %vm3113_vm1, %v8683_v2, 0  ;;  %v9928_v2 = vld [vmem:[%s12678_s1 + $0x14] ss:$8 sps:$4 sm:$0xff]   ;;  %vm5935_vm9 = vcmask 130048   ;;  %vm6480_vm10 = vcmask 1043456  }
  0x10   : > { %3126 = vmatprep.subr.bf16.mxu0 %v9545_v6  ;;  %3363 = vmatprep.subr.bf16.mxu1 %v9545_v6  ;;  %vm6047_vm11 = vcmask 720000   ;;  %vm6144_vm12 = vcmask 1048256   ;;  %vm6146_vm13 = vcmask 261120   ;;  %vm6258_vm14 = vcmask 851200   ;;  %s8401_s15 = sshll.u32 %s10020_s18, 2 }
  0x11   : > { %s10048_s14 = scalar_lea.vmem %s12677_s0, %s9464_s28  ;;  %s9948_s28 = smov 56   ;;  %vm6467_vm15 = vcmask 850944  }
  0x12   : > { %v9482_v7 = vld [vmem:[%s10048_s14 + $0x30] sm:$0xff]   ;;  %v9484_v9 = vld [vmem:[%s10048_s14 + $0x40] sm:$0xff]   ;;  %v9490_v18 = vld [vmem:[%s10048_s14 + $0x28] sm:$0xff]   ;;  %p383_p4 = scmp.lt.s32.totalorder %s8401_s15, 7 }
  0x13   : > { %v9483_v8 = vld [vmem:[%s10048_s14 + $0x10] sm:$0xff]   ;;  %2216 = vrot.lane.b32.xlu1 %v9482_v7, %s9945_s21  ;;  %v9485_v10 = vld [vmem:[%s10048_s14 + $0x20] sm:$0xff]   ;;  %3127 = vmatpush1.bf16.msra.mxu0 %v9547_v11  ;;  %v9491_v19 = vld [vmem:[%s10048_s14 + $0x18] sm:$0xff]  }
  0x14   : > { %1158 = vrot.lane.b32.xlu0 %v9483_v8, %s9946_s22  ;;  %v9486_v13 = vld [vmem:[%s10048_s14 + $0x40] sm:$0xff]   ;;  %v9487_v14 = vld [vmem:[%s10048_s14 + $0x30] sm:$0xff]   ;;  %3364 = vmatpush1.bf16.msra.mxu1 %v9547_v11  ;;  %v9492_v20 = vld [vmem:[%s10048_s14 + $0x48] sm:$0xff]   ;;  %s12690_s15 = smov (!%p383_p4, %s8401_s15), 7 }
  0x15   : > { %3128 = vmatprep.subr.bf16.mxu0 %v9550_v12  ;;  %3365 = vmatprep.subr.bf16.mxu1 %v9550_v12  ;;  %v9488_v16 = vld [vmem:[%s10048_s14 + $0x60] sm:$0xff]   ;;  %v9489_v17 = vld [vmem:[%s10048_s14 + $0x50] sm:$0xff]   ;;  %v9493_v21 = vld [vmem:[%s10048_s14 + $0x38] sm:$0xff]   ;;  %s8402_s16 = sshll.u32 %s12690_s15, 3 }
  0x16   : > { %v9494_v22 = vld [vmem:[%s10048_s14 + $0x38] sm:$0xff]   ;;  %v9495_v23 = vld [vmem:[%s10048_s14 + $0x20] sm:$0xff]   ;;  %v9496_v24 = vld [vmem:[%s10048_s14 + $0x48] sm:$0xff]  }
  0x17   : > { %2745 = vrot.lane.b32.xlu1 %v9484_v9, %s9947_s27  ;;  %3129 = vmatpush1.bf16.msra.mxu0 %v9552_v15  ;;  %v9497_v25 = vld [vmem:[%s10048_s14 + $0x30] sm:$0xff]   ;;  %v9499_v27 = vld [vmem:[%s10048_s14 + $0x40] sm:$0xff]   ;;  %v9500_v28 = vld [vmem:[%s10048_s14 + $0x68] sm:$0xff]  }
  0x18   : > { %1687 = vrot.lane.b32.xlu0 %v9485_v10, %s9948_s28  ;;  %3366 = vmatpush1.bf16.msra.mxu1 %v9552_v15  ;;  %v9498_v26 = vld [vmem:[%s10048_s14 + $0x50] sm:$0xff]   ;;  %v9501_v29 = vld [vmem:[%s10048_s14 + $0x58] sm:$0xff]   ;;  %v9502_v30 = vld [vmem:[%s10048_s14 + $0x40] sm:$0xff]  }
  0x19   : > { %v9503_v31 = vld [vmem:[%s10048_s14 + $0x28] sm:$0xff]   ;;  %v9504_v32 = vld [vmem:[%s10048_s14 + $0x50] sm:$0xff]   ;;  %v9505_v33 = vld [vmem:[%s10048_s14 + $0x38] sm:$0xff]   ;;  %3130 = vmatprep.subr.bf16.mxu0 %v10129_v42  ;;  %3367 = vmatprep.subr.bf16.mxu1 %v10129_v42 }
  0x1a   : > { %v9506_v34 = vld [vmem:[%s10048_s14 + $0x58] sm:$0xff]   ;;  %v9507_v35 = vld [vmem:[%s10048_s14 + $0x48] sm:$0xff]   ;;  %v9508_v36 = vld [vmem:[%s10048_s14 + $0x70] sm:$0xff]  }
  0x1b   : > { %1695 = vrot.lane.b32.xlu1 %v9486_v13, %s9948_s28  ;;  %v9509_v37 = vld [vmem:[%s10048_s14 + $0x60] sm:$0xff]   ;;  %v9510_v38 = vld [vmem:[%s10048_s14 + $0x48] sm:$0xff]   ;;  %v9511_v39 = vld [vmem:[%s10048_s14 + $0x50] sm:$0xff]   ;;  %3131 = vmatpush1.bf16.msra.mxu0 %v10134_v43 }
  0x1c   : > { %1166 = vrot.lane.b32.xlu0 %v9487_v14, %s9946_s22  ;;  %v9512_v40 = vld [vmem:[%s10048_s14 + $0x58] sm:$0xff]   ;;  %v9513_v41 = vld [vmem:[%s10048_s14 + $0x60] sm:$0xff]   ;;  %v9515_v46 = vld [vmem:[%s10048_s14 + $0x70] sm:$0xff]   ;;  %3368 = vmatpush1.bf16.msra.mxu1 %v10134_v43 }
  0x1d   : > { %v9558_v44 = vld [vmem:[%s10048_s14] sm:$0xff]   ;;  %v9516_v49 = vld [vmem:[%s10048_s14 + $0x78] sm:$0xff]   ;;  %3132 = vmatprep.subr.bf16.mxu0 %v10149_v47  ;;  %3369 = vmatprep.subr.bf16.mxu1 %v10149_v47  ;;  %v9517_v50 = vld [vmem:[%s10048_s14 + $0x68] sm:$0xff]  }
  0x1e   : > { %v9514_v45 = vld [vmem:[%s10048_s14 + $0x80] sm:$0xff]   ;;  %774 = vst.msk [vmem:[#allocation2] sm:$0xff] %vm773_vm0, %v9558_v44  ;;  %v9519_v57 = vld [vmem:[%s10048_s14 + $0x70] sm:$0xff]   ;;  %v9576_v61 = vld [vmem:[%s10048_s14 + $0x8] sm:$0xff]  }
  0x1f   : > { %2753 = vrot.lane.b32.xlu1 %v9488_v16, %s9947_s27  ;;  %3133 = vmatpush1.bf16.msra.mxu0 %v10155_v48  ;;  %v9569_v53 = vld [vmem:[%s10048_s14 + $0x20] sm:$0xff]   ;;  %v9521_v3 = vld [vmem:[%s10048_s14 + $0x90] sm:$0xff]   ;;  %775 = vst.msk [vmem:[#allocation2 + $0x10] sm:$0xff] %vm773_vm0, %v9576_v61  ;;  %v9522_v4 = vld [vmem:[%s10048_s14 + $0x68] sm:$0xff]  }
  0x20   : > { %2224 = vrot.lane.b32.xlu0 %v9489_v17, %s9945_s21  ;;  %3370 = vmatpush1.bf16.msra.mxu1 %v10155_v48  ;;  %v9518_v54 = vld [vmem:[%s10048_s14 + $0x80] sm:$0xff]   ;;  %778 = vst.msk [vmem:[#allocation2 + $0x40] sm:$0xff] %vm773_vm0, %v9569_v53  ;;  %v9523_v6 = vld [vmem:[%s10048_s14 + $0x58] sm:$0xff]   ;;  %v9581_v7 = vld [vmem:[%s10048_s14 + $0x28] sm:$0xff]  }
  0x21   : > { %3134 = vmatprep.subr.bf16.mxu0 %v10167_v51  ;;  %3371 = vmatprep.subr.bf16.mxu1 %v10167_v51  ;;  %v9520_v63 = vld [vmem:[%s10048_s14 + $0xa0] sm:$0xff]   ;;  %v9582_v8 = vld [vmem:[%s10048_s14 + $0x10] sm:$0xff]   ;;  %779 = vst.msk [vmem:[#allocation2 + $0x50] sm:$0xff] %vm773_vm0, %v9581_v7  ;;  %v9524_v9 = vld [vmem:[%s10048_s14 + $0x88] sm:$0xff]  }
  0x22   : > { %776 = vst.msk [vmem:[#allocation2 + $0x20] sm:$0xff] %vm773_vm0, %v9582_v8  ;;  %v9525_v10 = vld [vmem:[%s10048_s14 + $0x78] sm:$0xff]   ;;  %v9527_v11 = vld [vmem:[%s10048_s14 + $0x60] sm:$0xff]   ;;  %v9591_v12 = vld [vmem:[%s10048_s14 + $0x30] sm:$0xff]  }
  0x23   : > { %1689 = vrot.lane.b32.xlu1 %v9490_v18, %s9948_s28  ;;  %3135 = vmatpush1.bf16.msra.mxu0 %v10172_v52  ;;  %v9592_v13 = vld [vmem:[%s10048_s14 + $0x18] sm:$0xff]   ;;  %v9528_v14 = vld [vmem:[%s10048_s14 + $0x88] sm:$0xff]   ;;  %780 = vst.msk [vmem:[#allocation2 + $0x60] sm:$0xff] %vm773_vm0, %v9591_v12  ;;  %v9529_v15 = vld [vmem:[%s10048_s14 + $0x70] sm:$0xff]  }
  0x24   : > { %1160 = vrot.lane.b32.xlu0 %v9491_v19, %s9946_s22  ;;  %3372 = vmatpush1.bf16.msra.mxu1 %v10172_v52  ;;  %777 = vst.msk [vmem:[#allocation2 + $0x30] sm:$0xff] %vm773_vm0, %v9592_v13  ;;  %v9533_v16 = vld [vmem:[%s10048_s14 + $0x90] sm:$0xff]   ;;  %v9534_v17 = vld [vmem:[%s10048_s14 + $0x80] sm:$0xff]   ;;  %v9538_v18 = vld [vmem:[%s10048_s14 + $0xa8] sm:$0xff]  }
  0x25   : > { %8661 = vmatprep.subr.msk.bf16.mxu0 %vm3113_vm1, %v8660_v58  ;;  %8685 = vmatprep.subr.msk.bf16.mxu1 %vm3113_vm1, %v8684_v1  ;;  %v9539_v19 = vld [vmem:[%s10048_s14 + $0x98] sm:$0xff]   ;;  %v9634_v58 = vld [vmem:[%s10048_s14 + $0x70] sm:$0xff]   ;;  %v9579_v1 = vld [vmem:[%s10048_s14 + $0xc0] sm:$0xff]  }
  0x26   : > { %v9577_v56 = vld [vmem:[%s10048_s14 + $0xb8] sm:$0xff]   ;;  %788 = vst.msk [vmem:[#allocation2 + $0xe0] sm:$0xff] %vm773_vm0, %v9634_v58  ;;  %v9583_v7 = vld [vmem:[%s10048_s14 + $0xd0] sm:$0xff]   ;;  %v9931_v13 = vld [vmem:[%s12678_s1 + $0x20] ss:$8 sps:$4 sm:$0xff]  }
  0x27   : > { %2747 = vrot.lane.b32.xlu1 %v9492_v20, %s9947_s27  ;;  %3137 = vmatpush1.bf16.msra.mxu0 %v3115_v60  ;;  %v9601_v20 = vld [vmem:[%s10048_s14 + $0x38] sm:$0xff]  }
  0x28   : > { %2218 = vrot.lane.b32.xlu0 %v9493_v21, %s9945_s21  ;;  %3593 = vmatprep.subr.bf16.mxu0 %v10028_v0  ;;  %v9602_v21 = vld [vmem:[%s10048_s14 + $0x40] sm:$0xff]   ;;  %781 = vst.msk [vmem:[#allocation2 + $0x70] sm:$0xff] %vm773_vm0, %v9601_v20  ;;  %v9635_v61 = vld [vmem:[%s10048_s14 + $0x58] sm:$0xff]  }
  0x29   : > { %3374 = vmatpush1.bf16.msra.mxu1 %v3352_v5  ;;  %782 = vst.msk [vmem:[#allocation2 + $0x80] sm:$0xff] %vm773_vm0, %v9602_v21  ;;  %785 = vst.msk [vmem:[#allocation2 + $0xb0] sm:$0xff] %vm773_vm0, %v9635_v61  ;;  %v9929_v8 = vld [vmem:[%s12678_s1 + $0x10] ss:$8 sps:$4 sm:$0xff]  }
  0x2a   : > { %3829 = vmatprep.subr.bf16.mxu1 %v10028_v0  ;;  %v9526_v0 = vld [vmem:[%s10048_s14 + $0x78] sm:$0xff]  }
  0x2b   : > { %1168 = vrot.lane.b32.xlu1 %v9494_v22, %s9946_s22  ;;  %v9543_v22 = vld [vmem:[%s10048_s14 + $0x80] sm:$0xff]   ;;  %v9933_v20 = vld [vmem:[%s12678_s1 + $0x30] ss:$8 sps:$4 sm:$0xff]  }
  0x2c   : > { %1162 = vrot.lane.b32.xlu0 %v9495_v23, %s9946_s22  ;;  %v9544_v23 = vld [vmem:[%s10048_s14 + $0x68] sm:$0xff]  }
  0x2f   : > { %1697 = vrot.lane.b32.xlu1 %v9496_v24, %s9948_s28  ;;  %v9548_v24 = vld [vmem:[%s10048_s14 + $0x90] sm:$0xff]  }
  0x30   : > { %1691 = vrot.lane.b32.xlu0 %v9497_v25, %s9948_s28  ;;  %v9549_v25 = vld [vmem:[%s10048_s14 + $0x78] sm:$0xff]  }
  0x33   : > { %2749 = vrot.lane.b32.xlu1 %v9498_v26, %s9947_s27  ;;  %v9611_v26 = vld [vmem:[%s10048_s14 + $0x60] sm:$0xff]  }
  0x34   : > { %2220 = vrot.lane.b32.xlu0 %v9499_v27, %s9945_s21  ;;  %v9553_v27 = vld [vmem:[%s10048_s14 + $0x98] sm:$0xff]   ;;  %786 = vst.msk [vmem:[#allocation2 + $0xc0] sm:$0xff] %vm773_vm0, %v9611_v26 }
  0x37   : > { %2755 = vrot.lane.b32.xlu1 %v9500_v28, %s9947_s27  ;;  %v9554_v28 = vld [vmem:[%s10048_s14 + $0x88] sm:$0xff]  }
  0x38   : > { %2226 = vrot.lane.b32.xlu0 %v9501_v29, %s9945_s21  ;;  %v9616_v29 = vld [vmem:[%s10048_s14 + $0x48] sm:$0xff]  }
  0x39   : > { %783 = vst.msk [vmem:[#allocation2 + $0x90] sm:$0xff] %vm773_vm0, %v9616_v29  ;;  %v9935_v29 = vld [vmem:[%s12678_s1 + $0x40] ss:$8 sps:$4 sm:$0xff]  }
  0x3b   : > { %1170 = vrot.lane.b32.xlu1 %v9502_v30, %s9946_s22  ;;  %v9559_v30 = vld [vmem:[%s10048_s14 + $0xb0] sm:$0xff]  }
  0x3c   : > { %1164 = vrot.lane.b32.xlu0 %v9503_v31, %s9946_s22  ;;  %v9560_v31 = vld [vmem:[%s10048_s14 + $0xa0] sm:$0xff]  }
  0x3f   : > { %1699 = vrot.lane.b32.xlu1 %v9504_v32, %s9948_s28 }
  0x40   : > { %1693 = vrot.lane.b32.xlu0 %v9505_v33, %s9948_s28 }
  0x43   : > { %2751 = vrot.lane.b32.xlu1 %v9506_v34, %s9947_s27  ;;  %v9564_v34 = vld [vmem:[%s10048_s14 + $0x88] sm:$0xff]  }
  0x44   : > { %2222 = vrot.lane.b32.xlu0 %v9507_v35, %s9945_s21  ;;  %v9565_v35 = vld [vmem:[%s10048_s14 + $0x90] sm:$0xff]  }
  0x47   : > { %2757 = vrot.lane.b32.xlu1 %v9508_v36, %s9947_s27  ;;  %v9621_v36 = vld [vmem:[%s10048_s14 + $0x68] sm:$0xff]  }
  0x48   : > { %2228 = vrot.lane.b32.xlu0 %v9509_v37, %s9945_s21  ;;  %787 = vst.msk [vmem:[#allocation2 + $0xd0] sm:$0xff] %vm773_vm0, %v9621_v36  ;;  %v3486_v36 = vld [vmem:[%s12678_s1 + $0x88] sm:$0x33] }
  0x4b   : > { %1172 = vrot.lane.b32.xlu1 %v9510_v38, %s9946_s22  ;;  %v9622_v38 = vld [vmem:[%s10048_s14 + $0x50] sm:$0xff]  }
  0x4c   : > { %1174 = vrot.lane.b32.xlu0 %v9511_v39, %s9946_s22  ;;  %784 = vst.msk [vmem:[#allocation2 + $0xa0] sm:$0xff] %vm773_vm0, %v9622_v38 }
  0x4f   : > { %1701 = vrot.lane.b32.xlu1 %v9512_v40, %s9948_s28  ;;  %v9570_v40 = vld [vmem:[%s10048_s14 + $0x98] sm:$0xff]  }
  0x50   : > { %1703 = vrot.lane.b32.xlu0 %v9513_v41, %s9948_s28  ;;  %v9571_v41 = vld [vmem:[%s10048_s14 + $0xa0] sm:$0xff]  }
  0x53   : > { %2761 = vrot.lane.b32.xlu1 %v9514_v45, %s9947_s27 }
  0x54   : > { %2232 = vrot.lane.b32.xlu0 %v9515_v46, %s9945_s21  ;;  %v9574_v46 = vld [vmem:[%s10048_s14 + $0xc0] sm:$0xff]  }
  0x57   : > { %2759 = vrot.lane.b32.xlu1 %v9516_v49, %s9947_s27  ;;  %v9575_v49 = vld [vmem:[%s10048_s14 + $0xb0] sm:$0xff]  }
  0x58   : > { %2230 = vrot.lane.b32.xlu0 %v9517_v50, %s9945_s21 }
  0x5b   : > { %1711 = vrot.lane.b32.xlu1 %v9518_v54, %s9948_s28 }
  0x5c   : > { %1182 = vrot.lane.b32.xlu0 %v9519_v57, %s9946_s22  ;;  %v9578_v57 = vld [vmem:[%s10048_s14 + $0xa8] sm:$0xff]  }
  0x5f   : > { %2769 = vrot.lane.b32.xlu1 %v9520_v63, %s9947_s27  ;;  %v9927_v63 = vld [vmem:[%s12678_s1] ss:$8 sps:$4 sm:$0xff]  }
  0x60   : > { %2240 = vrot.lane.b32.xlu0 %v9521_v3, %s9945_s21  ;;  %v9580_v3 = vld [vmem:[%s10048_s14 + $0xb0] sm:$0xff]  }
  0x63   : > { %1705 = vrot.lane.b32.xlu1 %v9522_v4, %s9948_s28 }
  0x64   : > { %1176 = vrot.lane.b32.xlu0 %v9523_v6, %s9946_s22 }
  0x67   : > { %2763 = vrot.lane.b32.xlu1 %v9524_v9, %s9947_s27 }
  0x68   : > { %2234 = vrot.lane.b32.xlu0 %v9525_v10, %s9945_s21  ;;  %v9930_v10 = vld [vmem:[%s12678_s1 + $0x24] ss:$8 sps:$4 sm:$0xff]  }
  0x6b   : > { %1184 = vrot.lane.b32.xlu1 %v9526_v0, %s9946_s22  ;;  %v9584_v0 = vld [vmem:[%s10048_s14 + $0x98] sm:$0xff]  }
  0x6c   : > { %1178 = vrot.lane.b32.xlu0 %v9527_v11, %s9946_s22 }
  0x6f   : > { %1713 = vrot.lane.b32.xlu1 %v9528_v14, %s9948_s28  ;;  %v9585_v14 = vld [vmem:[%s10048_s14 + $0xa8] sm:$0xff]  }
  0x70   : > { %1707 = vrot.lane.b32.xlu0 %v9529_v15, %s9948_s28  ;;  %v9932_v15 = vld [vmem:[%s12678_s1 + $0x34] ss:$8 sps:$4 sm:$0xff]  }
  0x73   : > { %2765 = vrot.lane.b32.xlu1 %v9533_v16, %s9947_s27  ;;  %v9586_v16 = vld [vmem:[%s10048_s14 + $0xe0] sm:$0xff]  }
  0x74   : > { %2236 = vrot.lane.b32.xlu0 %v9534_v17, %s9945_s21 }
  0x77   : > { %2771 = vrot.lane.b32.xlu1 %v9538_v18, %s9947_s27 }
  0x78   : > { %2242 = vrot.lane.b32.xlu0 %v9539_v19, %s9945_s21 }
  0x7b   : > { %1186 = vrot.lane.b32.xlu1 %v9543_v22, %s9946_s22  ;;  %v9587_v22 = vld [vmem:[%s10048_s14 + $0xc8] sm:$0xff]  }
  0x7c   : > { %1180 = vrot.lane.b32.xlu0 %v9544_v23, %s9946_s22  ;;  %v9588_v23 = vld [vmem:[%s10048_s14 + $0xb8] sm:$0xff]  }
  0x7f   : > { %1715 = vrot.lane.b32.xlu1 %v9548_v24, %s9948_s28  ;;  %v9934_v24 = vld [vmem:[%s12678_s1 + $0x44] ss:$8 sps:$4 sm:$0xff]  }
  0x80   : > { %1709 = vrot.lane.b32.xlu0 %v9549_v25, %s9948_s28  ;;  %v9656_v25 = vld [vmem:[%s10048_s14 + $0x78] sm:$0xff]  }
  0x81   : > { %789 = vst.msk [vmem:[#allocation2 + $0xf0] sm:$0xff] %vm773_vm0, %v9656_v25  ;;  %v9613_v25 = vld [vmem:[%s10048_s14 + $0xc8] sm:$0xff]  }
  0x83   : > { %2767 = vrot.lane.b32.xlu1 %v9553_v27, %s9947_s27  ;;  %v9657_v27 = vld [vmem:[%s10048_s14 + $0x80] sm:$0xff]  }
  0x84   : > { %2238 = vrot.lane.b32.xlu0 %v9554_v28, %s9945_s21  ;;  %790 = vst.msk [vmem:[#allocation2 + $0x100] sm:$0xff] %vm773_vm0, %v9657_v27 }
  0x85   : > { %v2217_v32 = vpop.permute.xlu1 %2216 }
  0x86   : > { %v1159_v33 = vpop.permute.xlu0 %1158 }
  0x87   : > { %1303 = vst.msk [vmem:[#allocation2] sm:$0xff] %vm1302_vm2, %v1159_v33  ;;  %2773 = vrot.lane.b32.xlu1 %v9559_v30, %s9947_s27  ;;  %v9589_v30 = vld [vmem:[%s10048_s14 + $0xb0] sm:$0xff]  }
  0x88   : > { %2244 = vrot.lane.b32.xlu0 %v9560_v31, %s9945_s21  ;;  %v9590_v31 = vld [vmem:[%s10048_s14 + $0xa0] sm:$0xff]  }
  0x89   : > { %v2746_v37 = vpop.permute.xlu1 %2745 }
  0x8a   : > { %2892 = vst.msk [vmem:[#allocation2 + $0x8] sm:$0xff] %vm2891_vm3, %v2746_v37  ;;  %v1688_v39 = vpop.permute.xlu0 %1687 }
  0x8b   : > { %1832 = vst.msk [vmem:[#allocation2] sm:$0xff] %vm1831_vm4, %v1688_v39  ;;  %1188 = vrot.lane.b32.xlu1 %v9564_v34, %s9946_s22  ;;  %v9593_v34 = vld [vmem:[%s10048_s14 + $0xc0] sm:$0xff]  }
  0x8c   : > { %2361 = vst.msk [vmem:[#allocation2] sm:$0xff] %vm2360_vm5, %v2217_v32  ;;  %1190 = vrot.lane.b32.xlu0 %v9565_v35, %s9946_s22  ;;  %v9594_v35 = vld [vmem:[%s10048_s14 + $0xb8] sm:$0xff]  }
  0x8d   : > { %2890 = vst.msk [vmem:[#allocation2] sm:$0xff] %vm2889_vm6, %v2746_v37  ;;  %v1696_v44 = vpop.permute.xlu1 %1695 }
  0x8e   : > { %v1167_v45 = vpop.permute.xlu0 %1166 }
  0x8f   : > { %1307 = vst.msk [vmem:[#allocation2 + $0x40] sm:$0xff] %vm1302_vm2, %v1167_v45  ;;  %1717 = vrot.lane.b32.xlu1 %v9570_v40, %s9948_s28  ;;  %v9595_v40 = vld [vmem:[%s10048_s14 + $0xc8] sm:$0xff]   ;;  %v8707_v45 = vcombine.low %v10184_v55, %v3486_v36 }
  0x90   : > { %1836 = vst.msk [vmem:[#allocation2 + $0x40] sm:$0xff] %vm1831_vm4, %v1696_v44  ;;  %1719 = vrot.lane.b32.xlu0 %v9571_v41, %s9948_s28  ;;  %v8708_v44 = vcombine.high %v10184_v55, %v3486_v36 }
  0x91   : > { %v2754_v50 = vpop.permute.xlu1 %2753  ;;  %v2988_v53 = vld [vmem:[#allocation2 + $0x8] sm:$0xff]  ;;  %v3588_v58 = vsel %vm3113_vm1, %v8707_v45, 0 }
  0x92   : > { %2900 = vst.msk [vmem:[#allocation2 + $0x48] sm:$0xff] %vm2891_vm3, %v2754_v50  ;;  %v2225_v54 = vpop.permute.xlu0 %2224  ;;  %8662 = vmatprep.mubr.msk.bf16.mxu0 %vm2891_vm3, %v2988_v53  ;;  %v10516_v45 = vld [vmem:[%s12678_s1 + $0x20] ss:$8 sps:$4 sm:$0xff]  }
  0x93   : > { %2365 = vst.msk [vmem:[#allocation2 + $0x40] sm:$0xff] %vm2360_vm5, %v2225_v54  ;;  %2777 = vrot.lane.b32.xlu1 %v9574_v46, %s9947_s27  ;;  %v9596_v46 = vld [vmem:[%s10048_s14 + $0xd0] sm:$0xff]   ;;  %v9597_v54 = vld [vmem:[%s10048_s14 + $0xe8] sm:$0xff]  }
  0x94   : > { %2899 = vst.msk [vmem:[#allocation2 + $0x40] sm:$0xff] %vm2889_vm6, %v2754_v50  ;;  %2248 = vrot.lane.b32.xlu0 %v9575_v49, %s9945_s21  ;;  %v2987_v59 = vld [vmem:[#allocation2] sm:$0xff] }
  0x95   : > { %3153 = vmatmul.mubr.bf16.vlgmr.msra.gmra.mrb[0].mxu0 %v2987_v59  ;;  %v1690_v60 = vpop.permute.xlu1 %1689  ;;  %v10404_v59 = vld [vmem:[%s12678_s1 + $0x4] ss:$8 sps:$4 sm:$0xff]  }
  0x96   : > { %v1161_v62 = vpop.permute.xlu0 %1160  ;;  %3594 = vmatpush1.bf16.msra.mxu0 %v9927_v63 }
  0x97   : > { %1304 = vst.msk [vmem:[#allocation2 + $0x10] sm:$0xff] %vm1302_vm2, %v1161_v62  ;;  %2775 = vrot.lane.b32.xlu1 %v9577_v56, %s9947_s27  ;;  %3595 = vmatprep.subr.bf16.mxu0 %v9928_v2  ;;  %v9599_v62 = vld [vmem:[%s10048_s14 + $0xb8] sm:$0xff]  }
  0x98   : > { %1833 = vst.msk [vmem:[#allocation2 + $0x10] sm:$0xff] %vm1831_vm4, %v1690_v60  ;;  %2246 = vrot.lane.b32.xlu0 %v9578_v57, %s9945_s21  ;;  %v9598_v57 = vld [vmem:[%s10048_s14 + $0xd8] sm:$0xff]   ;;  %v9677_v60 = vld [vmem:[%s10048_s14 + $0xa0] sm:$0xff]  }
  0x99   : > { %v2748_v4 = vpop.permute.xlu1 %2747  ;;  %v3226_v5 = vld [vmem:[#allocation2 + $0x48] sm:$0xff]  ;;  %794 = vst.msk [vmem:[#allocation2 + $0x140] sm:$0xff] %vm773_vm0, %v9677_v60 }
  0x9a   : > { %2894 = vst.msk [vmem:[#allocation2 + $0x18] sm:$0xff] %vm2891_vm3, %v2748_v4  ;;  %v2219_v6 = vpop.permute.xlu0 %2218  ;;  %8686 = vmatprep.mubr.msk.bf16.mxu1 %vm2891_vm3, %v3226_v5  ;;  %3596 = vmatpush1.bf16.msra.mxu0 %v9929_v8 }
  0x9b   : > { %2362 = vst.msk [vmem:[#allocation2 + $0x10] sm:$0xff] %vm2360_vm5, %v2219_v6  ;;  %1727 = vrot.lane.b32.xlu1 %v9579_v1, %s9948_s28  ;;  %v3225_v9 = vld [vmem:[#allocation2 + $0x40] sm:$0xff]  ;;  %3597 = vmatprep.subr.bf16.mxu0 %v9930_v10  ;;  %v9600_v1 = vld [vmem:[%s10048_s14 + $0xa8] sm:$0xff]  }
  0x9c   : > { %2893 = vst.msk [vmem:[#allocation2 + $0x10] sm:$0xff] %vm2889_vm6, %v2748_v4  ;;  %1198 = vrot.lane.b32.xlu0 %v9580_v3, %s9946_s22  ;;  %3390 = vmatmul.mubr.bf16.vlgmr.msra.gmra.mrb[0].mxu1 %v3225_v9  ;;  %v9604_v6 = vld [vmem:[%s10048_s14 + $0xc0] sm:$0xff]   ;;  %v9605_v9 = vld [vmem:[%s10048_s14 + $0xd0] sm:$0xff]  }
  0x9d   : > { %v1169_v11 = vpop.permute.xlu1 %1168  ;;  %3830 = vmatpush1.bf16.msra.mxu1 %v9927_v63 }
  0x9e   : > { %1308 = vst.msk [vmem:[#allocation2 + $0x50] sm:$0xff] %vm1302_vm2, %v1169_v11  ;;  %v1163_v12 = vpop.permute.xlu0 %1162  ;;  %3598 = vmatpush1.bf16.msra.mxu0 %v9931_v13  ;;  %3831 = vmatprep.subr.bf16.mxu1 %v9928_v2  ;;  %v9680_v2 = vld [vmem:[%s10048_s14 + $0x88] sm:$0xff]  }
  0x9f   : > { %1305 = vst.msk [vmem:[#allocation2 + $0x20] sm:$0xff] %vm1302_vm2, %v1163_v12  ;;  %2256 = vrot.lane.b32.xlu1 %v9583_v7, %s9945_s21  ;;  %3599 = vmatprep.subr.bf16.mxu0 %v9932_v15 }
  0xa0   : > { %1192 = vrot.lane.b32.xlu0 %v9584_v0, %s9946_s22  ;;  %791 = vst.msk [vmem:[#allocation2 + $0x110] sm:$0xff] %vm773_vm0, %v9680_v2  ;;  %v9606_v0 = vld [vmem:[%s10048_s14 + $0xd8] sm:$0xff]  }
  0xa1   : > { %v1698_v17 = vpop.permute.xlu1 %1697  ;;  %v2990_v18 = vld [vmem:[#allocation2 + $0x18] sm:$0xff]  ;;  %3832 = vmatpush1.bf16.msra.mxu1 %v9929_v8 }
  0xa2   : > { %1837 = vst.msk [vmem:[#allocation2 + $0x50] sm:$0xff] %vm1831_vm4, %v1698_v17  ;;  %v1692_v19 = vpop.permute.xlu0 %1691  ;;  %8663 = vmatprep.mubr.msk.bf16.mxu0 %vm2891_vm3, %v2990_v18  ;;  %3600 = vmatpush1.bf16.msra.mxu0 %v9933_v20  ;;  %v9623_v2 = vld [vmem:[%s10048_s14 + $0xf8] sm:$0xff]  }
  0xa3   : > { %1834 = vst.msk [vmem:[#allocation2 + $0x20] sm:$0xff] %vm1831_vm4, %v1692_v19  ;;  %1721 = vrot.lane.b32.xlu1 %v9585_v14, %s9948_s28  ;;  %v2989_v21 = vld [vmem:[#allocation2 + $0x10] sm:$0xff]  ;;  %3601 = vmatprep.subr.bf16.mxu0 %v9934_v24  ;;  %v9609_v19 = vld [vmem:[%s10048_s14 + $0xe0] sm:$0xff]  }
  0xa4   : > { %2785 = vrot.lane.b32.xlu0 %v9586_v16, %s9947_s27  ;;  %3163 = vmatmul.mubr.bf16.gmra.mrb[4].mxu0 %v2989_v21  ;;  %v9608_v16 = vld [vmem:[%s10048_s14 + $0xe0] sm:$0xff]  }
  0xa5   : > { %v2750_v26 = vpop.permute.xlu1 %2749  ;;  %3833 = vmatprep.subr.bf16.mxu1 %v9930_v10  ;;  %v9687_v10 = vld [vmem:[%s10048_s14 + $0x90] sm:$0xff]  }
  0xa6   : > { %2896 = vst.msk [vmem:[#allocation2 + $0x28] sm:$0xff] %vm2891_vm3, %v2750_v26  ;;  %v2221_v28 = vpop.permute.xlu0 %2220  ;;  %3602 = vmatpush1.bf16.msra.mxu0 %v9935_v29  ;;  %3834 = vmatpush1.bf16.msra.mxu1 %v9931_v13  ;;  %v9607_v13 = vld [vmem:[%s10048_s14 + $0xf0] sm:$0xff]  }
  0xa7   : > { %2363 = vst.msk [vmem:[#allocation2 + $0x20] sm:$0xff] %vm2360_vm5, %v2221_v28  ;;  %2779 = vrot.lane.b32.xlu1 %v9587_v22, %s9947_s27  ;;  %3603 = vmatprep.subr.bf16.mxu0 %v10129_v42  ;;  %v9612_v22 = vld [vmem:[%s10048_s14 + $0xf0] sm:$0xff]  }
  0xa8   : > { %2895 = vst.msk [vmem:[#allocation2 + $0x20] sm:$0xff] %vm2889_vm6, %v2750_v26  ;;  %2250 = vrot.lane.b32.xlu0 %v9588_v23, %s9945_s21  ;;  %3835 = vmatprep.subr.bf16.mxu1 %v9932_v15  ;;  %v9690_v15 = vld [vmem:[%s10048_s14 + $0xa8] sm:$0xff]  }
  0xa9   : > { %v2756_v32 = vpop.permute.xlu1 %2755  ;;  %792 = vst.msk [vmem:[#allocation2 + $0x120] sm:$0xff] %vm773_vm0, %v9687_v10  ;;  %795 = vst.msk [vmem:[#allocation2 + $0x150] sm:$0xff] %vm773_vm0, %v9690_v15  ;;  %v10476_v26 = vld [vmem:[%s12678_s1] ss:$8 sps:$4 sm:$0xff]   ;;  %v10590_v10 = vld [vmem:[%s12678_s1 + $0x64] ss:$8 sps:$4 sm:$0xff]  }
  0xaa   : > { %2902 = vst.msk [vmem:[#allocation2 + $0x58] sm:$0xff] %vm2891_vm3, %v2756_v32  ;;  %v2227_v33 = vpop.permute.xlu0 %2226  ;;  %3604 = vmatpush1.bf16.msra.mxu0 %v10134_v43  ;;  %3836 = vmatpush1.bf16.msra.mxu1 %v9933_v20  ;;  %v9610_v20 = vld [vmem:[%s10048_s14 + $0xd0] sm:$0xff]   ;;  %v9723_v15 = vld [vmem:[%s10048_s14 + $0xe0] sm:$0xff]  }
  0xab   : > { %2366 = vst.msk [vmem:[#allocation2 + $0x50] sm:$0xff] %vm2360_vm5, %v2227_v33  ;;  %1723 = vrot.lane.b32.xlu1 %v9589_v30, %s9948_s28  ;;  %3605 = vmatprep.subr.bf16.mxu0 %v10149_v47  ;;  %v9700_v30 = vld [vmem:[%s10048_s14 + $0xb0] sm:$0xff]  }
  0xac   : > { %2901 = vst.msk [vmem:[#allocation2 + $0x50] sm:$0xff] %vm2889_vm6, %v2756_v32  ;;  %1194 = vrot.lane.b32.xlu0 %v9590_v31, %s9946_s22  ;;  %3837 = vmatprep.subr.bf16.mxu1 %v9934_v24  ;;  %v9697_v24 = vld [vmem:[%s10048_s14 + $0x98] sm:$0xff]  }
  0xad   : > { %v1171_v37 = vpop.permute.xlu1 %1170  ;;  %v2992_v38 = vld [vmem:[#allocation2 + $0x28] sm:$0xff]  ;;  %793 = vst.msk [vmem:[#allocation2 + $0x130] sm:$0xff] %vm773_vm0, %v9697_v24  ;;  %v10485_v32 = vld [vmem:[%s12678_s1 + $0x14] ss:$8 sps:$4 sm:$0xff]   ;;  %796 = vst.msk [vmem:[#allocation2 + $0x160] sm:$0xff] %vm773_vm0, %v9700_v30 }
  0xae   : > { %1309 = vst.msk [vmem:[#allocation2 + $0x60] sm:$0xff] %vm1302_vm2, %v1171_v37  ;;  %v1165_v39 = vpop.permute.xlu0 %1164  ;;  %8664 = vmatprep.mubr.msk.bf16.mxu0 %vm2891_vm3, %v2992_v38  ;;  %3606 = vmatpush1.bf16.msra.mxu0 %v10155_v48  ;;  %v9617_v37 = vld [vmem:[%s10048_s14 + $0xf8] sm:$0xff]  }
  0xaf   : > { %1306 = vst.msk [vmem:[#allocation2 + $0x30] sm:$0xff] %vm1302_vm2, %v1165_v39  ;;  %2252 = vrot.lane.b32.xlu1 %v9593_v34, %s9945_s21  ;;  %v2991_v41 = vld [vmem:[#allocation2 + $0x20] sm:$0xff]  ;;  %3607 = vmatprep.subr.bf16.mxu0 %v10167_v51  ;;  %v10498_v38 = vld [vmem:[%s12678_s1 + $0x10] ss:$8 sps:$4 sm:$0xff]  }
  0xb0   : > { %1200 = vrot.lane.b32.xlu0 %v9594_v35, %s9946_s22  ;;  %3173 = vmatmul.mubr.bf16.gmra.mrb[8].mxu0 %v2991_v41  ;;  %v9615_v34 = vld [vmem:[%s10048_s14 + $0x100] sm:$0xff]   ;;  %802 = vst.msk [vmem:[#allocation2 + $0x1c0] sm:$0xff] %vm773_vm0, %v9723_v15 }
  0xb1   : > { %v1700_v49 = vpop.permute.xlu1 %1699  ;;  %v3228_v50 = vld [vmem:[#allocation2 + $0x58] sm:$0xff]  ;;  %3838 = vmatpush1.bf16.msra.mxu1 %v9935_v29 }
  0xb2   : > { %1838 = vst.msk [vmem:[#allocation2 + $0x60] sm:$0xff] %vm1831_vm4, %v1700_v49  ;;  %v1694_v53 = vpop.permute.xlu0 %1693  ;;  %8687 = vmatprep.mubr.msk.bf16.mxu1 %vm2891_vm3, %v3228_v50  ;;  %3608 = vmatpush1.bf16.msra.mxu0 %v10172_v52  ;;  %v9614_v29 = vld [vmem:[%s10048_s14 + $0xd8] sm:$0xff]   ;;  %v9619_v49 = vld [vmem:[%s10048_s14 + $0xe8] sm:$0xff]   ;;  %v9707_v50 = vld [vmem:[%s10048_s14 + $0xc0] sm:$0xff]  }
  0xb3   : > { %1835 = vst.msk [vmem:[#allocation2 + $0x30] sm:$0xff] %vm1831_vm4, %v1694_v53  ;;  %1729 = vrot.lane.b32.xlu1 %v9595_v40, %s9948_s28  ;;  %v3227_v56 = vld [vmem:[#allocation2 + $0x50] sm:$0xff]  ;;  %8709 = vmatprep.subr.msk.bf16.mxu0 %vm3113_vm1, %v8708_v44  ;;  %v10506_v40 = vld [vmem:[%s12678_s1 + $0x24] ss:$8 sps:$4 sm:$0xff]  }
  0xb4   : > { %2781 = vrot.lane.b32.xlu0 %v9596_v46, %s9947_s27  ;;  %3400 = vmatmul.mubr.bf16.gmra.mrb[4].mxu1 %v3227_v56  ;;  %v9618_v44 = vld [vmem:[%s10048_s14 + $0xe8] sm:$0xff]   ;;  %v10526_v56 = vld [vmem:[%s12678_s1 + $0x34] ss:$8 sps:$4 sm:$0xff]   ;;  %798 = vst.msk [vmem:[#allocation2 + $0x180] sm:$0xff] %vm773_vm0, %v9707_v50 }
  0xb5   : > { %v2752_v61 = vpop.permute.xlu1 %2751  ;;  %3839 = vmatprep.subr.bf16.mxu1 %v10129_v42  ;;  %v3722_v42 = vld [vmem:[%s12678_s1 + $0x88] sm:$0x33] }
  0xb6   : > { %2898 = vst.msk [vmem:[#allocation2 + $0x38] sm:$0xff] %vm2891_vm3, %v2752_v61  ;;  %v2223_v63 = vpop.permute.xlu0 %2222  ;;  %3610 = vmatpush1.bf16.msra.mxu0 %v3588_v58  ;;  %3840 = vmatpush1.bf16.msra.mxu1 %v10134_v43  ;;  %v8732_v4 = vcombine.high %v10184_v55, %v3722_v42  ;;  %v8731_v5 = vcombine.low %v10184_v55, %v3722_v42  ;;  %v9710_v58 = vld [vmem:[%s10048_s14 + $0xb8] sm:$0xff]   ;;  %v9624_v42 = vld [vmem:[%s10048_s14 + $0xf0] sm:$0xff]   ;;  %v9735_v50 = vld [vmem:[%s10048_s14 + $0xe8] sm:$0xff]  }
  0xb7   : > { %2364 = vst.msk [vmem:[#allocation2 + $0x30] sm:$0xff] %vm2360_vm5, %v2223_v63  ;;  %2787 = vrot.lane.b32.xlu1 %v9597_v54, %s9947_s27  ;;  %3841 = vmatprep.subr.bf16.mxu1 %v10149_v47  ;;  %v9603_v47 = vld [vmem:[%s10048_s14 + $0xc8] sm:$0xff]   ;;  %v9620_v54 = vld [vmem:[%s10048_s14 + $0xd8] sm:$0xff]  }
  0xb8   : > { %2897 = vst.msk [vmem:[#allocation2 + $0x30] sm:$0xff] %vm2889_vm6, %v2752_v61  ;;  %2258 = vrot.lane.b32.xlu0 %v9598_v57, %s9945_s21  ;;  %4065 = vmatprep.subr.bf16.mxu0 %v10404_v59  ;;  %v3824_v55 = vsel %vm3113_vm1, %v8731_v5, 0  ;;  %v10533_v57 = vld [vmem:[%s12678_s1 + $0x30] ss:$8 sps:$4 sm:$0xff]   ;;  %v10546_v63 = vld [vmem:[%s12678_s1 + $0x44] ss:$8 sps:$4 sm:$0xff]  }
  0xb9   : > { %v2758_v43 = vpop.permute.xlu1 %2757  ;;  %797 = vst.msk [vmem:[#allocation2 + $0x170] sm:$0xff] %vm773_vm0, %v9710_v58  ;;  %v10568_v5 = vld [vmem:[%s12678_s1 + $0x54] ss:$8 sps:$4 sm:$0xff]   ;;  %803 = vst.msk [vmem:[#allocation2 + $0x1d0] sm:$0xff] %vm773_vm0, %v9735_v50 }
  0xba   : > { %2904 = vst.msk [vmem:[#allocation2 + $0x68] sm:$0xff] %vm2891_vm3, %v2758_v43  ;;  %v2229_v3 = vpop.permute.xlu0 %2228  ;;  %3842 = vmatpush1.bf16.msra.mxu1 %v10155_v48  ;;  %v9684_v50 = vld [vmem:[%s10048_s14 + $0x138] sm:$0xff]  }
  0xbb   : > { %2367 = vst.msk [vmem:[#allocation2 + $0x60] sm:$0xff] %vm2360_vm5, %v2229_v3  ;;  %1725 = vrot.lane.b32.xlu1 %v9599_v62, %s9948_s28  ;;  %3843 = vmatprep.subr.bf16.mxu1 %v10167_v51  ;;  %v9625_v3 = vld [vmem:[%s10048_s14 + $0x100] sm:$0xff]  }
  0xbc   : > { %2903 = vst.msk [vmem:[#allocation2 + $0x60] sm:$0xff] %vm2889_vm6, %v2758_v43  ;;  %1196 = vrot.lane.b32.xlu0 %v9600_v1, %s9946_s22 }
  0xbd   : > { %v1173_v7 = vpop.permute.xlu1 %1172  ;;  %v2994_v48 = vld [vmem:[#allocation2 + $0x38] sm:$0xff] }
  0xbe   : > { %1310 = vst.msk [vmem:[#allocation2 + $0x70] sm:$0xff] %vm1302_vm2, %v1173_v7  ;;  %v1175_v8 = vpop.permute.xlu0 %1174  ;;  %8665 = vmatprep.mubr.msk.bf16.mxu0 %vm2891_vm3, %v2994_v48  ;;  %3844 = vmatpush1.bf16.msra.mxu1 %v10172_v52  ;;  %v10577_v7 = vld [vmem:[%s12678_s1 + $0x50] ss:$8 sps:$4 sm:$0xff]   ;;  %v9717_v48 = vld [vmem:[%s10048_s14 + $0xc8] sm:$0xff]  }
  0xbf   : > { %1311 = vst.msk [vmem:[#allocation2 + $0x80] sm:$0xff] %vm1302_vm2, %v1175_v8  ;;  %2254 = vrot.lane.b32.xlu1 %v9603_v47, %s9945_s21  ;;  %v2993_v51 = vld [vmem:[#allocation2 + $0x30] sm:$0xff]  ;;  %8733 = vmatprep.subr.msk.bf16.mxu1 %vm3113_vm1, %v8732_v4  ;;  %v10560_v47 = vld [vmem:[%s12678_s1 + $0x40] ss:$8 sps:$4 sm:$0xff]  }
  0xc0   : > { %1202 = vrot.lane.b32.xlu0 %v9604_v6, %s9946_s22  ;;  %3183 = vmatmul.mubr.bf16.gmra.mrb[12].mxu0 %v2993_v51  ;;  %v9626_v6 = vld [vmem:[%s10048_s14 + $0x108] sm:$0xff]   ;;  %v9627_v51 = vld [vmem:[%s10048_s14 + $0x120] sm:$0xff]   ;;  %799 = vst.msk [vmem:[#allocation2 + $0x190] sm:$0xff] %vm773_vm0, %v9717_v48 }
  0xc1   : > { %v1702_v11 = vpop.permute.xlu1 %1701  ;;  %v3230_v12 = vld [vmem:[#allocation2 + $0x68] sm:$0xff] }
  0xc2   : > { %1839 = vst.msk [vmem:[#allocation2 + $0x70] sm:$0xff] %vm1831_vm4, %v1702_v11  ;;  %v1704_v52 = vpop.permute.xlu0 %1703  ;;  %8688 = vmatprep.mubr.msk.bf16.mxu1 %vm2891_vm3, %v3230_v12  ;;  %3846 = vmatpush1.bf16.msra.mxu1 %v3824_v55  ;;  %v9628_v11 = vld [vmem:[%s10048_s14 + $0x110] sm:$0xff]   ;;  %v10601_v12 = vld [vmem:[%s12678_s1 + $0x60] ss:$8 sps:$4 sm:$0xff]  }
  0xc3   : > { %1840 = vst.msk [vmem:[#allocation2 + $0x80] sm:$0xff] %vm1831_vm4, %v1704_v52  ;;  %1731 = vrot.lane.b32.xlu1 %v9605_v9, %s9948_s28  ;;  %v3229_v14 = vld [vmem:[#allocation2 + $0x60] sm:$0xff]  ;;  %4301 = vmatprep.subr.bf16.mxu1 %v10404_v59  ;;  %v10606_v52 = vld [vmem:[%s12678_s1 + $0x74] ss:$8 sps:$4 sm:$0xff]  }
  0xc4   : > { %2783 = vrot.lane.b32.xlu0 %v9606_v0, %s9947_s27  ;;  %3410 = vmatmul.mubr.bf16.gmra.mrb[8].mxu1 %v3229_v14  ;;  %v9629_v14 = vld [vmem:[%s10048_s14 + $0xf0] sm:$0xff]  }
  0xc5   : > { %v2762_v17 = vpop.permute.xlu1 %2761 }
  0xc6   : > { %2908 = vst.msk [vmem:[#allocation2 + $0x88] sm:$0xff] %vm2891_vm3, %v2762_v17  ;;  %v2233_v18 = vpop.permute.xlu0 %2232 }
  0xc7   : > { %2369 = vst.msk [vmem:[#allocation2 + $0x80] sm:$0xff] %vm2360_vm5, %v2233_v18  ;;  %2789 = vrot.lane.b32.xlu1 %v9607_v13, %s9947_s27  ;;  %v3958_v18 = vld [vmem:[%s12678_s1 + $0x88] sm:$0x33] }
  0xc8   : > { %2907 = vst.msk [vmem:[#allocation2 + $0x80] sm:$0xff] %vm2889_vm6, %v2762_v17  ;;  %2260 = vrot.lane.b32.xlu0 %v9608_v16, %s9945_s21  ;;  %v10618_v17 = vld [vmem:[%s12678_s1 + $0x80] sm:$0xff] }
  0xc9   : > { %v2760_v21 = vpop.permute.xlu1 %2759  ;;  %v8756_v24 = vcombine.high %v10618_v17, %v3958_v18 }
  0xca   : > { %2906 = vst.msk [vmem:[#allocation2 + $0x78] sm:$0xff] %vm2891_vm3, %v2760_v21  ;;  %v2231_v23 = vpop.permute.xlu0 %2230 }
  0xcb   : > { %2368 = vst.msk [vmem:[#allocation2 + $0x70] sm:$0xff] %vm2360_vm5, %v2231_v23  ;;  %1735 = vrot.lane.b32.xlu1 %v9609_v19, %s9948_s28  ;;  %v9630_v19 = vld [vmem:[%s10048_s14 + $0xe0] sm:$0xff]   ;;  %v9636_v23 = vld [vmem:[%s10048_s14 + $0x110] sm:$0xff]  }
  0xcc   : > { %2905 = vst.msk [vmem:[#allocation2 + $0x70] sm:$0xff] %vm2889_vm6, %v2760_v21  ;;  %1206 = vrot.lane.b32.xlu0 %v9610_v20, %s9946_s22  ;;  %v10633_v21 = vld [vmem:[%s12678_s1 + $0x70] ss:$8 sps:$4 sm:$0xff]  }
  0xcd   : > { %v1712_v27 = vpop.permute.xlu1 %1711  ;;  %v3462_v28 = vld [vmem:[#allocation2 + $0x88] sm:$0xff] }
  0xce   : > { %v1183_v31 = vpop.permute.xlu0 %1182  ;;  %8710 = vmatprep.mubr.msk.bf16.mxu0 %vm2891_vm3, %v3462_v28  ;;  %v9730_v28 = vld [vmem:[%s10048_s14 + $0xd0] sm:$0xff]  }
  0xcf   : > { %1315 = vst.msk [vmem:[#allocation2 + $0xc0] sm:$0xff] %vm1302_vm2, %v1183_v31  ;;  %2264 = vrot.lane.b32.xlu1 %v9612_v22, %s9945_s21  ;;  %v3461_v33 = vld [vmem:[#allocation2 + $0x80] sm:$0xff] }
  0xd0   : > { %1844 = vst.msk [vmem:[#allocation2 + $0xc0] sm:$0xff] %vm1831_vm4, %v1712_v27  ;;  %1204 = vrot.lane.b32.xlu0 %v9613_v25, %s9946_s22  ;;  %3626 = vmatmul.mubr.bf16.vlgmr.msra.gmra.mrb[16].mxu0 %v3461_v33  ;;  %v8755_v25 = vcombine.low %v10618_v17, %v3958_v18  ;;  %v9637_v27 = vld [vmem:[%s10048_s14 + $0x100] sm:$0xff]  }
  0xd1   : > { %v2770_v35 = vpop.permute.xlu1 %2769  ;;  %v3232_v36 = vld [vmem:[#allocation2 + $0x78] sm:$0xff]  ;;  %4066 = vmatpush1.bf16.msra.mxu0 %v10476_v26  ;;  %800 = vst.msk [vmem:[#allocation2 + $0x1a0] sm:$0xff] %vm773_vm0, %v9730_v28  ;;  %v9669_v18 = vld [vmem:[%s10048_s14 + $0x120] sm:$0xff]  }
  0xd2   : > { %2916 = vst.msk [vmem:[#allocation2 + $0xc8] sm:$0xff] %vm2891_vm3, %v2770_v35  ;;  %v2241_v39 = vpop.permute.xlu0 %2240  ;;  %8689 = vmatprep.mubr.msk.bf16.mxu1 %vm2891_vm3, %v3232_v36  ;;  %4067 = vmatprep.subr.bf16.mxu0 %v10485_v32  ;;  %v4060_v33 = vsel %vm3113_vm1, %v8755_v25, 0  ;;  %v9642_v36 = vld [vmem:[%s10048_s14 + $0xf8] sm:$0xff]   ;;  %v9762_v25 = vld [vmem:[%s10048_s14 + $0x100] sm:$0xff]  }
  0xd3   : > { %2373 = vst.msk [vmem:[#allocation2 + $0xc0] sm:$0xff] %vm2360_vm5, %v2241_v39  ;;  %1733 = vrot.lane.b32.xlu1 %v9614_v29, %s9948_s28  ;;  %v3231_v41 = vld [vmem:[#allocation2 + $0x70] sm:$0xff]  ;;  %v9763_v28 = vld [vmem:[%s10048_s14 + $0xf8] sm:$0xff]  }
  0xd4   : > { %2915 = vst.msk [vmem:[#allocation2 + $0xc0] sm:$0xff] %vm2889_vm6, %v2770_v35  ;;  %2793 = vrot.lane.b32.xlu0 %v9615_v34, %s9947_s27  ;;  %3420 = vmatmul.mubr.bf16.gmra.mrb[12].mxu1 %v3231_v41  ;;  %v9641_v35 = vld [vmem:[%s10048_s14 + $0x108] sm:$0xff]   ;;  %v9646_v41 = vld [vmem:[%s10048_s14 + $0x118] sm:$0xff]  }
  0xd5   : > { %v1706_v46 = vpop.permute.xlu1 %1705  ;;  %4068 = vmatpush1.bf16.msra.mxu0 %v10498_v38  ;;  %806 = vst.msk [vmem:[#allocation2 + $0x200] sm:$0xff] %vm773_vm0, %v9762_v25  ;;  %805 = vst.msk [vmem:[#allocation2 + $0x1f0] sm:$0xff] %vm773_vm0, %v9763_v28  ;;  %v9790_v25 = vld [vmem:[%s10048_s14 + $0x118] sm:$0xff]   ;;  %v10841_v28 = vld [vmem:[%s12678_s1 + $0x4] ss:$8 sps:$4 sm:$0xff]  }
  0xd6   : > { %v1177_v53 = vpop.permute.xlu0 %1176  ;;  %4069 = vmatprep.subr.bf16.mxu0 %v10506_v40  ;;  %809 = vst.msk [vmem:[#allocation2 + $0x230] sm:$0xff] %vm773_vm0, %v9790_v25 }
  0xd7   : > { %1312 = vst.msk [vmem:[#allocation2 + $0x90] sm:$0xff] %vm1302_vm2, %v1177_v53  ;;  %2791 = vrot.lane.b32.xlu1 %v9617_v37, %s9947_s27  ;;  %v9647_v53 = vld [vmem:[%s10048_s14 + $0xe8] sm:$0xff]  }
  0xd8   : > { %1841 = vst.msk [vmem:[#allocation2 + $0x90] sm:$0xff] %vm1831_vm4, %v1706_v46  ;;  %2262 = vrot.lane.b32.xlu0 %v9618_v44, %s9945_s21  ;;  %v4194_v46 = vld [vmem:[%s12678_s1 + $0x88] sm:$0x33] }
  0xd9   : > { %v2764_v60 = vpop.permute.xlu1 %2763  ;;  %v3698_v61 = vld [vmem:[#allocation2 + $0xc8] sm:$0xff]  ;;  %4070 = vmatpush1.bf16.msra.mxu0 %v10516_v45 }
  0xda   : > { %2910 = vst.msk [vmem:[#allocation2 + $0x98] sm:$0xff] %vm2891_vm3, %v2764_v60  ;;  %v2235_v62 = vpop.permute.xlu0 %2234  ;;  %8734 = vmatprep.mubr.msk.bf16.mxu1 %vm2891_vm3, %v3698_v61  ;;  %4071 = vmatprep.subr.bf16.mxu0 %v10526_v56  ;;  %v8779_v61 = vcombine.low %v10618_v17, %v4194_v46 }
  0xdb   : > { %2370 = vst.msk [vmem:[#allocation2 + $0x90] sm:$0xff] %vm2360_vm5, %v2235_v62  ;;  %1737 = vrot.lane.b32.xlu1 %v9619_v49, %s9948_s28  ;;  %v3697_v1 = vld [vmem:[#allocation2 + $0xc0] sm:$0xff]  ;;  %v9738_v62 = vld [vmem:[%s10048_s14 + $0xd8] sm:$0xff]  }
  0xdc   : > { %2909 = vst.msk [vmem:[#allocation2 + $0x90] sm:$0xff] %vm2889_vm6, %v2764_v60  ;;  %1208 = vrot.lane.b32.xlu0 %v9620_v54, %s9946_s22  ;;  %3862 = vmatmul.mubr.bf16.vlgmr.msra.gmra.mrb[16].mxu1 %v3697_v1  ;;  %v8780_v60 = vcombine.high %v10618_v17, %v4194_v46  ;;  %v9651_v1 = vld [vmem:[%s10048_s14 + $0xf8] sm:$0xff]   ;;  %v9683_v46 = vld [vmem:[%s10048_s14 + $0x140] sm:$0xff]  }
  0xdd   : > { %v1185_v43 = vpop.permute.xlu1 %1184  ;;  %4072 = vmatpush1.bf16.msra.mxu0 %v10533_v57  ;;  %4302 = vmatpush1.bf16.msra.mxu1 %v10476_v26  ;;  %801 = vst.msk [vmem:[#allocation2 + $0x1b0] sm:$0xff] %vm773_vm0, %v9738_v62 }
  0xde   : > { %1316 = vst.msk [vmem:[#allocation2 + $0xd0] sm:$0xff] %vm1302_vm2, %v1185_v43  ;;  %v1179_v4 = vpop.permute.xlu0 %1178  ;;  %4073 = vmatprep.subr.bf16.mxu0 %v10546_v63  ;;  %4303 = vmatprep.subr.bf16.mxu1 %v10485_v32 }
  0xdf   : > { %1313 = vst.msk [vmem:[#allocation2 + $0xa0] sm:$0xff] %vm1302_vm2, %v1179_v4  ;;  %2266 = vrot.lane.b32.xlu1 %v9623_v2, %s9945_s21  ;;  %v9652_v2 = vld [vmem:[%s10048_s14 + $0x128] sm:$0xff]   ;;  %v9658_v4 = vld [vmem:[%s10048_s14 + $0x118] sm:$0xff]  }
  0xe0   : > { %1214 = vrot.lane.b32.xlu0 %v9624_v42, %s9946_s22 }
  0xe1   : > { %v1714_v8 = vpop.permute.xlu1 %1713  ;;  %v3464_v9 = vld [vmem:[#allocation2 + $0x98] sm:$0xff]  ;;  %4074 = vmatpush1.bf16.msra.mxu0 %v10560_v47  ;;  %4304 = vmatpush1.bf16.msra.mxu1 %v10498_v38 }
  0xe2   : > { %1845 = vst.msk [vmem:[#allocation2 + $0xd0] sm:$0xff] %vm1831_vm4, %v1714_v8  ;;  %v1708_v55 = vpop.permute.xlu0 %1707  ;;  %8711 = vmatprep.mubr.msk.bf16.mxu0 %vm2891_vm3, %v3464_v9  ;;  %4075 = vmatprep.subr.bf16.mxu0 %v10568_v5 }
  0xe3   : > { %1842 = vst.msk [vmem:[#allocation2 + $0xa0] sm:$0xff] %vm1831_vm4, %v1708_v55  ;;  %1743 = vrot.lane.b32.xlu1 %v9625_v3, %s9948_s28  ;;  %v3463_v0 = vld [vmem:[#allocation2 + $0x90] sm:$0xff]  ;;  %4305 = vmatprep.subr.bf16.mxu1 %v10506_v40  ;;  %v4296_v3 = vsel %vm3113_vm1, %v8779_v61, 0  ;;  %v9781_v61 = vld [vmem:[%s10048_s14 + $0x120] sm:$0xff]  }
  0xe4   : > { %2795 = vrot.lane.b32.xlu0 %v9626_v6, %s9947_s27  ;;  %3636 = vmatmul.mubr.bf16.gmra.mrb[20].mxu0 %v3463_v0  ;;  %v9659_v6 = vld [vmem:[%s10048_s14 + $0x108] sm:$0xff]   ;;  %v9663_v55 = vld [vmem:[%s10048_s14 + $0x110] sm:$0xff]   ;;  %v9664_v0 = vld [vmem:[%s10048_s14 + $0x100] sm:$0xff]   ;;  %810 = vst.msk [vmem:[#allocation2 + $0x240] sm:$0xff] %vm773_vm0, %v9781_v61 }
  0xe5   : > { %v2766_v13 = vpop.permute.xlu1 %2765  ;;  %4076 = vmatpush1.bf16.msra.mxu0 %v10577_v7  ;;  %4306 = vmatpush1.bf16.msra.mxu1 %v10516_v45  ;;  %v9792_v61 = vld [vmem:[%s10048_s14 + $0x138] sm:$0xff]  }
  0xe6   : > { %2912 = vst.msk [vmem:[#allocation2 + $0xa8] sm:$0xff] %vm2891_vm3, %v2766_v13  ;;  %v2237_v16 = vpop.permute.xlu0 %2236  ;;  %4077 = vmatprep.subr.bf16.mxu0 %v10590_v10  ;;  %4307 = vmatprep.subr.bf16.mxu1 %v10526_v56 }
  0xe7   : > { %2371 = vst.msk [vmem:[#allocation2 + $0xa0] sm:$0xff] %vm2360_vm5, %v2237_v16  ;;  %2801 = vrot.lane.b32.xlu1 %v9627_v51, %s9947_s27  ;;  %v9668_v16 = vld [vmem:[%s10048_s14 + $0x130] sm:$0xff]  }
  0xe8   : > { %2911 = vst.msk [vmem:[#allocation2 + $0xa0] sm:$0xff] %vm2889_vm6, %v2766_v13  ;;  %2272 = vrot.lane.b32.xlu0 %v9628_v11, %s9945_s21  ;;  %v9751_v11 = vld [vmem:[%s10048_s14 + $0xf0] sm:$0xff]  }
  0xe9   : > { %v2772_v20 = vpop.permute.xlu1 %2771  ;;  %4078 = vmatpush1.bf16.msra.mxu0 %v10601_v12  ;;  %4308 = vmatpush1.bf16.msra.mxu1 %v10533_v57  ;;  %804 = vst.msk [vmem:[#allocation2 + $0x1e0] sm:$0xff] %vm773_vm0, %v9751_v11  ;;  %813 = vst.msk [vmem:[#allocation2 + $0x270] sm:$0xff] %vm773_vm0, %v9792_v61  ;;  %v11022_v61 = vld [vmem:[%s12678_s1 + $0x64] ss:$8 sps:$4 sm:$0xff]  }
  0xea   : > { %2918 = vst.msk [vmem:[#allocation2 + $0xd8] sm:$0xff] %vm2891_vm3, %v2772_v20  ;;  %v2243_v22 = vpop.permute.xlu0 %2242  ;;  %4079 = vmatprep.subr.bf16.mxu0 %v10606_v52  ;;  %4309 = vmatprep.subr.bf16.mxu1 %v10546_v63 }
  0xeb   : > { %2374 = vst.msk [vmem:[#allocation2 + $0xd0] sm:$0xff] %vm2360_vm5, %v2243_v22  ;;  %1739 = vrot.lane.b32.xlu1 %v9629_v14, %s9948_s28  ;;  %v9673_v22 = vld [vmem:[%s10048_s14 + $0x110] sm:$0xff]  }
  0xec   : > { %2917 = vst.msk [vmem:[#allocation2 + $0xd0] sm:$0xff] %vm2889_vm6, %v2772_v20  ;;  %1210 = vrot.lane.b32.xlu0 %v9630_v19, %s9946_s22 }
  0xed   : > { %v1187_v29 = vpop.permute.xlu1 %1186  ;;  %v3466_v30 = vld [vmem:[#allocation2 + $0xa8] sm:$0xff]  ;;  %4080 = vmatpush1.bf16.msra.mxu0 %v10633_v21  ;;  %4310 = vmatpush1.bf16.msra.mxu1 %v10560_v47 }
  0xee   : > { %1317 = vst.msk [vmem:[#allocation2 + $0xe0] sm:$0xff] %vm1302_vm2, %v1187_v29  ;;  %v1181_v31 = vpop.permute.xlu0 %1180  ;;  %8712 = vmatprep.mubr.msk.bf16.mxu0 %vm2891_vm3, %v3466_v30  ;;  %8757 = vmatprep.subr.msk.bf16.mxu0 %vm3113_vm1, %v8756_v24  ;;  %v9678_v29 = vld [vmem:[%s10048_s14 + $0x120] sm:$0xff]   ;;  %v9679_v30 = vld [vmem:[%s10048_s14 + $0x118] sm:$0xff]  }
  0xef   : > { %1314 = vst.msk [vmem:[#allocation2 + $0xb0] sm:$0xff] %vm1302_vm2, %v1181_v31  ;;  %2797 = vrot.lane.b32.xlu1 %v9636_v23, %s9947_s27  ;;  %v3465_v34 = vld [vmem:[#allocation2 + $0xa0] sm:$0xff]  ;;  %4311 = vmatprep.subr.bf16.mxu1 %v10568_v5  ;;  %v9674_v23 = vld [vmem:[%s10048_s14 + $0x108] sm:$0xff]  }
  0xf0   : > { %2268 = vrot.lane.b32.xlu0 %v9637_v27, %s9945_s21  ;;  %3646 = vmatmul.mubr.bf16.gmra.mrb[24].mxu0 %v3465_v34 }
  0xf1   : > { %v1716_v37 = vpop.permute.xlu1 %1715  ;;  %v3700_v39 = vld [vmem:[#allocation2 + $0xd8] sm:$0xff]  ;;  %4082 = vmatpush1.bf16.msra.mxu0 %v4060_v33  ;;  %4312 = vmatpush1.bf16.msra.mxu1 %v10577_v7 }
  0xf2   : > { %1846 = vst.msk [vmem:[#allocation2 + $0xe0] sm:$0xff] %vm1831_vm4, %v1716_v37  ;;  %v1710_v44 = vpop.permute.xlu0 %1709  ;;  %8735 = vmatprep.mubr.msk.bf16.mxu1 %vm2891_vm3, %v3700_v39  ;;  %4313 = vmatprep.subr.bf16.mxu1 %v10590_v10  ;;  %v9682_v37 = vld [vmem:[%s10048_s14 + $0x128] sm:$0xff]  }
  0xf3   : > { %1843 = vst.msk [vmem:[#allocation2 + $0xb0] sm:$0xff] %vm1831_vm4, %v1710_v44  ;;  %1745 = vrot.lane.b32.xlu1 %v9641_v35, %s9948_s28  ;;  %v3699_v49 = vld [vmem:[#allocation2 + $0xd0] sm:$0xff]  ;;  %4537 = vmatprep.subr.bf16.mxu0 %v10404_v59 }
  0xf4   : > { %1216 = vrot.lane.b32.xlu0 %v9642_v36, %s9946_s22  ;;  %3872 = vmatmul.mubr.bf16.gmra.mrb[20].mxu1 %v3699_v49  ;;  %v9681_v35 = vld [vmem:[%s10048_s14 + $0x130] sm:$0xff]  }
  0xf5   : > { %v2768_v54 = vpop.permute.xlu1 %2767  ;;  %4314 = vmatpush1.bf16.msra.mxu1 %v10601_v12 }
  0xf6   : > { %2914 = vst.msk [vmem:[#allocation2 + $0xb8] sm:$0xff] %vm2891_vm3, %v2768_v54  ;;  %v2239_v58 = vpop.permute.xlu0 %2238  ;;  %4315 = vmatprep.subr.bf16.mxu1 %v10606_v52 }
  0xf7   : > { %2372 = vst.msk [vmem:[#allocation2 + $0xb0] sm:$0xff] %vm2360_vm5, %v2239_v58  ;;  %2274 = vrot.lane.b32.xlu1 %v9646_v41, %s9945_s21  ;;  %v9685_v58 = vld [vmem:[%s10048_s14 + $0x140] sm:$0xff]  }
  0xf8   : > { %2913 = vst.msk [vmem:[#allocation2 + $0xb0] sm:$0xff] %vm2889_vm6, %v2768_v54  ;;  %1212 = vrot.lane.b32.xlu0 %v9647_v53, %s9946_s22 }
  0xf9   : > { %v2774_v42 = vpop.permute.xlu1 %2773  ;;  %4316 = vmatpush1.bf16.msra.mxu1 %v10633_v21 }
  0xfa   : > { %2920 = vst.msk [vmem:[#allocation2 + $0xe8] sm:$0xff] %vm2891_vm3, %v2774_v42  ;;  %v2245_v43 = vpop.permute.xlu0 %2244  ;;  %8781 = vmatprep.subr.msk.bf16.mxu1 %vm3113_vm1, %v8780_v60  ;;  %v9686_v60 = vld [vmem:[%s10048_s14 + $0x130] sm:$0xff]  }
  0xfb   : > { %2375 = vst.msk [vmem:[#allocation2 + $0xe0] sm:$0xff] %vm2360_vm5, %v2245_v43  ;;  %1741 = vrot.lane.b32.xlu1 %v9651_v1, %s9948_s28  ;;  %v9786_v43 = vld [vmem:[%s10048_s14 + $0x108] sm:$0xff]  }
  0xfc   : > { %2919 = vst.msk [vmem:[#allocation2 + $0xe0] sm:$0xff] %vm2889_vm6, %v2774_v42  ;;  %2803 = vrot.lane.b32.xlu0 %v9652_v2, %s9947_s27  ;;  %v9688_v2 = vld [vmem:[%s10048_s14 + $0x160] sm:$0xff]   ;;  %v9689_v42 = vld [vmem:[%s10048_s14 + $0x150] sm:$0xff]  }
  0xfd   : > { %v1189_v48 = vpop.permute.xlu1 %1188  ;;  %v3468_v8 = vld [vmem:[#allocation2 + $0xb8] sm:$0xff]  ;;  %4318 = vmatpush1.bf16.msra.mxu1 %v4296_v3  ;;  %807 = vst.msk [vmem:[#allocation2 + $0x210] sm:$0xff] %vm773_vm0, %v9786_v43 }
  0xfe   : > { %1318 = vst.msk [vmem:[#allocation2 + $0xf0] sm:$0xff] %vm1302_vm2, %v1189_v48  ;;  %v1191_v9 = vpop.permute.xlu0 %1190  ;;  %8713 = vmatprep.mubr.msk.bf16.mxu0 %vm2891_vm3, %v3468_v8  ;;  %4773 = vmatprep.subr.bf16.mxu1 %v10404_v59 }
  0xff   : > { %1319 = vst.msk [vmem:[#allocation2 + $0x100] sm:$0xff] %vm1302_vm2, %v1191_v9  ;;  %2799 = vrot.lane.b32.xlu1 %v9658_v4, %s9947_s27  ;;  %v3467_v51 = vld [vmem:[#allocation2 + $0xb0] sm:$0xff]  ;;  %v9691_v4 = vld [vmem:[%s10048_s14 + $0x128] sm:$0xff]  }
 0x100   : > { %2270 = vrot.lane.b32.xlu0 %v9659_v6, %s9945_s21  ;;  %3656 = vmatmul.mubr.bf16.gmra.mrb[28].mxu0 %v3467_v51  ;;  %v9787_v6 = vld [vmem:[%s10048_s14 + $0x128] sm:$0xff]   ;;  %v9692_v51 = vld [vmem:[%s10048_s14 + $0x118] sm:$0xff]  }
 0x101   : > { %v1718_v13 = vpop.permute.xlu1 %1717  ;;  %v3702_v14 = vld [vmem:[#allocation2 + $0xe8] sm:$0xff]  ;;  %811 = vst.msk [vmem:[#allocation2 + $0x250] sm:$0xff] %vm773_vm0, %v9787_v6 }
 0x102   : > { %1847 = vst.msk [vmem:[#allocation2 + $0xf0] sm:$0xff] %vm1831_vm4, %v1718_v13  ;;  %v1720_v15 = vpop.permute.xlu0 %1719  ;;  %8736 = vmatprep.mubr.msk.bf16.mxu1 %vm2891_vm3, %v3702_v14  ;;  %v9694_v14 = vld [vmem:[%s10048_s14 + $0x138] sm:$0xff]  }
 0x103   : > { %1848 = vst.msk [vmem:[#allocation2 + $0x100] sm:$0xff] %vm1831_vm4, %v1720_v15  ;;  %1747 = vrot.lane.b32.xlu1 %v9663_v55, %s9948_s28  ;;  %v3701_v59 = vld [vmem:[#allocation2 + $0xe0] sm:$0xff]  ;;  %v9788_v55 = vld [vmem:[%s10048_s14 + $0x110] sm:$0xff]  }
 0x104   : > { %1218 = vrot.lane.b32.xlu0 %v9664_v0, %s9946_s22  ;;  %3882 = vmatmul.mubr.bf16.gmra.mrb[24].mxu1 %v3701_v59  ;;  %808 = vst.msk [vmem:[#allocation2 + $0x220] sm:$0xff] %vm773_vm0, %v9788_v55  ;;  %v4430_v59 = vld [vmem:[%s12678_s1 + $0x88] sm:$0x33] }
 0x105   : > { %v2778_v19 = vpop.permute.xlu1 %2777 }
 0x106   : > { %2924 = vst.msk [vmem:[#allocation2 + $0x108] sm:$0xff] %vm2891_vm3, %v2778_v19  ;;  %v2249_v20 = vpop.permute.xlu0 %2248 }
 0x107   : > { %2377 = vst.msk [vmem:[#allocation2 + $0x100] sm:$0xff] %vm2360_vm5, %v2249_v20  ;;  %2805 = vrot.lane.b32.xlu1 %v9668_v16, %s9947_s27  ;;  %v9699_v20 = vld [vmem:[%s10048_s14 + $0x130] sm:$0xff]  }
 0x108   : > { %2923 = vst.msk [vmem:[#allocation2 + $0x100] sm:$0xff] %vm2889_vm6, %v2778_v19  ;;  %2276 = vrot.lane.b32.xlu0 %v9669_v18, %s9945_s21  ;;  %v9696_v18 = vld [vmem:[%s10048_s14 + $0x120] sm:$0xff]   ;;  %v9698_v19 = vld [vmem:[%s10048_s14 + $0x148] sm:$0xff]  }
 0x109   : > { %v2776_v24 = vpop.permute.xlu1 %2775 }
 0x10a   : > { %2922 = vst.msk [vmem:[#allocation2 + $0xf8] sm:$0xff] %vm2891_vm3, %v2776_v24  ;;  %v2247_v27 = vpop.permute.xlu0 %2246 }
 0x10b   : > { %2376 = vst.msk [vmem:[#allocation2 + $0xf0] sm:$0xff] %vm2360_vm5, %v2247_v27  ;;  %1222 = vrot.lane.b32.xlu1 %v9673_v22, %s9946_s22  ;;  %v8804_v22 = vcombine.high %v10618_v17, %v4430_v59 }
 0x10c   : > { %2921 = vst.msk [vmem:[#allocation2 + $0xf0] sm:$0xff] %vm2889_vm6, %v2776_v24  ;;  %1220 = vrot.lane.b32.xlu0 %v9674_v23, %s9946_s22  ;;  %v8803_v23 = vcombine.low %v10618_v17, %v4430_v59  ;;  %v9789_v24 = vld [vmem:[%s10048_s14 + $0x130] sm:$0xff]  }
 0x10d   : > { %v1728_v31 = vpop.permute.xlu1 %1727  ;;  %v3934_v33 = vld [vmem:[#allocation2 + $0x108] sm:$0xff]  ;;  %812 = vst.msk [vmem:[#allocation2 + $0x260] sm:$0xff] %vm773_vm0, %v9789_v24 }
 0x10e   : > { %v1199_v34 = vpop.permute.xlu0 %1198  ;;  %8758 = vmatprep.mubr.msk.bf16.mxu0 %vm2891_vm3, %v3934_v33  ;;  %v9702_v33 = vld [vmem:[%s10048_s14 + $0x140] sm:$0xff]  }
 0x10f   : > { %1323 = vst.msk [vmem:[#allocation2 + $0x140] sm:$0xff] %vm1302_vm2, %v1199_v34  ;;  %1751 = vrot.lane.b32.xlu1 %v9678_v29, %s9948_s28  ;;  %v3933_v36 = vld [vmem:[#allocation2 + $0x100] sm:$0xff]  ;;  %v4532_v34 = vsel %vm3113_vm1, %v8803_v23, 0 }
 0x110   : > { %1852 = vst.msk [vmem:[#allocation2 + $0x140] sm:$0xff] %vm1831_vm4, %v1728_v31  ;;  %1749 = vrot.lane.b32.xlu0 %v9679_v30, %s9948_s28  ;;  %4098 = vmatmul.mubr.bf16.vlgmr.msra.gmra.mrb[32].mxu0 %v3933_v36  ;;  %v9703_v36 = vld [vmem:[%s10048_s14 + $0x168] sm:$0xff]  }
 0x111   : > { %v2257_v39 = vpop.permute.xlu1 %2256  ;;  %v3704_v41 = vld [vmem:[#allocation2 + $0xf8] sm:$0xff]  ;;  %4538 = vmatpush1.bf16.msra.mxu0 %v10476_v26  ;;  %v10952_v23 = vld [vmem:[%s12678_s1 + $0x24] ss:$8 sps:$4 sm:$0xff]  }
 0x112   : > { %2381 = vst.msk [vmem:[#allocation2 + $0x140] sm:$0xff] %vm2360_vm5, %v2257_v39  ;;  %v1193_v44 = vpop.permute.xlu0 %1192  ;;  %8737 = vmatprep.mubr.msk.bf16.mxu1 %vm2891_vm3, %v3704_v41  ;;  %4539 = vmatprep.subr.bf16.mxu0 %v10485_v32  ;;  %v9704_v39 = vld [vmem:[%s10048_s14 + $0x150] sm:$0xff]  }
 0x113   : > { %1320 = vst.msk [vmem:[#allocation2 + $0x110] sm:$0xff] %vm1302_vm2, %v1193_v44  ;;  %2280 = vrot.lane.b32.xlu1 %v9681_v35, %s9945_s21  ;;  %v3703_v49 = vld [vmem:[#allocation2 + $0xf0] sm:$0xff] }
 0x114   : > { %2278 = vrot.lane.b32.xlu0 %v9682_v37, %s9945_s21  ;;  %3892 = vmatmul.mubr.bf16.gmra.mrb[28].mxu1 %v3703_v49 }
 0x115   : > { %v1722_v53 = vpop.permute.xlu1 %1721  ;;  %4540 = vmatpush1.bf16.msra.mxu0 %v10498_v38 }
 0x116   : > { %1849 = vst.msk [vmem:[#allocation2 + $0x110] sm:$0xff] %vm1831_vm4, %v1722_v53  ;;  %v2786_v54 = vpop.permute.xlu0 %2785  ;;  %4541 = vmatprep.subr.bf16.mxu0 %v10506_v40  ;;  %v9708_v53 = vld [vmem:[%s10048_s14 + $0x150] sm:$0xff]  }
 0x117   : > { %2931 = vst.msk [vmem:[#allocation2 + $0x140] sm:$0xff] %vm2889_vm6, %v2786_v54  ;;  %2809 = vrot.lane.b32.xlu1 %v9683_v46, %s9947_s27  ;;  %v9705_v46 = vld [vmem:[%s10048_s14 + $0x140] sm:$0xff]  }
 0x118   : > { %2932 = vst.msk [vmem:[#allocation2 + $0x148] sm:$0xff] %vm2891_vm3, %v2786_v54  ;;  %2807 = vrot.lane.b32.xlu0 %v9684_v50, %s9947_s27  ;;  %v9706_v50 = vld [vmem:[%s10048_s14 + $0x128] sm:$0xff]  }
 0x119   : > { %v2780_v62 = vpop.permute.xlu1 %2779  ;;  %4542 = vmatpush1.bf16.msra.mxu0 %v10516_v45 }
 0x11a   : > { %2926 = vst.msk [vmem:[#allocation2 + $0x118] sm:$0xff] %vm2891_vm3, %v2780_v62  ;;  %v2251_v1 = vpop.permute.xlu0 %2250  ;;  %4543 = vmatprep.subr.bf16.mxu0 %v10526_v56 }
 0x11b   : > { %2378 = vst.msk [vmem:[#allocation2 + $0x110] sm:$0xff] %vm2360_vm5, %v2251_v1  ;;  %1759 = vrot.lane.b32.xlu1 %v9685_v58, %s9948_s28  ;;  %v9709_v58 = vld [vmem:[%s10048_s14 + $0x138] sm:$0xff]  }
 0x11c   : > { %2925 = vst.msk [vmem:[#allocation2 + $0x110] sm:$0xff] %vm2889_vm6, %v2780_v62  ;;  %1230 = vrot.lane.b32.xlu0 %v9686_v60, %s9946_s22 }
 0x11d   : > { %v1724_v3 = vpop.permute.xlu1 %1723  ;;  %4544 = vmatpush1.bf16.msra.mxu0 %v10533_v57 }
 0x11e   : > { %v1195_v48 = vpop.permute.xlu0 %1194  ;;  %v4169_v9 = vld [vmem:[#allocation2 + $0x140] sm:$0xff]  ;;  %4545 = vmatprep.subr.bf16.mxu0 %v10546_v63  ;;  %v9693_v63 = vld [vmem:[%s10048_s14 + $0x148] sm:$0xff]  }
 0x11f   : > { %v4170_v8 = vld [vmem:[#allocation2 + $0x148] sm:$0xff]  ;;  %1321 = vst.msk [vmem:[#allocation2 + $0x120] sm:$0xff] %vm1302_vm2, %v1195_v48  ;;  %2817 = vrot.lane.b32.xlu1 %v9688_v2, %s9947_s27  ;;  %v9714_v48 = vld [vmem:[%s10048_s14 + $0x158] sm:$0xff]  }
 0x120   : > { %8782 = vmatprep.mubr.msk.bf16.mxu1 %vm2891_vm3, %v4170_v8  ;;  %1850 = vst.msk [vmem:[#allocation2 + $0x120] sm:$0xff] %vm1831_vm4, %v1724_v3  ;;  %2288 = vrot.lane.b32.xlu0 %v9689_v42, %s9945_s21  ;;  %v9711_v42 = vld [vmem:[%s10048_s14 + $0x160] sm:$0xff]  }
 0x121   : > { %4334 = vmatmul.mubr.bf16.vlgmr.msra.gmra.mrb[32].mxu1 %v4169_v9  ;;  %v2253_v0 = vpop.permute.xlu1 %2252  ;;  %v3936_v11 = vld [vmem:[#allocation2 + $0x118] sm:$0xff]  ;;  %4546 = vmatpush1.bf16.msra.mxu0 %v10560_v47 }
 0x122   : > { %4774 = vmatpush1.bf16.msra.mxu1 %v10476_v26  ;;  %2379 = vst.msk [vmem:[#allocation2 + $0x120] sm:$0xff] %vm2360_vm5, %v2253_v0  ;;  %v1201_v13 = vpop.permute.xlu0 %1200  ;;  %8759 = vmatprep.mubr.msk.bf16.mxu0 %vm2891_vm3, %v3936_v11  ;;  %v9695_v47 = vld [vmem:[%s10048_s14 + $0x138] sm:$0xff]   ;;  %v9716_v0 = vld [vmem:[%s10048_s14 + $0x148] sm:$0xff]  }
 0x123   : > { %4547 = vmatprep.subr.bf16.mxu0 %v10568_v5  ;;  %1324 = vst.msk [vmem:[#allocation2 + $0x150] sm:$0xff] %vm1302_vm2, %v1201_v13  ;;  %1753 = vrot.lane.b32.xlu1 %v9691_v4, %s9948_s28  ;;  %v3935_v15 = vld [vmem:[#allocation2 + $0x110] sm:$0xff] }
 0x124   : > { %4775 = vmatprep.subr.bf16.mxu1 %v10485_v32  ;;  %1224 = vrot.lane.b32.xlu0 %v9692_v51, %s9946_s22  ;;  %v10813_v32 = vld [vmem:[%s12678_s1 + $0x44] ss:$8 sps:$4 sm:$0xff]   ;;  %v9713_v4 = vld [vmem:[%s10048_s14 + $0x170] sm:$0xff]  }
 0x125   : > { %4108 = vmatmul.mubr.bf16.gmra.mrb[36].mxu0 %v3935_v15  ;;  %v1730_v26 = vpop.permute.xlu1 %1729  ;;  %v9715_v51 = vld [vmem:[%s10048_s14 + $0x150] sm:$0xff]   ;;  %v10924_v15 = vld [vmem:[%s12678_s1] ss:$8 sps:$4 sm:$0xff]  }
 0x126   : > { %4548 = vmatpush1.bf16.msra.mxu0 %v10577_v7  ;;  %4776 = vmatpush1.bf16.msra.mxu1 %v10498_v38  ;;  %1853 = vst.msk [vmem:[#allocation2 + $0x150] sm:$0xff] %vm1831_vm4, %v1730_v26  ;;  %v2782_v16 = vpop.permute.xlu0 %2781  ;;  %v9796_v26 = vld [vmem:[%s10048_s14 + $0x160] sm:$0xff]  }
 0x127   : > { %4549 = vmatprep.subr.bf16.mxu0 %v10590_v10  ;;  %4777 = vmatprep.subr.bf16.mxu1 %v10506_v40  ;;  %2927 = vst.msk [vmem:[#allocation2 + $0x120] sm:$0xff] %vm2889_vm6, %v2782_v16 }
 0x128   : > { %2928 = vst.msk [vmem:[#allocation2 + $0x128] sm:$0xff] %vm2891_vm3, %v2782_v16  ;;  %2811 = vrot.lane.b32.xlu1 %v9693_v63, %s9947_s27  ;;  %2282 = vrot.lane.b32.xlu0 %v9694_v14, %s9945_s21  ;;  %v9718_v63 = vld [vmem:[%s10048_s14 + $0x160] sm:$0xff]   ;;  %v9719_v14 = vld [vmem:[%s10048_s14 + $0x158] sm:$0xff]  }
 0x129   : > { %v2788_v38 = vpop.permute.xlu1 %2787  ;;  %v9724_v16 = vld [vmem:[%s10048_s14 + $0x170] sm:$0xff]   ;;  %818 = vst.msk [vmem:[#allocation2 + $0x2c0] sm:$0xff] %vm773_vm0, %v9796_v26 }
 0x12a   : > { %4550 = vmatpush1.bf16.msra.mxu0 %v10601_v12  ;;  %4778 = vmatpush1.bf16.msra.mxu1 %v10516_v45  ;;  %2934 = vst.msk [vmem:[#allocation2 + $0x158] sm:$0xff] %vm2891_vm3, %v2788_v38  ;;  %v2259_v40 = vpop.permute.xlu0 %2258  ;;  %v10829_v45 = vld [vmem:[%s12678_s1 + $0x40] ss:$8 sps:$4 sm:$0xff]  }
 0x12b   : > { %4551 = vmatprep.subr.bf16.mxu0 %v10606_v52  ;;  %4779 = vmatprep.subr.bf16.mxu1 %v10526_v56  ;;  %2382 = vst.msk [vmem:[#allocation2 + $0x150] sm:$0xff] %vm2360_vm5, %v2259_v40  ;;  %v9701_v56 = vld [vmem:[%s10048_s14 + $0x158] sm:$0xff]  }
 0x12c   : > { %1232 = vrot.lane.b32.xlu1 %v9695_v47, %s9946_s22  ;;  %2933 = vst.msk [vmem:[#allocation2 + $0x150] sm:$0xff] %vm2889_vm6, %v2788_v38  ;;  %1226 = vrot.lane.b32.xlu0 %v9696_v18, %s9946_s22  ;;  %v9797_v47 = vld [vmem:[%s10048_s14 + $0x148] sm:$0xff]   ;;  %v10934_v18 = vld [vmem:[%s12678_s1 + $0x14] ss:$8 sps:$4 sm:$0xff]  }
 0x12d   : > { %v1726_v27 = vpop.permute.xlu1 %1725  ;;  %815 = vst.msk [vmem:[#allocation2 + $0x290] sm:$0xff] %vm773_vm0, %v9797_v47 }
 0x12e   : > { %4552 = vmatpush1.bf16.msra.mxu0 %v10633_v21  ;;  %4780 = vmatpush1.bf16.msra.mxu1 %v10533_v57  ;;  %v1197_v29 = vpop.permute.xlu0 %1196  ;;  %v3937_v31 = vld [vmem:[#allocation2 + $0x120] sm:$0xff] }
 0x12f   : > { %v3938_v30 = vld [vmem:[#allocation2 + $0x128] sm:$0xff]  ;;  %8805 = vmatprep.subr.msk.bf16.mxu0 %vm3113_vm1, %v8804_v22  ;;  %4781 = vmatprep.subr.bf16.mxu1 %v10813_v32  ;;  %1322 = vst.msk [vmem:[#allocation2 + $0x130] sm:$0xff] %vm1302_vm2, %v1197_v29  ;;  %v10945_v22 = vld [vmem:[%s12678_s1 + $0x10] ss:$8 sps:$4 sm:$0xff]  }
 0x130   : > { %8760 = vmatprep.mubr.msk.bf16.mxu0 %vm2891_vm3, %v3938_v30  ;;  %1761 = vrot.lane.b32.xlu1 %v9698_v19, %s9948_s28  ;;  %1851 = vst.msk [vmem:[#allocation2 + $0x130] sm:$0xff] %vm1831_vm4, %v1726_v27  ;;  %v9726_v27 = vld [vmem:[%s10048_s14 + $0x180] sm:$0xff]   ;;  %v9727_v29 = vld [vmem:[%s10048_s14 + $0x178] sm:$0xff]  }
 0x131   : > { %1755 = vrot.lane.b32.xlu0 %v9699_v20, %s9948_s28  ;;  %4118 = vmatmul.mubr.bf16.gmra.mrb[40].mxu0 %v3937_v31  ;;  %v2255_v57 = vpop.permute.xlu1 %2254  ;;  %v4172_v35 = vld [vmem:[#allocation2 + $0x158] sm:$0xff]  ;;  %v9725_v20 = vld [vmem:[%s10048_s14 + $0x168] sm:$0xff]  }
 0x132   : > { %4554 = vmatpush1.bf16.msra.mxu0 %v4532_v34  ;;  %4782 = vmatpush1.bf16.msra.mxu1 %v10829_v45  ;;  %2380 = vst.msk [vmem:[#allocation2 + $0x130] sm:$0xff] %vm2360_vm5, %v2255_v57  ;;  %v1203_v37 = vpop.permute.xlu0 %1202  ;;  %v10965_v31 = vld [vmem:[%s12678_s1 + $0x20] ss:$8 sps:$4 sm:$0xff]   ;;  %v9728_v57 = vld [vmem:[%s10048_s14 + $0x170] sm:$0xff]  }
 0x133   : > { %8783 = vmatprep.mubr.msk.bf16.mxu1 %vm2891_vm3, %v4172_v35  ;;  %4783 = vmatprep.subr.bf16.mxu1 %v10568_v5  ;;  %1325 = vst.msk [vmem:[#allocation2 + $0x160] sm:$0xff] %vm1302_vm2, %v1203_v37  ;;  %v4171_v41 = vld [vmem:[#allocation2 + $0x150] sm:$0xff]  ;;  %v4666_v5 = vld [vmem:[%s12678_s1 + $0x88] sm:$0x33] }
 0x134   : > { %2290 = vrot.lane.b32.xlu1 %v9701_v56, %s9945_s21  ;;  %5009 = vmatprep.subr.bf16.mxu0 %v10841_v28  ;;  %v8827_v60 = vcombine.low %v10618_v17, %v4666_v5  ;;  %v10985_v37 = vld [vmem:[%s12678_s1 + $0x30] ss:$8 sps:$4 sm:$0xff]  }
 0x135   : > { %2284 = vrot.lane.b32.xlu0 %v9702_v33, %s9945_s21  ;;  %4344 = vmatmul.mubr.bf16.gmra.mrb[36].mxu1 %v4171_v41  ;;  %v1732_v44 = vpop.permute.xlu1 %1731  ;;  %v10971_v33 = vld [vmem:[%s12678_s1 + $0x34] ss:$8 sps:$4 sm:$0xff]   ;;  %v9731_v41 = vld [vmem:[%s10048_s14 + $0x180] sm:$0xff]  }
 0x136   : > { %4784 = vmatpush1.bf16.msra.mxu1 %v10577_v7  ;;  %1854 = vst.msk [vmem:[#allocation2 + $0x160] sm:$0xff] %vm1831_vm4, %v1732_v44  ;;  %v2784_v49 = vpop.permute.xlu0 %2783 }
 0x137   : > { %4785 = vmatprep.subr.bf16.mxu1 %v10590_v10  ;;  %2929 = vst.msk [vmem:[#allocation2 + $0x130] sm:$0xff] %vm2889_vm6, %v2784_v49  ;;  %v8828_v10 = vcombine.high %v10618_v17, %v4666_v5  ;;  %v4768_v17 = vsel %vm3113_vm1, %v8827_v60, 0  ;;  %v9798_v5 = vld [vmem:[%s10048_s14 + $0x168] sm:$0xff]   ;;  %v9734_v60 = vld [vmem:[%s10048_s14 + $0x178] sm:$0xff]  }
 0x138   : > { %2930 = vst.msk [vmem:[#allocation2 + $0x138] sm:$0xff] %vm2891_vm3, %v2784_v49  ;;  %2819 = vrot.lane.b32.xlu1 %v9703_v36, %s9947_s27  ;;  %v9729_v36 = vld [vmem:[%s10048_s14 + $0x158] sm:$0xff]   ;;  %v9799_v49 = vld [vmem:[%s10048_s14 + $0x150] sm:$0xff]  }
 0x139   : > { %2813 = vrot.lane.b32.xlu0 %v9704_v39, %s9947_s27  ;;  %v2790_v7 = vpop.permute.xlu1 %2789  ;;  %819 = vst.msk [vmem:[#allocation2 + $0x2d0] sm:$0xff] %vm773_vm0, %v9798_v5  ;;  %816 = vst.msk [vmem:[#allocation2 + $0x2a0] sm:$0xff] %vm773_vm0, %v9799_v49  ;;  %v9753_v49 = vld [vmem:[%s10048_s14 + $0x190] sm:$0xff]  }
 0x13a   : > { %4786 = vmatpush1.bf16.msra.mxu1 %v10601_v12  ;;  %2936 = vst.msk [vmem:[#allocation2 + $0x168] sm:$0xff] %vm2891_vm3, %v2790_v7  ;;  %v2261_v54 = vpop.permute.xlu0 %2260  ;;  %v9791_v12 = vld [vmem:[%s10048_s14 + $0x140] sm:$0xff]  }
 0x13b   : > { %4787 = vmatprep.subr.bf16.mxu1 %v10606_v52  ;;  %2383 = vst.msk [vmem:[#allocation2 + $0x160] sm:$0xff] %vm2360_vm5, %v2261_v54 }
 0x13c   : > { %1234 = vrot.lane.b32.xlu1 %v9705_v46, %s9946_s22  ;;  %2935 = vst.msk [vmem:[#allocation2 + $0x160] sm:$0xff] %vm2889_vm6, %v2790_v7  ;;  %v9732_v46 = vld [vmem:[%s10048_s14 + $0x168] sm:$0xff]   ;;  %v9733_v7 = vld [vmem:[%s10048_s14 + $0x190] sm:$0xff]  }
 0x13d   : > { %1228 = vrot.lane.b32.xlu0 %v9706_v50, %s9946_s22  ;;  %v1736_v62 = vpop.permute.xlu1 %1735  ;;  %814 = vst.msk [vmem:[#allocation2 + $0x280] sm:$0xff] %vm773_vm0, %v9791_v12  ;;  %v11015_v12 = vld [vmem:[%s12678_s1 + $0x50] ss:$8 sps:$4 sm:$0xff]  }
 0x13e   : > { %4788 = vmatpush1.bf16.msra.mxu1 %v10633_v21  ;;  %v1207_v1 = vpop.permute.xlu0 %1206  ;;  %v3939_v2 = vld [vmem:[#allocation2 + $0x130] sm:$0xff]  ;;  %v9712_v21 = vld [vmem:[%s10048_s14 + $0x148] sm:$0xff]  }
 0x13f   : > { %v3940_v52 = vld [vmem:[#allocation2 + $0x138] sm:$0xff]  ;;  %8829 = vmatprep.subr.msk.bf16.mxu1 %vm3113_vm1, %v8828_v10  ;;  %1327 = vst.msk [vmem:[#allocation2 + $0x180] sm:$0xff] %vm1302_vm2, %v1207_v1 }
 0x140   : > { %8761 = vmatprep.mubr.msk.bf16.mxu0 %vm2891_vm3, %v3940_v52  ;;  %1763 = vrot.lane.b32.xlu1 %v9708_v53, %s9948_s28  ;;  %1856 = vst.msk [vmem:[#allocation2 + $0x180] sm:$0xff] %vm1831_vm4, %v1736_v62  ;;  %v11003_v53 = vld [vmem:[%s12678_s1 + $0x54] ss:$8 sps:$4 sm:$0xff]   ;;  %v9736_v52 = vld [vmem:[%s10048_s14 + $0x1a0] sm:$0xff]  }
 0x141   : > { %1757 = vrot.lane.b32.xlu0 %v9709_v58, %s9948_s28  ;;  %4128 = vmatmul.mubr.bf16.gmra.mrb[44].mxu0 %v3939_v2  ;;  %v2265_v43 = vpop.permute.xlu1 %2264  ;;  %v4174_v3 = vld [vmem:[#allocation2 + $0x168] sm:$0xff] }
 0x142   : > { %4790 = vmatpush1.bf16.msra.mxu1 %v4768_v17  ;;  %2385 = vst.msk [vmem:[#allocation2 + $0x180] sm:$0xff] %vm2360_vm5, %v2265_v43  ;;  %v1205_v6 = vpop.permute.xlu0 %1204  ;;  %8784 = vmatprep.mubr.msk.bf16.mxu1 %vm2891_vm3, %v4174_v3  ;;  %v11040_v43 = vld [vmem:[%s12678_s1 + $0x80] sm:$0xff]  ;;  %v4902_v3 = vld [vmem:[%s12678_s1 + $0x88] sm:$0x33] }
 0x143   : > { %5245 = vmatprep.subr.bf16.mxu1 %v10841_v28  ;;  %1326 = vst.msk [vmem:[#allocation2 + $0x170] sm:$0xff] %vm1302_vm2, %v1205_v6  ;;  %v4173_v8 = vld [vmem:[#allocation2 + $0x160] sm:$0xff]  ;;  %v9739_v6 = vld [vmem:[%s10048_s14 + $0x178] sm:$0xff]  }
 0x144   : > { %2292 = vrot.lane.b32.xlu1 %v9711_v42, %s9945_s21  ;;  %4354 = vmatmul.mubr.bf16.gmra.mrb[40].mxu1 %v4173_v8  ;;  %v9737_v42 = vld [vmem:[%s10048_s14 + $0x188] sm:$0xff]  }
 0x145   : > { %2286 = vrot.lane.b32.xlu0 %v9712_v21, %s9945_s21  ;;  %v1734_v9 = vpop.permute.xlu1 %1733  ;;  %v11035_v21 = vld [vmem:[%s12678_s1 + $0x60] ss:$8 sps:$4 sm:$0xff]  }
 0x146   : > { %1855 = vst.msk [vmem:[#allocation2 + $0x170] sm:$0xff] %vm1831_vm4, %v1734_v9  ;;  %v2794_v55 = vpop.permute.xlu0 %2793  ;;  %v11062_v9 = vld [vmem:[%s12678_s1 + $0x70] ss:$8 sps:$4 sm:$0xff]  }
 0x147   : > { %2939 = vst.msk [vmem:[#allocation2 + $0x180] sm:$0xff] %vm2889_vm6, %v2794_v55 }
 0x148   : > { %2940 = vst.msk [vmem:[#allocation2 + $0x188] sm:$0xff] %vm2891_vm3, %v2794_v55  ;;  %2821 = vrot.lane.b32.xlu1 %v9713_v4, %s9947_s27  ;;  %v9740_v55 = vld [vmem:[%s10048_s14 + $0x160] sm:$0xff]  }
 0x149   : > { %2815 = vrot.lane.b32.xlu0 %v9714_v48, %s9947_s27  ;;  %v2792_v11 = vpop.permute.xlu1 %2791  ;;  %v11053_v48 = vld [vmem:[%s12678_s1 + $0x74] ss:$8 sps:$4 sm:$0xff]  }
 0x14a   : > { %2938 = vst.msk [vmem:[#allocation2 + $0x178] sm:$0xff] %vm2891_vm3, %v2792_v11  ;;  %v2263_v13 = vpop.permute.xlu0 %2262 }
 0x14b   : > { %2384 = vst.msk [vmem:[#allocation2 + $0x170] sm:$0xff] %vm2360_vm5, %v2263_v13 }
 0x14c   : > { %1238 = vrot.lane.b32.xlu1 %v9715_v51, %s9946_s22  ;;  %2937 = vst.msk [vmem:[#allocation2 + $0x170] sm:$0xff] %vm2889_vm6, %v2792_v11 }
 0x14d   : > { %1236 = vrot.lane.b32.xlu0 %v9716_v0, %s9946_s22  ;;  %v1738_v59 = vpop.permute.xlu1 %1737  ;;  %v8851_v0 = vcombine.low %v11040_v43, %v4902_v3 }
 0x14e   : > { %v1209_v38 = vpop.permute.xlu0 %1208  ;;  %v4405_v40 = vld [vmem:[#allocation2 + $0x180] sm:$0xff] }
 0x14f   : > { %v4406_v19 = vld [vmem:[#allocation2 + $0x188] sm:$0xff]  ;;  %1328 = vst.msk [vmem:[#allocation2 + $0x190] sm:$0xff] %vm1302_vm2, %v1209_v38  ;;  %v8852_v38 = vcombine.high %v11040_v43, %v4902_v3 }
 0x150   : > { %8806 = vmatprep.mubr.msk.bf16.mxu0 %vm2891_vm3, %v4406_v19  ;;  %1767 = vrot.lane.b32.xlu1 %v9718_v63, %s9948_s28  ;;  %1857 = vst.msk [vmem:[#allocation2 + $0x190] sm:$0xff] %vm1831_vm4, %v1738_v59 }
 0x151   : > { %1765 = vrot.lane.b32.xlu0 %v9719_v14, %s9948_s28  ;;  %4570 = vmatmul.mubr.bf16.vlgmr.msra.gmra.mrb[48].mxu0 %v4405_v40  ;;  %v2267_v24 = vpop.permute.xlu1 %2266  ;;  %v4176_v25 = vld [vmem:[#allocation2 + $0x178] sm:$0xff]  ;;  %v9741_v14 = vld [vmem:[%s10048_s14 + $0x188] sm:$0xff]  }
 0x152   : > { %5010 = vmatpush1.bf16.msra.mxu0 %v10924_v15  ;;  %2386 = vst.msk [vmem:[#allocation2 + $0x190] sm:$0xff] %vm2360_vm5, %v2267_v24  ;;  %v1215_v56 = vpop.permute.xlu0 %1214  ;;  %8785 = vmatprep.mubr.msk.bf16.mxu1 %vm2891_vm3, %v4176_v25  ;;  %v5004_v24 = vsel %vm3113_vm1, %v8851_v0, 0  ;;  %v9800_v25 = vld [vmem:[%s10048_s14 + $0x170] sm:$0xff]   ;;  %v9802_v0 = vld [vmem:[%s10048_s14 + $0x178] sm:$0xff]  }
 0x153   : > { %5011 = vmatprep.subr.bf16.mxu0 %v10934_v18  ;;  %1331 = vst.msk [vmem:[#allocation2 + $0x1c0] sm:$0xff] %vm1302_vm2, %v1215_v56  ;;  %v4175_v30 = vld [vmem:[#allocation2 + $0x170] sm:$0xff] }
 0x154   : > { %2296 = vrot.lane.b32.xlu1 %v9724_v16, %s9945_s21  ;;  %4364 = vmatmul.mubr.bf16.gmra.mrb[44].mxu1 %v4175_v30  ;;  %v9742_v16 = vld [vmem:[%s10048_s14 + $0x170] sm:$0xff]   ;;  %820 = vst.msk [vmem:[#allocation2 + $0x2e0] sm:$0xff] %vm773_vm0, %v9800_v25  ;;  %821 = vst.msk [vmem:[#allocation2 + $0x2f0] sm:$0xff] %vm773_vm0, %v9802_v0 }
 0x155   : > { %2294 = vrot.lane.b32.xlu0 %v9725_v20, %s9945_s21  ;;  %v1744_v34 = vpop.permute.xlu1 %1743  ;;  %v9771_v25 = vld [vmem:[%s10048_s14 + $0x1b0] sm:$0xff]  }
 0x156   : > { %5012 = vmatpush1.bf16.msra.mxu0 %v10945_v22  ;;  %1860 = vst.msk [vmem:[#allocation2 + $0x1c0] sm:$0xff] %vm1831_vm4, %v1744_v34  ;;  %v2796_v35 = vpop.permute.xlu0 %2795  ;;  %v9746_v34 = vld [vmem:[%s10048_s14 + $0x198] sm:$0xff]  }
 0x157   : > { %5013 = vmatprep.subr.bf16.mxu0 %v10952_v23  ;;  %2941 = vst.msk [vmem:[#allocation2 + $0x190] sm:$0xff] %vm2889_vm6, %v2796_v35 }
 0x158   : > { %2942 = vst.msk [vmem:[#allocation2 + $0x198] sm:$0xff] %vm2891_vm3, %v2796_v35  ;;  %2825 = vrot.lane.b32.xlu1 %v9726_v27, %s9947_s27  ;;  %v9801_v27 = vld [vmem:[%s10048_s14 + $0x158] sm:$0xff]   ;;  %v9747_v35 = vld [vmem:[%s10048_s14 + $0x180] sm:$0xff]  }
 0x159   : > { %2823 = vrot.lane.b32.xlu0 %v9727_v29, %s9947_s27  ;;  %v2802_v39 = vpop.permute.xlu1 %2801  ;;  %817 = vst.msk [vmem:[#allocation2 + $0x2b0] sm:$0xff] %vm773_vm0, %v9801_v27  ;;  %vm6675_vm0 = vcmask 523264  }
 0x15a   : > { %5014 = vmatpush1.bf16.msra.mxu0 %v10965_v31  ;;  %2948 = vst.msk [vmem:[#allocation2 + $0x1c8] sm:$0xff] %vm2891_vm3, %v2802_v39  ;;  %v2273_v44 = vpop.permute.xlu0 %2272 }
 0x15b   : > { %5015 = vmatprep.subr.bf16.mxu0 %v10971_v33  ;;  %2389 = vst.msk [vmem:[#allocation2 + $0x1c0] sm:$0xff] %vm2360_vm5, %v2273_v44  ;;  %v9752_v44 = vld [vmem:[%s10048_s14 + $0x1a8] sm:$0xff]  }
 0x15c   : > { %1246 = vrot.lane.b32.xlu1 %v9728_v57, %s9946_s22  ;;  %2947 = vst.msk [vmem:[#allocation2 + $0x1c0] sm:$0xff] %vm2889_vm6, %v2802_v39 }
 0x15d   : > { %1240 = vrot.lane.b32.xlu0 %v9729_v36, %s9946_s22  ;;  %v1740_v50 = vpop.permute.xlu1 %1739 }
 0x15e   : > { %5016 = vmatpush1.bf16.msra.mxu0 %v10985_v37  ;;  %v1211_v54 = vpop.permute.xlu0 %1210  ;;  %v4407_v10 = vld [vmem:[#allocation2 + $0x190] sm:$0xff] }
 0x15f   : > { %v4408_v58 = vld [vmem:[#allocation2 + $0x198] sm:$0xff]  ;;  %5017 = vmatprep.subr.bf16.mxu0 %v10813_v32  ;;  %1329 = vst.msk [vmem:[#allocation2 + $0x1a0] sm:$0xff] %vm1302_vm2, %v1211_v54 }
 0x160   : > { %8807 = vmatprep.mubr.msk.bf16.mxu0 %vm2891_vm3, %v4408_v58  ;;  %1775 = vrot.lane.b32.xlu1 %v9731_v41, %s9948_s28  ;;  %1858 = vst.msk [vmem:[#allocation2 + $0x1a0] sm:$0xff] %vm1831_vm4, %v1740_v50 }
 0x161   : > { %1769 = vrot.lane.b32.xlu0 %v9732_v46, %s9948_s28  ;;  %4580 = vmatmul.mubr.bf16.gmra.mrb[52].mxu0 %v4407_v10  ;;  %v2798_v62 = vpop.permute.xlu1 %2797  ;;  %v4642_v1 = vld [vmem:[#allocation2 + $0x1c8] sm:$0xff]  ;;  %v9757_v10 = vld [vmem:[%s10048_s14 + $0x180] sm:$0xff]  }
 0x162   : > { %5018 = vmatpush1.bf16.msra.mxu0 %v10829_v45  ;;  %2944 = vst.msk [vmem:[#allocation2 + $0x1a8] sm:$0xff] %vm2891_vm3, %v2798_v62  ;;  %v2269_v2 = vpop.permute.xlu0 %2268  ;;  %8830 = vmatprep.mubr.msk.bf16.mxu1 %vm2891_vm3, %v4642_v1 }
 0x163   : > { %5019 = vmatprep.subr.bf16.mxu0 %v11003_v53  ;;  %2387 = vst.msk [vmem:[#allocation2 + $0x1a0] sm:$0xff] %vm2360_vm5, %v2269_v2  ;;  %v4641_v17 = vld [vmem:[#allocation2 + $0x1c0] sm:$0xff] }
 0x164   : > { %2304 = vrot.lane.b32.xlu1 %v9733_v7, %s9945_s21  ;;  %2943 = vst.msk [vmem:[#allocation2 + $0x1a0] sm:$0xff] %vm2889_vm6, %v2798_v62  ;;  %4806 = vmatmul.mubr.bf16.vlgmr.msra.gmra.mrb[48].mxu1 %v4641_v17  ;;  %v5138_v62 = vld [vmem:[%s12678_s1 + $0x88] sm:$0x33]  ;;  %v9764_v17 = vld [vmem:[%s10048_s14 + $0x190] sm:$0xff]  }
 0x165   : > { %2298 = vrot.lane.b32.xlu0 %v9734_v60, %s9945_s21  ;;  %v1746_v4 = vpop.permute.xlu1 %1745  ;;  %5246 = vmatpush1.bf16.msra.mxu1 %v10924_v15  ;;  %v9758_v60 = vld [vmem:[%s10048_s14 + $0x168] sm:$0xff]  }
 0x166   : > { %5020 = vmatpush1.bf16.msra.mxu0 %v11015_v12  ;;  %v1217_v8 = vpop.permute.xlu0 %1216  ;;  %5247 = vmatprep.subr.bf16.mxu1 %v10934_v18 }
 0x167   : > { %5021 = vmatprep.subr.bf16.mxu0 %v11022_v61  ;;  %1332 = vst.msk [vmem:[#allocation2 + $0x1d0] sm:$0xff] %vm1302_vm2, %v1217_v8 }
 0x168   : > { %2833 = vrot.lane.b32.xlu1 %v9736_v52, %s9947_s27  ;;  %1861 = vst.msk [vmem:[#allocation2 + $0x1d0] sm:$0xff] %vm1831_vm4, %v1746_v4  ;;  %v11066_v51 = vpop.f32.mrb[0].mxu0 }
 0x169   : > { %2827 = vrot.lane.b32.xlu0 %v9737_v42, %s9947_s27  ;;  %v11070_v11 = vpop.f32.mrb[1].mxu0  ;;  %v2275_v63 = vpop.permute.xlu1 %2274  ;;  %v4410_v13 = vld [vmem:[#allocation2 + $0x1a8] sm:$0xff]  ;;  %5248 = vmatpush1.bf16.msra.mxu1 %v10945_v22 }
 0x16a   : > { %5022 = vmatpush1.bf16.msra.mxu0 %v11035_v21  ;;  %v3193_v26 = vmax.f32 %v11066_v51, %v11070_v11  ;;  %2390 = vst.msk [vmem:[#allocation2 + $0x1d0] sm:$0xff] %vm2360_vm5, %v2275_v63  ;;  %v1213_v47 = vpop.permute.xlu0 %1212  ;;  %v11078_v59 = vpop.f32.mrb[2].mxu0  ;;  %8808 = vmatprep.mubr.msk.bf16.mxu0 %vm2891_vm3, %v4410_v13  ;;  %v9766_v13 = vld [vmem:[%s10048_s14 + $0x1a0] sm:$0xff]  }
 0x16b   : > { %5249 = vmatprep.subr.bf16.mxu1 %v10952_v23  ;;  %1330 = vst.msk [vmem:[#allocation2 + $0x1b0] sm:$0xff] %vm1302_vm2, %v1213_v47  ;;  %v11085_v19 = vpop.f32.mrb[3].mxu0  ;;  %v4409_v40 = vld [vmem:[#allocation2 + $0x1a0] sm:$0xff]  ;;  %5023 = vmatprep.subr.bf16.mxu0 %v11053_v48 }
 0x16c   : > { %1248 = vrot.lane.b32.xlu1 %v9739_v6, %s9946_s22  ;;  %v3194_v20 = vmax.f32 %v11078_v59, %v11085_v19  ;;  %4590 = vmatmul.mubr.bf16.gmra.mrb[56].mxu0 %v4409_v40  ;;  %v9765_v6 = vld [vmem:[%s10048_s14 + $0x178] sm:$0xff]   ;;  %v9783_v19 = vld [vmem:[%s10048_s14 + $0x1a8] sm:$0xff]  }
 0x16d   : > { %1242 = vrot.lane.b32.xlu0 %v9740_v55, %s9946_s22  ;;  %v1742_v56 = vpop.permute.xlu1 %1741  ;;  %5250 = vmatpush1.bf16.msra.mxu1 %v10965_v31 }
 0x16e   : > { %5024 = vmatpush1.bf16.msra.mxu0 %v11062_v9  ;;  %1859 = vst.msk [vmem:[#allocation2 + $0x1b0] sm:$0xff] %vm1831_vm4, %v1742_v56  ;;  %v2804_v29 = vpop.permute.xlu0 %2803  ;;  %5251 = vmatprep.subr.bf16.mxu1 %v10971_v33 }
 0x16f   : > { %8853 = vmatprep.subr.msk.bf16.mxu0 %vm3113_vm1, %v8852_v38  ;;  %2949 = vst.msk [vmem:[#allocation2 + $0x1d0] sm:$0xff] %vm2889_vm6, %v2804_v29  ;;  %v11104_v30 = vpop.f32.mrb[0].mxu1  ;;  %v8876_v38 = vcombine.high %v11040_v43, %v5138_v62 }
 0x170   : > { %2950 = vst.msk [vmem:[#allocation2 + $0x1d8] sm:$0xff] %vm2891_vm3, %v2804_v29  ;;  %1777 = vrot.lane.b32.xlu1 %v9741_v14, %s9948_s28  ;;  %v11109_v57 = vpop.f32.mrb[1].mxu1  ;;  %v8875_v14 = vcombine.low %v11040_v43, %v5138_v62 }
 0x171   : > { %1771 = vrot.lane.b32.xlu0 %v9742_v16, %s9948_s28  ;;  %v3430_v36 = vmax.f32 %v11104_v30, %v11109_v57  ;;  %v11114_v39 = vpop.f32.mrb[2].mxu1  ;;  %v2800_v41 = vpop.permute.xlu1 %2799  ;;  %5252 = vmatpush1.bf16.msra.mxu1 %v10985_v37  ;;  %v9767_v16 = vld [vmem:[%s10048_s14 + $0x188] sm:$0xff]  }
 0x172   : > { %5026 = vmatpush1.bf16.msra.mxu0 %v5004_v24  ;;  %2946 = vst.msk [vmem:[#allocation2 + $0x1b8] sm:$0xff] %vm2891_vm3, %v2800_v41  ;;  %v2271_v46 = vpop.permute.xlu0 %2270  ;;  %v11119_v5 = vpop.f32.mrb[3].mxu1  ;;  %5253 = vmatprep.subr.bf16.mxu1 %v10813_v32  ;;  %v5240_v27 = vsel %vm3113_vm1, %v8875_v14, 0  ;;  %v9795_v30 = vld [vmem:[%s12678_s1 + $0x44] ss:$8 sps:$4 sm:$0xff]  }
 0x173   : > { %5481 = vmatprep.subr.bf16.mxu0 %v10841_v28  ;;  %2388 = vst.msk [vmem:[#allocation2 + $0x1b0] sm:$0xff] %vm2360_vm5, %v2271_v46  ;;  %v3431_v50 = vmax.f32 %v11114_v39, %v11119_v5 }
 0x174   : > { %2306 = vrot.lane.b32.xlu1 %v9746_v34, %s9945_s21  ;;  %2945 = vst.msk [vmem:[#allocation2 + $0x1b0] sm:$0xff] %vm2889_vm6, %v2800_v41  ;;  %v11188_v41 = vld [vmem:[%s12679_s2] ss:$0 sm:$0xff] }
 0x175   : > { %2300 = vrot.lane.b32.xlu0 %v9747_v35, %s9945_s21  ;;  %v1748_v7 = vpop.permute.xlu1 %1747  ;;  %5254 = vmatpush1.bf16.msra.mxu1 %v10829_v45 }
 0x176   : > { %v1219_v54 = vpop.permute.xlu0 %1218  ;;  %v4643_v58 = vld [vmem:[#allocation2 + $0x1d0] sm:$0xff]  ;;  %5255 = vmatprep.subr.bf16.mxu1 %v11003_v53 }
 0x177   : > { %v4644_v32 = vld [vmem:[#allocation2 + $0x1d8] sm:$0xff]  ;;  %1333 = vst.msk [vmem:[#allocation2 + $0x1e0] sm:$0xff] %vm1302_vm2, %v1219_v54  ;;  %v11133_v28 = vpop.f32.mrb[4].mxu0 }
 0x178   : > { %8831 = vmatprep.mubr.msk.bf16.mxu1 %vm2891_vm3, %v4644_v32  ;;  %2835 = vrot.lane.b32.xlu1 %v9752_v44, %s9947_s27  ;;  %1862 = vst.msk [vmem:[#allocation2 + $0x1e0] sm:$0xff] %vm1831_vm4, %v1748_v7  ;;  %v11140_v45 = vpop.f32.mrb[5].mxu0  ;;  %v9772_v44 = vld [vmem:[%s10048_s14 + $0x198] sm:$0xff]  }
 0x179   : > { %2829 = vrot.lane.b32.xlu0 %v9753_v49, %s9947_s27  ;;  %4816 = vmatmul.mubr.bf16.gmra.mrb[52].mxu1 %v4643_v58  ;;  %v3195_v1 = vmax.f32 %v11133_v28, %v11140_v45  ;;  %v11148_v52 = vpop.f32.mrb[6].mxu0  ;;  %v2806_v2 = vpop.permute.xlu1 %2805  ;;  %v4412_v42 = vld [vmem:[#allocation2 + $0x1b8] sm:$0xff]  ;;  %v9936_v58 = vld [vmem:[%s12678_s1 + $0x4] ss:$8 sps:$4 sm:$0xff]  }
 0x17a   : > { %5256 = vmatpush1.bf16.msra.mxu1 %v11015_v12  ;;  %2952 = vst.msk [vmem:[#allocation2 + $0x1e8] sm:$0xff] %vm2891_vm3, %v2806_v2  ;;  %v2277_v3 = vpop.permute.xlu0 %2276  ;;  %v11153_v4 = vpop.f32.mrb[7].mxu0  ;;  %8809 = vmatprep.mubr.msk.bf16.mxu0 %vm2891_vm3, %v4412_v42 }
 0x17b   : > { %5257 = vmatprep.subr.bf16.mxu1 %v11022_v61  ;;  %2391 = vst.msk [vmem:[#allocation2 + $0x1e0] sm:$0xff] %vm2360_vm5, %v2277_v3  ;;  %v3196_v8 = vmax.f32 %v11148_v52, %v11153_v4  ;;  %v4411_v55 = vld [vmem:[#allocation2 + $0x1b0] sm:$0xff] }
 0x17c   : > { %1250 = vrot.lane.b32.xlu1 %v9757_v10, %s9946_s22  ;;  %2951 = vst.msk [vmem:[#allocation2 + $0x1e0] sm:$0xff] %vm2889_vm6, %v2806_v2  ;;  %4600 = vmatmul.mubr.bf16.gmra.mrb[60].mxu0 %v4411_v55  ;;  %v9776_v2 = vld [vmem:[%s10048_s14 + $0x198] sm:$0xff]  }
 0x17d   : > { %1244 = vrot.lane.b32.xlu0 %v9758_v60, %s9946_s22  ;;  %v1223_v63 = vpop.permute.xlu1 %1222 }
 0x17e   : > { %5258 = vmatpush1.bf16.msra.mxu1 %v11035_v21  ;;  %1335 = vst.msk [vmem:[#allocation2 + $0x200] sm:$0xff] %vm1302_vm2, %v1223_v63  ;;  %v1221_v47 = vpop.permute.xlu0 %1220  ;;  %v9782_v63 = vld [vmem:[%s10048_s14 + $0x1b8] sm:$0xff]  }
 0x17f   : > { %5259 = vmatprep.subr.bf16.mxu1 %v11053_v48  ;;  %1334 = vst.msk [vmem:[#allocation2 + $0x1f0] sm:$0xff] %vm1302_vm2, %v1221_v47 }
 0x180   : > { %1779 = vrot.lane.b32.xlu1 %v9764_v17, %s9948_s28  ;;  %v9777_v17 = vld [vmem:[%s10048_s14 + $0x188] sm:$0xff]  }
 0x181   : > { %1773 = vrot.lane.b32.xlu0 %v9765_v6, %s9948_s28  ;;  %v1752_v40 = vpop.permute.xlu1 %1751  ;;  %v4646_v24 = vld [vmem:[#allocation2 + $0x1e8] sm:$0xff] }
 0x182   : > { %5260 = vmatpush1.bf16.msra.mxu1 %v11062_v9  ;;  %1864 = vst.msk [vmem:[#allocation2 + $0x200] sm:$0xff] %vm1831_vm4, %v1752_v40  ;;  %v1750_v56 = vpop.permute.xlu0 %1749  ;;  %8832 = vmatprep.mubr.msk.bf16.mxu1 %vm2891_vm3, %v4646_v24 }
 0x183   : > { %8877 = vmatprep.subr.msk.bf16.mxu1 %vm3113_vm1, %v8876_v38  ;;  %1863 = vst.msk [vmem:[#allocation2 + $0x1f0] sm:$0xff] %vm1831_vm4, %v1750_v56  ;;  %v3174_v29 = vpop.f32.mrb[8].mxu0  ;;  %v4645_v34 = vld [vmem:[#allocation2 + $0x1e0] sm:$0xff] }
 0x184   : > { %2308 = vrot.lane.b32.xlu1 %v9766_v13, %s9945_s21  ;;  %v3176_v35 = vpop.f32.mrb[9].mxu0  ;;  %4826 = vmatmul.mubr.bf16.gmra.mrb[56].mxu1 %v4645_v34 }
 0x185   : > { %2302 = vrot.lane.b32.xlu0 %v9767_v16, %s9945_s21  ;;  %v3197_v46 = vmax.f32 %v3174_v29, %v3176_v35  ;;  %v3178_v49 = vpop.f32.mrb[10].mxu0  ;;  %v2281_v7 = vpop.permute.xlu1 %2280 }
 0x186   : > { %5262 = vmatpush1.bf16.msra.mxu1 %v5240_v27  ;;  %2393 = vst.msk [vmem:[#allocation2 + $0x200] sm:$0xff] %vm2360_vm5, %v2281_v7  ;;  %v2279_v54 = vpop.permute.xlu0 %2278  ;;  %v3180_v32 = vpop.f32.mrb[11].mxu0 }
 0x187   : > { %5717 = vmatprep.subr.bf16.mxu1 %v9936_v58  ;;  %v3201_v10 = vmax.f32 %v3193_v26, %v3197_v46  ;;  %2392 = vst.msk [vmem:[#allocation2 + $0x1f0] sm:$0xff] %vm2360_vm5, %v2279_v54  ;;  %v3198_v60 = vmax.f32 %v3178_v49, %v3180_v32  ;;  %v11199_v62 = vpop.f32.mrb[4].mxu1 }
 0x188   : > { %2837 = vrot.lane.b32.xlu1 %v9771_v25, %s9947_s27  ;;  %v11204_v42 = vpop.f32.mrb[5].mxu1 }
 0x189   : > { %2831 = vrot.lane.b32.xlu0 %v9772_v44, %s9947_s27  ;;  %v3212_v3 = vadd.f32 %v11188_v41, %v3201_v10  ;;  %v3202_v51 = vmax.f32 %v3194_v20, %v3198_v60  ;;  %v3432_v11 = vmax.f32 %v11199_v62, %v11204_v42  ;;  %v11213_v26 = vpop.f32.mrb[6].mxu1  ;;  %v2810_v6 = vpop.permute.xlu1 %2809 }
 0x18a   : > { %2955 = vst.msk [vmem:[#allocation2 + $0x200] sm:$0xff] %vm2889_vm6, %v2810_v6  ;;  %v2808_v55 = vpop.permute.xlu0 %2807  ;;  %v11217_v0 = vpop.f32.mrb[7].mxu1 }
 0x18b   : > { %2956 = vst.msk [vmem:[#allocation2 + $0x208] sm:$0xff] %vm2891_vm3, %v2810_v6  ;;  %v3213_v13 = vadd.f32 %v11188_v41, %v3202_v51  ;;  %2954 = vst.msk [vmem:[#allocation2 + $0x1f8] sm:$0xff] %vm2891_vm3, %v2808_v55  ;;  %v3433_v59 = vmax.f32 %v11213_v26, %v11217_v0  ;;  %v3216_v20 = vmax.f32 %v3212_v3, 0.0 }
 0x18c   : > { %2953 = vst.msk [vmem:[#allocation2 + $0x1f0] sm:$0xff] %vm2889_vm6, %v2808_v55  ;;  %1781 = vrot.lane.b32.xlu1 %v9776_v2, %s9948_s28  ;;  %s9950_s28 = smov 16  }
 0x18d   : > { %1252 = vrot.lane.b32.xlu0 %v9777_v17, %s9946_s22  ;;  %v3217_v14 = vmax.f32 %v3213_v13, 0.0  ;;  %v1760_v47 = vpop.permute.xlu1 %1759  ;;  %s386_s22 = scalar_lea.vmem %s12688_s11, %s8402_s16 }
 0x18e   : > { %v1231_v16 = vpop.permute.xlu0 %1230 }
 0x18f   : > { %v3220_v38 = vpack.c.bf16 %v3217_v14, %v3216_v20  ;;  %1339 = vst.msk [vmem:[#allocation2 + $0x240] sm:$0xff] %vm1302_vm2, %v1231_v16 }
 0x190   : > { %2839 = vrot.lane.b32.xlu1 %v9782_v63, %s9947_s27  ;;  %1868 = vst.msk [vmem:[#allocation2 + $0x240] sm:$0xff] %vm1831_vm4, %v1760_v47 }
 0x191   : > { %2310 = vrot.lane.b32.xlu0 %v9783_v19, %s9945_s21  ;;  %3223 = vst.msk [vmem:[#allocation3] sm:$0xff] %vm3222_vm7, %v3220_v38  ;;  %v2818_v40 = vpop.permute.xlu1 %2817  ;;  %v4877_v25 = vld [vmem:[#allocation2 + $0x200] sm:$0xff] }
 0x192   : > { %v4878_v24 = vld [vmem:[#allocation2 + $0x208] sm:$0xff]  ;;  %2964 = vst.msk [vmem:[#allocation2 + $0x248] sm:$0xff] %vm2891_vm3, %v2818_v40  ;;  %v2289_v27 = vpop.permute.xlu0 %2288  ;;  %v4648_v56 = vld [vmem:[#allocation2 + $0x1f8] sm:$0xff] }
 0x193   : > { %8854 = vmatprep.mubr.msk.bf16.mxu0 %vm2891_vm3, %v4878_v24  ;;  %v4647_v29 = vld [vmem:[#allocation2 + $0x1f0] sm:$0xff]  ;;  %2397 = vst.msk [vmem:[#allocation2 + $0x240] sm:$0xff] %vm2360_vm5, %v2289_v27  ;;  %v3184_v34 = vpop.f32.mrb[12].mxu0  ;;  %8833 = vmatprep.mubr.msk.bf16.mxu1 %vm2891_vm3, %v4648_v56 }
 0x194   : > { %5042 = vmatmul.mubr.bf16.vlgmr.msra.gmra.mrb[64].mxu0 %v4877_v25  ;;  %2963 = vst.msk [vmem:[#allocation2 + $0x240] sm:$0xff] %vm2889_vm6, %v2818_v40  ;;  %v3186_v35 = vpop.f32.mrb[13].mxu0  ;;  %4836 = vmatmul.mubr.bf16.gmra.mrb[60].mxu1 %v4647_v29 }
 0x195   : > { %5482 = vmatpush1.bf16.msra.mxu0 %v10924_v15  ;;  %v3199_v44 = vmax.f32 %v3184_v34, %v3186_v35  ;;  %v3188_v46 = vpop.f32.mrb[14].mxu0  ;;  %v1754_v49 = vpop.permute.xlu1 %1753 }
 0x196   : > { %5483 = vmatprep.subr.bf16.mxu0 %v10934_v18  ;;  %v1225_v7 = vpop.permute.xlu0 %1224  ;;  %v3190_v54 = vpop.f32.mrb[15].mxu0 }
 0x197   : > { %v3203_v32 = vmax.f32 %v3195_v1, %v3199_v44  ;;  %1336 = vst.msk [vmem:[#allocation2 + $0x210] sm:$0xff] %vm1302_vm2, %v1225_v7  ;;  %v3200_v58 = vmax.f32 %v3188_v46, %v3190_v54  ;;  %v3411_v10 = vpop.f32.mrb[8].mxu1 }
 0x198   : > { %1865 = vst.msk [vmem:[#allocation2 + $0x210] sm:$0xff] %vm1831_vm4, %v1754_v49  ;;  %v3413_v60 = vpop.f32.mrb[9].mxu1  ;;  %v5821_v2 = vld [vmem:[#allocation3] sm:$0xff] }
 0x199   : > { %5484 = vmatpush1.bf16.msra.mxu0 %v10945_v22  ;;  %v3214_v17 = vadd.f32 %v11188_v41, %v3203_v32  ;;  %v3204_v3 = vmax.f32 %v3196_v8, %v3200_v58  ;;  %v3434_v51 = vmax.f32 %v3411_v10, %v3413_v60  ;;  %v3415_v6 = vpop.f32.mrb[10].mxu1  ;;  %v5114_v45 = vld [vmem:[#allocation2 + $0x248] sm:$0xff]  ;;  %5837 = vst.msk [vmem:[#allocation4] sm:$0xff] %vm3222_vm7, %v5821_v2 }
 0x19a   : > { %v2812_v28 = vpop.permute.xlu1 %2811  ;;  %5485 = vmatprep.subr.bf16.mxu0 %v10952_v23  ;;  %v2283_v1 = vpop.permute.xlu0 %2282  ;;  %8878 = vmatprep.mubr.msk.bf16.mxu1 %vm2891_vm3, %v5114_v45  ;;  %v5374_v10 = vld [vmem:[%s12678_s1 + $0x88] sm:$0x33] }
 0x19b   : > { %2958 = vst.msk [vmem:[#allocation2 + $0x218] sm:$0xff] %vm2891_vm3, %v2812_v28  ;;  %v3417_v55 = vpop.f32.mrb[11].mxu1  ;;  %v3215_v63 = vadd.f32 %v11188_v41, %v3204_v3  ;;  %v3438_v52 = vmax.f32 %v3430_v36, %v3434_v51  ;;  %v5113_v8 = vld [vmem:[#allocation2 + $0x240] sm:$0xff]  ;;  %v3218_v13 = vmax.f32 %v3214_v17, 0.0  ;;  %v8899_v51 = vcombine.low %v11040_v43, %v5374_v10 }
 0x19c   : > { %2394 = vst.msk [vmem:[#allocation2 + $0x210] sm:$0xff] %vm2360_vm5, %v2283_v1  ;;  %v3435_v4 = vmax.f32 %v3415_v6, %v3417_v55  ;;  %5278 = vmatmul.mubr.bf16.vlgmr.msra.gmra.mrb[64].mxu1 %v5113_v8 }
 0x19d   : > { %2957 = vst.msk [vmem:[#allocation2 + $0x210] sm:$0xff] %vm2889_vm6, %v2812_v28  ;;  %5486 = vmatpush1.bf16.msra.mxu0 %v10965_v31  ;;  %v3219_v19 = vmax.f32 %v3215_v63, 0.0  ;;  %v3449_v20 = vadd.f32 %v11188_v41, %v3438_v52  ;;  %5718 = vmatpush1.bf16.msra.mxu1 %v10924_v15  ;;  %v9793_v15 = vld [vmem:[%s12678_s1 + $0x40] ss:$8 sps:$4 sm:$0xff]  }
 0x19e   : > { %v3439_v14 = vmax.f32 %v3431_v50, %v3435_v4  ;;  %v1233_v47 = vpop.permute.xlu1 %1232  ;;  %5487 = vmatprep.subr.bf16.mxu0 %v10971_v33  ;;  %v1227_v57 = vpop.permute.xlu0 %1226  ;;  %5719 = vmatprep.subr.bf16.mxu1 %v10934_v18 }
 0x19f   : > { %1340 = vst.msk [vmem:[#allocation2 + $0x250] sm:$0xff] %vm1302_vm2, %v1233_v47  ;;  %v3221_v36 = vpack.c.bf16 %v3219_v19, %v3218_v13  ;;  %1337 = vst.msk [vmem:[#allocation2 + $0x220] sm:$0xff] %vm1302_vm2, %v1227_v57  ;;  %v3453_v39 = vmax.f32 %v3449_v20, 0.0  ;;  %v5476_v19 = vsel %vm3113_vm1, %v8899_v51, 0  ;;  %v5610_v57 = vld [vmem:[%s12678_s1 + $0x88] sm:$0x33] }
 0x1a0   : > { %v3450_v16 = vadd.f32 %v11188_v41, %v3439_v14 }
 0x1a1   : > { %5488 = vmatpush1.bf16.msra.mxu0 %v10985_v37  ;;  %3224 = vst.msk [vmem:[#allocation3 + $0x8] sm:$0xff] %vm3222_vm7, %v3221_v36  ;;  %5720 = vmatpush1.bf16.msra.mxu1 %v10945_v22 }
 0x1a2   : > { %v3454_v5 = vmax.f32 %v3450_v16, 0.0  ;;  %v1762_v50 = vpop.permute.xlu1 %1761  ;;  %v4880_v38 = vld [vmem:[#allocation2 + $0x218] sm:$0xff]  ;;  %5489 = vmatprep.subr.bf16.mxu0 %v9795_v30  ;;  %5721 = vmatprep.subr.bf16.mxu1 %v10952_v23 }
 0x1a3   : > { %1869 = vst.msk [vmem:[#allocation2 + $0x250] sm:$0xff] %vm1831_vm4, %v1762_v50  ;;  %v1756_v18 = vpop.permute.xlu0 %1755  ;;  %8855 = vmatprep.mubr.msk.bf16.mxu0 %vm2891_vm3, %v4880_v38  ;;  %v11284_v24 = vpop.f32.mrb[16].mxu0  ;;  %v8923_v50 = vcombine.low %v11040_v43, %v5610_v57 }
 0x1a4   : > { %v3457_v40 = vpack.c.bf16 %v3454_v5, %v3453_v39  ;;  %1866 = vst.msk [vmem:[#allocation2 + $0x220] sm:$0xff] %vm1831_vm4, %v1756_v18  ;;  %v4879_v25 = vld [vmem:[#allocation2 + $0x210] sm:$0xff]  ;;  %v11286_v27 = vpop.f32.mrb[17].mxu0  ;;  %v8924_v5 = vcombine.high %v11040_v43, %v5610_v57  ;;  %v9806_v57 = vld [vmem:[%s12680_s3 + $0x8] sm:$0xff]  }
 0x1a5   : > { %5052 = vmatmul.mubr.bf16.gmra.mrb[68].mxu0 %v4879_v25  ;;  %v3666_v22 = vmax.f32 %v11284_v24, %v11286_v27  ;;  %v11291_v56 = vpop.f32.mrb[18].mxu0  ;;  %5722 = vmatpush1.bf16.msra.mxu1 %v10965_v31 }
 0x1a6   : > { %3459 = vst.msk [vmem:[#allocation3 + $0x10] sm:$0xff] %vm3222_vm7, %v3457_v40  ;;  %v2291_v29 = vpop.permute.xlu1 %2290  ;;  %5490 = vmatpush1.bf16.msra.mxu0 %v9793_v15  ;;  %v11295_v34 = vpop.f32.mrb[19].mxu0  ;;  %5723 = vmatprep.subr.bf16.mxu1 %v10971_v33 }
 0x1a7   : > { %2398 = vst.msk [vmem:[#allocation2 + $0x250] sm:$0xff] %vm2360_vm5, %v2291_v29  ;;  %v2285_v23 = vpop.permute.xlu0 %2284  ;;  %5491 = vmatprep.subr.bf16.mxu0 %v11003_v53  ;;  %v3667_v35 = vmax.f32 %v11291_v56, %v11295_v34  ;;  %v3421_v44 = vpop.f32.mrb[12].mxu1 }
 0x1a8   : > { %2395 = vst.msk [vmem:[#allocation2 + $0x220] sm:$0xff] %vm2360_vm5, %v2285_v23  ;;  %v3423_v46 = vpop.f32.mrb[13].mxu1  ;;  %v5822_v49 = vld [vmem:[#allocation3 + $0x8] sm:$0xff] }
 0x1a9   : > { %v3436_v7 = vmax.f32 %v3421_v44, %v3423_v46  ;;  %v3425_v54 = vpop.f32.mrb[14].mxu1  ;;  %5724 = vmatpush1.bf16.msra.mxu1 %v10985_v37  ;;  %5838 = vst.msk [vmem:[#allocation4 + $0x18] sm:$0xff] %vm3222_vm7, %v5822_v49 }
 0x1aa   : > { %v2820_v31 = vpop.permute.xlu1 %2819  ;;  %5492 = vmatpush1.bf16.msra.mxu0 %v11015_v12  ;;  %v3427_v32 = vpop.f32.mrb[15].mxu1  ;;  %5725 = vmatprep.subr.bf16.mxu1 %v9795_v30 }
 0x1ab   : > { %2965 = vst.msk [vmem:[#allocation2 + $0x250] sm:$0xff] %vm2889_vm6, %v2820_v31  ;;  %v2814_v33 = vpop.permute.xlu0 %2813  ;;  %5493 = vmatprep.subr.bf16.mxu0 %v11022_v61  ;;  %v3440_v58 = vmax.f32 %v3432_v11, %v3436_v7  ;;  %v3437_v37 = vmax.f32 %v3425_v54, %v3427_v32  ;;  %v8900_v11 = vcombine.high %v11040_v43, %v5374_v10  ;;  %v5712_v43 = vsel %vm3113_vm1, %v8923_v50, 0 }
 0x1ac   : > { %2966 = vst.msk [vmem:[#allocation2 + $0x258] sm:$0xff] %vm2891_vm3, %v2820_v31  ;;  %2960 = vst.msk [vmem:[#allocation2 + $0x228] sm:$0xff] %vm2891_vm3, %v2814_v33 }
 0x1ad   : > { %2959 = vst.msk [vmem:[#allocation2 + $0x220] sm:$0xff] %vm2889_vm6, %v2814_v33  ;;  %v5853_v60 = vld [vmem:[#allocation3 + $0x10] sm:$0xff]  ;;  %v3451_v17 = vadd.f32 %v11188_v41, %v3440_v58  ;;  %v3441_v3 = vmax.f32 %v3433_v59, %v3437_v37  ;;  %5726 = vmatpush1.bf16.msra.mxu1 %v9793_v15 }
 0x1ae   : > { %v5823_v2 = vld [vmem:[#allocation3 + $0x10] sm:$0xff]  ;;  %5885 = vrot.lane.b32.xlu0 %v5853_v60, %s9949_s20  ;;  %v1235_v62 = vpop.permute.xlu1 %1234  ;;  %5494 = vmatpush1.bf16.msra.mxu0 %v11035_v21 }
 0x1af   : > { %5839 = vst.msk [vmem:[#allocation4 + $0x30] sm:$0xff] %vm3222_vm7, %v5823_v2  ;;  %v1229_v42 = vpop.permute.xlu0 %1228  ;;  %5495 = vmatprep.subr.bf16.mxu0 %v11053_v48  ;;  %v3452_v26 = vadd.f32 %v11188_v41, %v3441_v3  ;;  %v11329_v0 = vpop.f32.mrb[16].mxu1  ;;  %5727 = vmatprep.subr.bf16.mxu1 %v11003_v53  ;;  %v3455_v6 = vmax.f32 %v3451_v17, 0.0  ;;  %v9803_v2 = vld [vmem:[%s12680_s3 + $0x40] sm:$0xff]  }
 0x1b0   : > { %1341 = vst.msk [vmem:[#allocation2 + $0x260] sm:$0xff] %vm1302_vm2, %v1235_v62  ;;  %1338 = vst.msk [vmem:[#allocation2 + $0x230] sm:$0xff] %vm1302_vm2, %v1229_v42  ;;  %v11332_v59 = vpop.f32.mrb[17].mxu1 }
 0x1b1   : > { %v3456_v28 = vmax.f32 %v3452_v26, 0.0  ;;  %v3902_v45 = vmax.f32 %v11329_v0, %v11332_v59  ;;  %v11336_v1 = vpop.f32.mrb[18].mxu1  ;;  %5728 = vmatpush1.bf16.msra.mxu1 %v11015_v12  ;;  %v9811_v59 = vld [vmem:[%s12680_s3 + $0x60] sm:$0xff]  }
 0x1b2   : > { %v1764_v55 = vpop.permute.xlu1 %1763  ;;  %v5115_v52 = vld [vmem:[#allocation2 + $0x250] sm:$0xff]  ;;  %5496 = vmatpush1.bf16.msra.mxu0 %v11062_v9  ;;  %v11340_v8 = vpop.f32.mrb[19].mxu1  ;;  %5729 = vmatprep.subr.bf16.mxu1 %v11022_v61 }
 0x1b3   : > { %v5116_v63 = vld [vmem:[#allocation2 + $0x258] sm:$0xff]  ;;  %1870 = vst.msk [vmem:[#allocation2 + $0x260] sm:$0xff] %vm1831_vm4, %v1764_v55  ;;  %v1758_v4 = vpop.permute.xlu0 %1757  ;;  %v4882_v53 = vld [vmem:[#allocation2 + $0x228] sm:$0xff]  ;;  %8901 = vmatprep.subr.msk.bf16.mxu0 %vm3113_vm1, %v8900_v11  ;;  %v3458_v20 = vpack.c.bf16 %v3456_v28, %v3455_v6  ;;  %v3903_v14 = vmax.f32 %v11336_v1, %v11340_v8  ;;  %v9804_v55 = vld [vmem:[%s12680_s3] sm:$0xff]  }
 0x1b4   : > { %8879 = vmatprep.mubr.msk.bf16.mxu1 %vm2891_vm3, %v5116_v63  ;;  %v4881_v13 = vld [vmem:[#allocation2 + $0x220] sm:$0xff]  ;;  %1867 = vst.msk [vmem:[#allocation2 + $0x230] sm:$0xff] %vm1831_vm4, %v1758_v4  ;;  %8856 = vmatprep.mubr.msk.bf16.mxu0 %vm2891_vm3, %v4882_v53  ;;  %v9805_v53 = vld [vmem:[%s12680_s3 + $0x48] sm:$0xff]  }
 0x1b5   : > { %5288 = vmatmul.mubr.bf16.gmra.mrb[68].mxu1 %v5115_v52  ;;  %5062 = vmatmul.mubr.bf16.gmra.mrb[72].mxu0 %v4881_v13  ;;  %3460 = vst.msk [vmem:[#allocation3 + $0x18] sm:$0xff] %vm3222_vm7, %v3458_v20 }
 0x1b6   : > { %v2293_v47 = vpop.permute.xlu1 %2292  ;;  %5498 = vmatpush1.bf16.msra.mxu0 %v5476_v19  ;;  %5730 = vmatpush1.bf16.msra.mxu1 %v11035_v21 }
 0x1b7   : > { %2399 = vst.msk [vmem:[#allocation2 + $0x260] sm:$0xff] %vm2360_vm5, %v2293_v47  ;;  %v2287_v30 = vpop.permute.xlu0 %2286  ;;  %v11357_v36 = vpop.f32.mrb[20].mxu0  ;;  %5731 = vmatprep.subr.bf16.mxu1 %v11053_v48  ;;  %9080 = vmatprep.subr.bf16.mxu0 %v9803_v2 }
 0x1b8   : > { %2396 = vst.msk [vmem:[#allocation2 + $0x230] sm:$0xff] %vm2360_vm5, %v2287_v30  ;;  %v11359_v16 = vpop.f32.mrb[21].mxu0 }
 0x1b9   : > { %v3668_v12 = vmax.f32 %v11357_v36, %v11359_v16  ;;  %v11364_v39 = vpop.f32.mrb[22].mxu0 }
 0x1ba   : > { %v2822_v61 = vpop.permute.xlu1 %2821  ;;  %v11371_v15 = vpop.f32.mrb[23].mxu0  ;;  %5732 = vmatpush1.bf16.msra.mxu1 %v11062_v9 }
 0x1bb   : > { %2967 = vst.msk [vmem:[#allocation2 + $0x260] sm:$0xff] %vm2889_vm6, %v2822_v61  ;;  %v2816_v38 = vpop.permute.xlu0 %2815  ;;  %v3669_v21 = vmax.f32 %v11364_v39, %v11371_v15  ;;  %8925 = vmatprep.subr.msk.bf16.mxu1 %vm3113_vm1, %v8924_v5  ;;  %vm7084_vm1 = vcmask 1048064  }
 0x1bc   : > { %2968 = vst.msk [vmem:[#allocation2 + $0x268] sm:$0xff] %vm2891_vm3, %v2822_v61  ;;  %2962 = vst.msk [vmem:[#allocation2 + $0x238] sm:$0xff] %vm2891_vm3, %v2816_v38  ;;  %v11378_v48 = vld [vmem:[#allocation3 + $0x18] sm:$0xff] }
 0x1bd   : > { %2961 = vst.msk [vmem:[#allocation2 + $0x230] sm:$0xff] %vm2889_vm6, %v2816_v38  ;;  %v9807_v38 = vld [vmem:[%s12680_s3 + $0x50] sm:$0xff]  }
 0x1be   : > { %v1239_v18 = vpop.permute.xlu1 %1238  ;;  %5840 = vst.msk [vmem:[#allocation4 + $0x48] sm:$0xff] %vm3222_vm7, %v11378_v48  ;;  %5734 = vmatpush1.bf16.msra.mxu1 %v5712_v43 }
 0x1bf   : > { %1343 = vst.msk [vmem:[#allocation2 + $0x280] sm:$0xff] %vm1302_vm2, %v1239_v18  ;;  %v1237_v40 = vpop.permute.xlu0 %1236 }
 0x1c0   : > { %1342 = vst.msk [vmem:[#allocation2 + $0x270] sm:$0xff] %vm1302_vm2, %v1237_v40 }
 0x1c2   : > { %v1768_v25 = vpop.permute.xlu1 %1767  ;;  %v5117_v23 = vld [vmem:[#allocation2 + $0x260] sm:$0xff] }
 0x1c3   : > { %v5118_v29 = vld [vmem:[#allocation2 + $0x268] sm:$0xff]  ;;  %1872 = vst.msk [vmem:[#allocation2 + $0x280] sm:$0xff] %vm1831_vm4, %v1768_v25  ;;  %v1766_v9 = vpop.permute.xlu0 %1765  ;;  %v4884_v44 = vld [vmem:[#allocation2 + $0x238] sm:$0xff]  ;;  %v3647_v49 = vpop.f32.mrb[24].mxu0 }
 0x1c4   : > { %8880 = vmatprep.mubr.msk.bf16.mxu1 %vm2891_vm3, %v5118_v29  ;;  %v4883_v46 = vld [vmem:[#allocation2 + $0x230] sm:$0xff]  ;;  %1871 = vst.msk [vmem:[#allocation2 + $0x270] sm:$0xff] %vm1831_vm4, %v1766_v9  ;;  %8857 = vmatprep.mubr.msk.bf16.mxu0 %vm2891_vm3, %v4884_v44  ;;  %v3649_v7 = vpop.f32.mrb[25].mxu0 }
 0x1c5   : > { %5298 = vmatmul.mubr.bf16.gmra.mrb[72].mxu1 %v5117_v23  ;;  %5072 = vmatmul.mubr.bf16.gmra.mrb[76].mxu0 %v4883_v46  ;;  %v3670_v54 = vmax.f32 %v3647_v49, %v3649_v7  ;;  %v3651_v31 = vpop.f32.mrb[26].mxu0  ;;  %v9808_v44 = vld [vmem:[%s12680_s3 + $0x10] sm:$0xff]  }
 0x1c6   : > { %v2297_v33 = vpop.permute.xlu1 %2296  ;;  %v3653_v58 = vpop.f32.mrb[27].mxu0 }
 0x1c7   : > { %2401 = vst.msk [vmem:[#allocation2 + $0x280] sm:$0xff] %vm2360_vm5, %v2297_v33  ;;  %v2295_v32 = vpop.permute.xlu0 %2294  ;;  %v3674_v37 = vmax.f32 %v3666_v22, %v3670_v54  ;;  %v3671_v10 = vmax.f32 %v3651_v31, %v3653_v58  ;;  %v11395_v60 = vpop.f32.mrb[20].mxu1  ;;  %v9809_v54 = vld [vmem:[%s12680_s3 + $0x58] sm:$0xff]  }
 0x1c8   : > { %2400 = vst.msk [vmem:[#allocation2 + $0x270] sm:$0xff] %vm2360_vm5, %v2295_v32  ;;  %v11400_v17 = vpop.f32.mrb[21].mxu1  ;;  %v9810_v32 = vld [vmem:[%s12680_s3 + $0x18] sm:$0xff]  }
 0x1c9   : > { %v3685_v3 = vadd.f32 %v11188_v41, %v3674_v37  ;;  %v3675_v62 = vmax.f32 %v3667_v35, %v3671_v10  ;;  %v3904_v24 = vmax.f32 %v11395_v60, %v11400_v17  ;;  %v11408_v27 = vpop.f32.mrb[22].mxu1  ;;  %v9818_v17 = vld [vmem:[%s12680_s3 + $0x38] sm:$0xff]  }
 0x1ca   : > { %v2826_v22 = vpop.permute.xlu1 %2825  ;;  %v11412_v11 = vpop.f32.mrb[23].mxu1 }
 0x1cb   : > { %2971 = vst.msk [vmem:[#allocation2 + $0x280] sm:$0xff] %vm2889_vm6, %v2826_v22  ;;  %v2824_v42 = vpop.permute.xlu0 %2823  ;;  %v3686_v51 = vadd.f32 %v11188_v41, %v3675_v62  ;;  %v3905_v56 = vmax.f32 %v11408_v27, %v11412_v11  ;;  %v3689_v34 = vmax.f32 %v3685_v3, 0.0 }
 0x1cc   : > { %2972 = vst.msk [vmem:[#allocation2 + $0x288] sm:$0xff] %vm2891_vm3, %v2826_v22  ;;  %2970 = vst.msk [vmem:[#allocation2 + $0x278] sm:$0xff] %vm2891_vm3, %v2824_v42 }
 0x1cd   : > { %2969 = vst.msk [vmem:[#allocation2 + $0x270] sm:$0xff] %vm2889_vm6, %v2824_v42  ;;  %v3690_v35 = vmax.f32 %v3686_v51, 0.0  ;;  %v9812_v51 = vld [vmem:[%s12680_s3 + $0x20] sm:$0xff]  }
 0x1ce   : > { %v1247_v26 = vpop.permute.xlu1 %1246 }
 0x1cf   : > { %1347 = vst.msk [vmem:[#allocation2 + $0x2c0] sm:$0xff] %vm1302_vm2, %v1247_v26  ;;  %v1241_v6 = vpop.permute.xlu0 %1240  ;;  %v3693_v28 = vpack.c.bf16 %v3690_v35, %v3689_v34 }
 0x1d0   : > { %1344 = vst.msk [vmem:[#allocation2 + $0x290] sm:$0xff] %vm1302_vm2, %v1241_v6  ;;  %v9813_v6 = vld [vmem:[%s12680_s3 + $0x68] sm:$0xff]  }
 0x1d1   : > { %3695 = vst.msk [vmem:[#allocation3 + $0x20] sm:$0xff] %vm3222_vm7, %v3693_v28 }
 0x1d2   : > { %v1776_v63 = vpop.permute.xlu1 %1775  ;;  %v5349_v4 = vld [vmem:[#allocation2 + $0x280] sm:$0xff] }
 0x1d3   : > { %v5350_v52 = vld [vmem:[#allocation2 + $0x288] sm:$0xff]  ;;  %1876 = vst.msk [vmem:[#allocation2 + $0x2c0] sm:$0xff] %vm1831_vm4, %v1776_v63  ;;  %v1770_v13 = vpop.permute.xlu0 %1769  ;;  %v5120_v19 = vld [vmem:[#allocation2 + $0x278] sm:$0xff]  ;;  %v3657_v47 = vpop.f32.mrb[28].mxu0 }
 0x1d4   : > { %8902 = vmatprep.mubr.msk.bf16.mxu0 %vm2891_vm3, %v5350_v52  ;;  %v5119_v20 = vld [vmem:[#allocation2 + $0x270] sm:$0xff]  ;;  %1873 = vst.msk [vmem:[#allocation2 + $0x290] sm:$0xff] %vm1831_vm4, %v1770_v13  ;;  %8881 = vmatprep.mubr.msk.bf16.mxu1 %vm2891_vm3, %v5120_v19  ;;  %v3659_v30 = vpop.f32.mrb[29].mxu0  ;;  %v9814_v13 = vld [vmem:[%s12680_s3 + $0x28] sm:$0xff]  }
 0x1d5   : > { %5514 = vmatmul.mubr.bf16.vlgmr.msra.gmra.mrb[80].mxu0 %v5349_v4  ;;  %5308 = vmatmul.mubr.bf16.gmra.mrb[76].mxu1 %v5119_v20  ;;  %v3672_v61 = vmax.f32 %v3657_v47, %v3659_v30  ;;  %v3661_v5 = vpop.f32.mrb[30].mxu0  ;;  %v9815_v47 = vld [vmem:[%s12680_s3 + $0x70] sm:$0xff]  }
 0x1d6   : > { %9081 = vmatpush3.bf16.msra.mxu0 %v9804_v55  ;;  %v2305_v50 = vpop.permute.xlu1 %2304  ;;  %v3663_v43 = vpop.f32.mrb[31].mxu0 }
 0x1d7   : > { %9082 = vmatprep.subr.bf16.mxu0 %v9805_v53  ;;  %2405 = vst.msk [vmem:[#allocation2 + $0x2c0] sm:$0xff] %vm2360_vm5, %v2305_v50  ;;  %v2299_v18 = vpop.permute.xlu0 %2298  ;;  %v3676_v40 = vmax.f32 %v3668_v12, %v3672_v61  ;;  %v3673_v25 = vmax.f32 %v3661_v5, %v3663_v43  ;;  %v3883_v29 = vpop.f32.mrb[24].mxu1  ;;  %v9816_v43 = vld [vmem:[%s12680_s3 + $0x30] sm:$0xff]  }
 0x1d8   : > { %2402 = vst.msk [vmem:[#allocation2 + $0x290] sm:$0xff] %vm2360_vm5, %v2299_v18  ;;  %v3885_v23 = vpop.f32.mrb[25].mxu1  ;;  %v11443_v9 = vld [vmem:[#allocation3 + $0x20] sm:$0xff] }
 0x1d9   : > { %v5825_v46 = vld [vmem:[#allocation3 + $0x20] sm:$0xff]  ;;  %v3687_v49 = vadd.f32 %v11188_v41, %v3676_v40  ;;  %v3677_v36 = vmax.f32 %v3669_v21, %v3673_v25  ;;  %v3906_v16 = vmax.f32 %v3883_v29, %v3885_v23  ;;  %v3887_v12 = vpop.f32.mrb[26].mxu1  ;;  %5999 = vrot.lane.b32.xlu1 %v11443_v9, %s9950_s28  ;;  %v9817_v29 = vld [vmem:[%s12680_s3 + $0x78] sm:$0xff]  }
 0x1da   : > { %9083 = vmatpush3.bf16.msra.mxu0 %v9806_v57  ;;  %v2834_v7 = vpop.permute.xlu1 %2833  ;;  %5841 = vst.msk [vmem:[#allocation4 + $0x60] sm:$0xff] %vm3222_vm7, %v5825_v46  ;;  %v3889_v15 = vpop.f32.mrb[27].mxu1 }
 0x1db   : > { %9084 = vmatprep.subr.bf16.mxu0 %v9807_v38  ;;  %2979 = vst.msk [vmem:[#allocation2 + $0x2c0] sm:$0xff] %vm2889_vm6, %v2834_v7  ;;  %v2828_v39 = vpop.permute.xlu0 %2827  ;;  %v3688_v21 = vadd.f32 %v11188_v41, %v3677_v36  ;;  %v3910_v31 = vmax.f32 %v3902_v45, %v3906_v16  ;;  %v3907_v33 = vmax.f32 %v3887_v12, %v3889_v15  ;;  %v3691_v58 = vmax.f32 %v3687_v49, 0.0 }
 0x1dc   : > { %2980 = vst.msk [vmem:[#allocation2 + $0x2c8] sm:$0xff] %vm2891_vm3, %v2834_v7  ;;  %2974 = vst.msk [vmem:[#allocation2 + $0x298] sm:$0xff] %vm2891_vm3, %v2828_v39 }
 0x1dd   : > { %2973 = vst.msk [vmem:[#allocation2 + $0x290] sm:$0xff] %vm2889_vm6, %v2828_v39  ;;  %v3692_v37 = vmax.f32 %v3688_v21, 0.0  ;;  %v3921_v10 = vadd.f32 %v11188_v41, %v3910_v31  ;;  %v3911_v2 = vmax.f32 %v3903_v14, %v3907_v33 }
 0x1de   : > { %9085 = vmatpush3.bf16.msra.mxu0 %v9808_v44  ;;  %v1249_v0 = vpop.permute.xlu1 %1248 }
 0x1df   : > { %9086 = vmatprep.subr.bf16.mxu0 %v9809_v54  ;;  %1348 = vst.msk [vmem:[#allocation2 + $0x2d0] sm:$0xff] %vm1302_vm2, %v1249_v0  ;;  %v1243_v45 = vpop.permute.xlu0 %1242  ;;  %v3694_v3 = vpack.c.bf16 %v3692_v37, %v3691_v58  ;;  %v3922_v62 = vadd.f32 %v11188_v41, %v3911_v2  ;;  %v3925_v22 = vmax.f32 %v3921_v10, 0.0 }
 0x1e0   : > { %1345 = vst.msk [vmem:[#allocation2 + $0x2a0] sm:$0xff] %vm1302_vm2, %v1243_v45 }
 0x1e1   : > { %3696 = vst.msk [vmem:[#allocation3 + $0x28] sm:$0xff] %vm3222_vm7, %v3694_v3  ;;  %v3926_v1 = vmax.f32 %v3922_v62, 0.0 }
 0x1e2   : > { %9087 = vmatpush3.bf16.msra.mxu0 %v9810_v32  ;;  %v1778_v8 = vpop.permute.xlu1 %1777  ;;  %v5585_v42 = vld [vmem:[#allocation2 + $0x2c0] sm:$0xff] }
 0x1e3   : > { %v5586_v14 = vld [vmem:[#allocation2 + $0x2c8] sm:$0xff]  ;;  %9088 = vmatprep.subr.bf16.mxu0 %v9811_v59  ;;  %1877 = vst.msk [vmem:[#allocation2 + $0x2d0] sm:$0xff] %vm1831_vm4, %v1778_v8  ;;  %v1772_v34 = vpop.permute.xlu0 %1771  ;;  %v5352_v35 = vld [vmem:[#allocation2 + $0x298] sm:$0xff]  ;;  %v3929_v28 = vpack.c.bf16 %v3926_v1, %v3925_v22  ;;  %v11489_v55 = vpop.f32.mrb[32].mxu0 }
 0x1e4   : > { %8926 = vmatprep.mubr.msk.bf16.mxu1 %vm2891_vm3, %v5586_v14  ;;  %v5351_v26 = vld [vmem:[#allocation2 + $0x290] sm:$0xff]  ;;  %1874 = vst.msk [vmem:[#allocation2 + $0x2a0] sm:$0xff] %vm1831_vm4, %v1772_v34  ;;  %8903 = vmatprep.mubr.msk.bf16.mxu0 %vm2891_vm3, %v5352_v35  ;;  %v11492_v63 = vpop.f32.mrb[33].mxu0 }
 0x1e5   : > { %5750 = vmatmul.mubr.bf16.vlgmr.msra.gmra.mrb[80].mxu1 %v5585_v42  ;;  %5524 = vmatmul.mubr.bf16.gmra.mrb[84].mxu0 %v5351_v26  ;;  %3931 = vst.msk [vmem:[#allocation3 + $0x30] sm:$0xff] %vm3222_vm7, %v3929_v28  ;;  %v4138_v52 = vmax.f32 %v11489_v55, %v11492_v63  ;;  %v11497_v4 = vpop.f32.mrb[34].mxu0  ;;  %v9820_v63 = vld [vmem:[%s12680_s3 + $0x88] sm:$0xff]  }
 0x1e6   : > { %v2307_v53 = vpop.permute.xlu1 %2306  ;;  %9089 = vmatpush3.bf16.msra.mxu0 %v9812_v51  ;;  %v11503_v20 = vpop.f32.mrb[35].mxu0 }
 0x1e7   : > { %2406 = vst.msk [vmem:[#allocation2 + $0x2d0] sm:$0xff] %vm2360_vm5, %v2307_v53  ;;  %v2301_v19 = vpop.permute.xlu0 %2300  ;;  %9090 = vmatprep.subr.bf16.mxu0 %v9813_v6  ;;  %v4139_v30 = vmax.f32 %v11497_v4, %v11503_v20  ;;  %v3893_v57 = vpop.f32.mrb[28].mxu1 }
 0x1e8   : > { %2403 = vst.msk [vmem:[#allocation2 + $0x2a0] sm:$0xff] %vm2360_vm5, %v2301_v19  ;;  %v3895_v61 = vpop.f32.mrb[29].mxu1  ;;  %v5826_v5 = vld [vmem:[#allocation3 + $0x28] sm:$0xff] }
 0x1e9   : > { %v3908_v50 = vmax.f32 %v3893_v57, %v3895_v61  ;;  %v3897_v38 = vpop.f32.mrb[30].mxu1  ;;  %5842 = vst.msk [vmem:[#allocation4 + $0x78] sm:$0xff] %vm3222_vm7, %v5826_v5 }
 0x1ea   : > { %v2836_v18 = vpop.permute.xlu1 %2835  ;;  %9091 = vmatpush3.bf16.msra.mxu0 %v9814_v13  ;;  %v3899_v25 = vpop.f32.mrb[31].mxu1 }
 0x1eb   : > { %2981 = vst.msk [vmem:[#allocation2 + $0x2d0] sm:$0xff] %vm2889_vm6, %v2836_v18  ;;  %v2830_v40 = vpop.permute.xlu0 %2829  ;;  %9092 = vmatprep.subr.bf16.mxu0 %v9815_v47  ;;  %v3912_v23 = vmax.f32 %v3904_v24, %v3908_v50  ;;  %v3909_v44 = vmax.f32 %v3897_v38, %v3899_v25  ;;  %v11590_v50 = vld [vmem:[%s12679_s2] ss:$0 sm:$0xff] }
 0x1ec   : > { %2982 = vst.msk [vmem:[#allocation2 + $0x2d8] sm:$0xff] %vm2891_vm3, %v2836_v18  ;;  %2976 = vst.msk [vmem:[#allocation2 + $0x2a8] sm:$0xff] %vm2891_vm3, %v2830_v40  ;;  %v11525_v46 = vld [vmem:[#allocation3 + $0x30] sm:$0xff]  ;;  %v9819_v18 = vld [vmem:[%s12680_s3 + $0x80] sm:$0xff]  }
 0x1ed   : > { %2975 = vst.msk [vmem:[#allocation2 + $0x2a0] sm:$0xff] %vm2889_vm6, %v2830_v40  ;;  %v5827_v49 = vld [vmem:[#allocation3 + $0x30] sm:$0xff]  ;;  %v3923_v36 = vadd.f32 %v11188_v41, %v3912_v23  ;;  %v3913_v16 = vmax.f32 %v3905_v56, %v3909_v44  ;;  %6096 = vrot.lane.b32.xlu0 %v11525_v46, %s9951_s25  ;;  %9332 = vmatprep.subr.bf16.mxu1 %v9819_v18 }
 0x1ee   : > { %v1251_v60 = vpop.permute.xlu1 %1250  ;;  %9093 = vmatpush3.bf16.msra.mxu0 %v9816_v43  ;;  %5843 = vst.msk [vmem:[#allocation4 + $0x90] sm:$0xff] %vm3222_vm7, %v5827_v49  ;;  %9333 = vmatpush3.bf16.msra.mxu1 %v9819_v18 }
 0x1ef   : > { %1349 = vst.msk [vmem:[#allocation2 + $0x2e0] sm:$0xff] %vm1302_vm2, %v1251_v60  ;;  %v1245_v24 = vpop.permute.xlu0 %1244  ;;  %9094 = vmatprep.subr.bf16.mxu0 %v9817_v29  ;;  %v3924_v12 = vadd.f32 %v11188_v41, %v3913_v16  ;;  %v3927_v27 = vmax.f32 %v3923_v36, 0.0  ;;  %9334 = vmatprep.subr.bf16.mxu1 %v9820_v63 }
 0x1f0   : > { %1346 = vst.msk [vmem:[#allocation2 + $0x2b0] sm:$0xff] %vm1302_vm2, %v1245_v24 }
 0x1f1   : > { %v3928_v11 = vmax.f32 %v3924_v12, 0.0  ;;  %v9822_v12 = vld [vmem:[%s12680_s3 + $0x98] sm:$0xff]  }
 0x1f2   : > { %v1780_v56 = vpop.permute.xlu1 %1779  ;;  %v5587_v54 = vld [vmem:[#allocation2 + $0x2d0] sm:$0xff]  ;;  %9095 = vmatpush3.bf16.msra.mxu0 %v9818_v17  ;;  %9335 = vmatpush3.bf16.msra.mxu1 %v9820_v63 }
 0x1f3   : > { %v5588_v7 = vld [vmem:[#allocation2 + $0x2d8] sm:$0xff]  ;;  %1878 = vst.msk [vmem:[#allocation2 + $0x2e0] sm:$0xff] %vm1831_vm4, %v1780_v56  ;;  %v1774_v39 = vpop.permute.xlu0 %1773  ;;  %v5354_v15 = vld [vmem:[#allocation2 + $0x2a8] sm:$0xff]  ;;  %v3930_v31 = vpack.c.bf16 %v3928_v11, %v3927_v27  ;;  %v9821_v17 = vld [vmem:[%s12680_s3 + $0x90] sm:$0xff]  }
 0x1f4   : > { %8927 = vmatprep.mubr.msk.bf16.mxu1 %vm2891_vm3, %v5588_v7  ;;  %v5353_v21 = vld [vmem:[#allocation2 + $0x2a0] sm:$0xff]  ;;  %1875 = vst.msk [vmem:[#allocation2 + $0x2b0] sm:$0xff] %vm1831_vm4, %v1774_v39  ;;  %v11543_v33 = vpop.f32.mrb[32].mxu1  ;;  %8904 = vmatprep.mubr.msk.bf16.mxu0 %vm2891_vm3, %v5354_v15 }
 0x1f5   : > { %5760 = vmatmul.mubr.bf16.gmra.mrb[84].mxu1 %v5587_v54  ;;  %v11546_v41 = vpop.f32.mrb[33].mxu1  ;;  %5534 = vmatmul.mubr.bf16.gmra.mrb[88].mxu0 %v5353_v21  ;;  %3932 = vst.msk [vmem:[#allocation3 + $0x38] sm:$0xff] %vm3222_vm7, %v3930_v31  ;;  %v9823_v39 = vld [vmem:[%s12680_s3 + $0xa0] sm:$0xff]  }
 0x1f6   : > { %v4374_v32 = vmax.f32 %v11543_v33, %v11546_v41  ;;  %v11551_v58 = vpop.f32.mrb[34].mxu1  ;;  %v2309_v37 = vpop.permute.xlu1 %2308  ;;  %9336 = vmatprep.subr.bf16.mxu1 %v9821_v17  ;;  %v9825_v33 = vld [vmem:[%s12680_s3 + $0xb0] ss:$0 sps:$4 sm:$0xff]  }
 0x1f7   : > { %2407 = vst.msk [vmem:[#allocation2 + $0x2e0] sm:$0xff] %vm2360_vm5, %v2309_v37  ;;  %v2303_v10 = vpop.permute.xlu0 %2302  ;;  %v11554_v2 = vpop.f32.mrb[35].mxu1  ;;  %9337 = vmatpush3.bf16.msra.mxu1 %v9821_v17 }
 0x1f8   : > { %2404 = vst.msk [vmem:[#allocation2 + $0x2b0] sm:$0xff] %vm2360_vm5, %v2303_v10  ;;  %v4375_v0 = vmax.f32 %v11551_v58, %v11554_v2  ;;  %v11559_v59 = vpop.f32.mrb[36].mxu0  ;;  %9338 = vmatprep.subr.bf16.mxu1 %v9822_v12  ;;  %v6482_v58 = vsel %vm6480_vm10, %v9825_v33, 0 }
 0x1f9   : > { %v11561_v45 = vpop.f32.mrb[37].mxu0 }
 0x1fa   : > { %v4140_v3 = vmax.f32 %v11559_v59, %v11561_v45  ;;  %v11565_v62 = vpop.f32.mrb[38].mxu0  ;;  %v2838_v22 = vpop.permute.xlu1 %2837  ;;  %v9824_v45 = vld [vmem:[%s12680_s3 + $0xa8] sm:$0xff]  }
 0x1fb   : > { %2983 = vst.msk [vmem:[#allocation2 + $0x2e0] sm:$0xff] %vm2889_vm6, %v2838_v22  ;;  %v2832_v1 = vpop.permute.xlu0 %2831  ;;  %v11569_v8 = vpop.f32.mrb[39].mxu0  ;;  %9339 = vmatpush3.bf16.msra.mxu1 %v9822_v12 }
 0x1fc   : > { %2984 = vst.msk [vmem:[#allocation2 + $0x2e8] sm:$0xff] %vm2891_vm3, %v2838_v22  ;;  %2978 = vst.msk [vmem:[#allocation2 + $0x2b8] sm:$0xff] %vm2891_vm3, %v2832_v1  ;;  %v4141_v14 = vmax.f32 %v11565_v62, %v11569_v8  ;;  %v11575_v42 = vld [vmem:[#allocation3 + $0x38] sm:$0xff]  ;;  %9340 = vmatprep.subr.bf16.mxu1 %v9823_v39 }
 0x1fd   : > { %2977 = vst.msk [vmem:[#allocation2 + $0x2b0] sm:$0xff] %vm2889_vm6, %v2832_v1  ;;  %v5828_v51 = vld [vmem:[#allocation3 + $0x38] sm:$0xff]  ;;  %6098 = vrot.lane.b32.xlu1 %v11575_v42, %s9951_s25 }
 0x1fe   : > { %v1782_v34 = vpop.permute.xlu1 %1781  ;;  %5844 = vst.msk [vmem:[#allocation4 + $0xa8] sm:$0xff] %vm3222_vm7, %v5828_v51 }
 0x1ff   : > { %v1253_v35 = vpop.permute.xlu0 %1252  ;;  %9341 = vmatpush3.bf16.msra.mxu1 %v9823_v39 }
 0x200   : > { %1350 = vst.msk [vmem:[#allocation2 + $0x2f0] sm:$0xff] %vm1302_vm2, %v1253_v35  ;;  %9342 = vmatprep.subr.bf16.mxu1 %v9824_v45 }
 0x201   : > { %1879 = vst.msk [vmem:[#allocation2 + $0x2f0] sm:$0xff] %vm1831_vm4, %v1782_v34 }
 0x202   : > { %v2840_v26 = vpop.permute.xlu1 %2839  ;;  %v5589_v28 = vld [vmem:[#allocation2 + $0x2e0] sm:$0xff] }
 0x203   : > { %v5590_v6 = vld [vmem:[#allocation2 + $0x2e8] sm:$0xff]  ;;  %2986 = vst.msk [vmem:[#allocation2 + $0x2f8] sm:$0xff] %vm2891_vm3, %v2840_v26  ;;  %v2311_v53 = vpop.permute.xlu0 %2310  ;;  %v5356_v13 = vld [vmem:[#allocation2 + $0x2b8] sm:$0xff]  ;;  %9343 = vmatpush3.bf16.msra.mxu1 %v9824_v45 }
 0x204   : > { %8928 = vmatprep.mubr.msk.bf16.mxu1 %vm2891_vm3, %v5590_v6  ;;  %v5355_v19 = vld [vmem:[#allocation2 + $0x2b0] sm:$0xff]  ;;  %2408 = vst.msk [vmem:[#allocation2 + $0x2f0] sm:$0xff] %vm2360_vm5, %v2311_v53  ;;  %v4119_v47 = vpop.f32.mrb[40].mxu0  ;;  %8905 = vmatprep.mubr.msk.bf16.mxu0 %vm2891_vm3, %v5356_v13 }
 0x205   : > { %5770 = vmatmul.mubr.bf16.gmra.mrb[88].mxu1 %v5589_v28  ;;  %2985 = vst.msk [vmem:[#allocation2 + $0x2f0] sm:$0xff] %vm2889_vm6, %v2840_v26  ;;  %v4121_v57 = vpop.f32.mrb[41].mxu0  ;;  %5544 = vmatmul.mubr.bf16.gmra.mrb[92].mxu0 %v5355_v19 }
 0x206   : > { %v4142_v61 = vmax.f32 %v4119_v47, %v4121_v57  ;;  %v4123_v5 = vpop.f32.mrb[42].mxu0  ;;  %9460 = vmatprep.subr.msk.bf16.mxu1 %vm6480_vm10, %v9825_v33 }
 0x207   : > { %v4125_v38 = vpop.f32.mrb[43].mxu0  ;;  %9345 = vmatpush3.bf16.msra.mxu1 %v6482_v58 }
 0x208   : > { %v4146_v43 = vmax.f32 %v4138_v52, %v4142_v61  ;;  %v4143_v40 = vmax.f32 %v4123_v5, %v4125_v38  ;;  %v11598_v25 = vpop.f32.mrb[36].mxu1 }
 0x209   : > { %v11600_v29 = vpop.f32.mrb[37].mxu1 }
 0x20a   : > { %v4157_v23 = vadd.f32 %v11590_v50, %v4146_v43  ;;  %v4147_v44 = vmax.f32 %v4139_v30, %v4143_v40  ;;  %v4376_v49 = vmax.f32 %v11598_v25, %v11600_v29  ;;  %v11608_v36 = vpop.f32.mrb[38].mxu1  ;;  %v5592_v16 = vld [vmem:[#allocation2 + $0x2f8] sm:$0xff] }
 0x20b   : > { %v11610_v55 = vpop.f32.mrb[39].mxu1  ;;  %8929 = vmatprep.mubr.msk.bf16.mxu1 %vm2891_vm3, %v5592_v16 }
 0x20c   : > { %v4158_v52 = vadd.f32 %v11590_v50, %v4147_v44  ;;  %v4377_v4 = vmax.f32 %v11608_v36, %v11610_v55  ;;  %v5591_v20 = vld [vmem:[#allocation2 + $0x2f0] sm:$0xff]  ;;  %v4161_v30 = vmax.f32 %v4157_v23, 0.0 }
 0x20d   : > { %5780 = vmatmul.mubr.bf16.gmra.mrb[92].mxu1 %v5591_v20 }
 0x20e   : > { %v4162_v60 = vmax.f32 %v4158_v52, 0.0 }
 0x210   : > { %v4165_v24 = vpack.c.bf16 %v4162_v60, %v4161_v30  ;;  %v5968_v30 = vld [vmem:[#allocation3 + $0x28] sm:$0xff] }
 0x212   : > { %4167 = vst.msk [vmem:[#allocation3 + $0x40] sm:$0xff] %vm3222_vm7, %v4165_v24 }
 0x214   : > { %v4129_v27 = vpop.f32.mrb[44].mxu0 }
 0x215   : > { %v4131_v11 = vpop.f32.mrb[45].mxu0 }
 0x216   : > { %v4144_v56 = vmax.f32 %v4129_v27, %v4131_v11  ;;  %v4133_v7 = vpop.f32.mrb[46].mxu0 }
 0x217   : > { %v4135_v54 = vpop.f32.mrb[47].mxu0  ;;  %v4355_v31 = vpop.f32.mrb[40].mxu1 }
 0x218   : > { %v4148_v15 = vmax.f32 %v4140_v3, %v4144_v56  ;;  %v4145_v21 = vmax.f32 %v4133_v7, %v4135_v54  ;;  %v4357_v37 = vpop.f32.mrb[41].mxu1 }
 0x219   : > { %v11632_v10 = vld [vmem:[#allocation3 + $0x40] sm:$0xff]  ;;  %v4378_v34 = vmax.f32 %v4355_v31, %v4357_v37  ;;  %v4359_v35 = vpop.f32.mrb[42].mxu1 }
 0x21a   : > { %v5829_v22 = vld [vmem:[#allocation3 + $0x40] sm:$0xff]  ;;  %v4159_v1 = vadd.f32 %v11590_v50, %v4148_v15  ;;  %v4149_v51 = vmax.f32 %v4141_v14, %v4145_v21  ;;  %6210 = vrot.lane.b32.xlu0 %v11632_v10, %s9952_s26  ;;  %v4361_v59 = vpop.f32.mrb[43].mxu1 }
 0x21b   : > { %5845 = vst.msk [vmem:[#allocation4 + $0xc0] sm:$0xff] %vm3222_vm7, %v5829_v22  ;;  %v4382_v62 = vmax.f32 %v4374_v32, %v4378_v34  ;;  %v4379_v8 = vmax.f32 %v4359_v35, %v4361_v59  ;;  %v11716_v59 = vld [vmem:[%s12680_s3 + $0x80] sm:$0xff]  }
 0x21c   : > { %v4160_v3 = vadd.f32 %v11590_v50, %v4149_v51  ;;  %v4163_v14 = vmax.f32 %v4159_v1, 0.0  ;;  %9354 = vmatprep.subr.bf16.mxu1 %v11716_v59 }
 0x21d   : > { %v4393_v6 = vadd.f32 %v11590_v50, %v4382_v62  ;;  %v4383_v28 = vmax.f32 %v4375_v0, %v4379_v8 }
 0x21e   : > { %v4164_v26 = vmax.f32 %v4160_v3, 0.0  ;;  %5887 = vrot.lane.b32.xlu0 %v11378_v48, %s9949_s20 }
 0x21f   : > { %v4394_v32 = vadd.f32 %v11590_v50, %v4383_v28  ;;  %v4397_v48 = vmax.f32 %v4393_v6, 0.0 }
 0x220   : > { %v4166_v41 = vpack.c.bf16 %v4164_v26, %v4163_v14  ;;  %v5886_v53 = vpop.permute.xlu0 %5885  ;;  %v9827_v14 = vld [vmem:[%s12680_s3 + $0x40] sm:$0xff]  }
 0x221   : > { %5934 = vst.msk [vmem:[#allocation4] sm:$0xff] %vm5933_vm8, %v5886_v53  ;;  %v4398_v2 = vmax.f32 %v4394_v32, 0.0  ;;  %9131 = vmatprep.subr.bf16.mxu0 %v9827_v14  ;;  %v9831_v14 = vld [vmem:[%s12680_s3 + $0x8] sm:$0xff]  }
 0x222   : > { %5936 = vst.msk [vmem:[#allocation4 + $0x8] sm:$0xff] %vm5935_vm9, %v5886_v53  ;;  %6100 = vrot.lane.b32.xlu0 %v11632_v10, %s9951_s25 }
 0x223   : > { %4168 = vst.msk [vmem:[#allocation3 + $0x48] sm:$0xff] %vm3222_vm7, %v4166_v41  ;;  %v4401_v0 = vpack.c.bf16 %v4398_v2, %v4397_v48 }
 0x224   : > { %v4571_v13 = vpop.f32.mrb[48].mxu0 }
 0x225   : > { %v4573_v19 = vpop.f32.mrb[49].mxu0  ;;  %4403 = vst.msk [vmem:[#allocation3 + $0x50] sm:$0xff] %vm3222_vm7, %v4401_v0 }
 0x226   : > { %v4610_v47 = vmax.f32 %v4571_v13, %v4573_v19  ;;  %v4575_v57 = vpop.f32.mrb[50].mxu0 }
 0x227   : > { %v4577_v61 = vpop.f32.mrb[51].mxu0  ;;  %v4365_v38 = vpop.f32.mrb[44].mxu1 }
 0x228   : > { %v4611_v5 = vmax.f32 %v4575_v57, %v4577_v61  ;;  %v4367_v18 = vpop.f32.mrb[45].mxu1 }
 0x229   : > { %v4380_v23 = vmax.f32 %v4365_v38, %v4367_v18  ;;  %v4369_v44 = vpop.f32.mrb[46].mxu1 }
 0x22a   : > { %v11666_v43 = vld [vmem:[#allocation3 + $0x48] sm:$0xff]  ;;  %v4371_v16 = vpop.f32.mrb[47].mxu1 }
 0x22b   : > { %v5830_v40 = vld [vmem:[#allocation3 + $0x48] sm:$0xff]  ;;  %6212 = vrot.lane.b32.xlu1 %v11666_v43, %s9952_s26  ;;  %v4384_v63 = vmax.f32 %v4376_v49, %v4380_v23  ;;  %v4381_v52 = vmax.f32 %v4369_v44, %v4371_v16 }
 0x22c   : > { %5846 = vst.msk [vmem:[#allocation4 + $0xd8] sm:$0xff] %vm3222_vm7, %v5830_v40  ;;  %v11674_v20 = vld [vmem:[#allocation3 + $0x50] sm:$0xff] }
 0x22d   : > { %v5831_v60 = vld [vmem:[#allocation3 + $0x50] sm:$0xff]  ;;  %v4395_v17 = vadd.f32 %v11590_v50, %v4384_v63  ;;  %v4385_v24 = vmax.f32 %v4377_v4, %v4381_v52  ;;  %6214 = vrot.lane.b32.xlu0 %v11674_v20, %s9952_s26 }
 0x22e   : > { %5847 = vst.msk [vmem:[#allocation4 + $0xf0] sm:$0xff] %vm3222_vm7, %v5831_v60 }
 0x22f   : > { %6001 = vrot.lane.b32.xlu1 %v5968_v30, %s9950_s28  ;;  %v4396_v25 = vadd.f32 %v11590_v50, %v4385_v24  ;;  %v4399_v29 = vmax.f32 %v4395_v17, 0.0 }
 0x231   : > { %v4400_v49 = vmax.f32 %v4396_v25, 0.0  ;;  %5889 = vrot.lane.b32.xlu0 %v11443_v9, %s9949_s20 }
 0x233   : > { %6003 = vrot.lane.b32.xlu1 %v11525_v46, %s9950_s28  ;;  %v4402_v12 = vpack.c.bf16 %v4400_v49, %v4399_v29 }
 0x234   : > { %v4581_v36 = vpop.f32.mrb[52].mxu0 }
 0x235   : > { %v4583_v55 = vpop.f32.mrb[53].mxu0  ;;  %4404 = vst.msk [vmem:[#allocation3 + $0x58] sm:$0xff] %vm3222_vm7, %v4402_v12  ;;  %6104 = vrot.lane.b32.xlu0 %v11674_v20, %s9951_s25 }
 0x236   : > { %v4612_v4 = vmax.f32 %v4581_v36, %v4583_v55  ;;  %v4585_v27 = vpop.f32.mrb[54].mxu0 }
 0x237   : > { %6005 = vrot.lane.b32.xlu1 %v11575_v42, %s9950_s28  ;;  %v4587_v11 = vpop.f32.mrb[55].mxu0  ;;  %v11694_v7 = vpop.f32.mrb[48].mxu1 }
 0x238   : > { %v4613_v56 = vmax.f32 %v4585_v27, %v4587_v11  ;;  %v11696_v9 = vpop.f32.mrb[49].mxu1 }
 0x239   : > { %v4846_v54 = vmax.f32 %v11694_v7, %v11696_v9  ;;  %v11700_v39 = vpop.f32.mrb[50].mxu1  ;;  %5891 = vrot.lane.b32.xlu0 %v5968_v30, %s9949_s20 }
 0x23a   : > { %v4813_v15 = vpop.f32.mrb[51].mxu1 }
 0x23b   : > { %6102 = vrot.lane.b32.xlu1 %v11666_v43, %s9951_s25  ;;  %v4847_v21 = vmax.f32 %v11700_v39, %v4813_v15 }
 0x23c   : > { %v11706_v31 = vld [vmem:[#allocation3 + $0x58] sm:$0xff] }
 0x23d   : > { %v5832_v37 = vld [vmem:[#allocation3 + $0x58] sm:$0xff] }
 0x23e   : > { %5848 = vst.msk [vmem:[#allocation4 + $0x108] sm:$0xff] %vm3222_vm7, %v5832_v37  ;;  %v9830_v37 = vld [vmem:[%s12680_s3 + $0x48] sm:$0xff]  }
 0x23f   : > { %6216 = vrot.lane.b32.xlu1 %v11706_v31, %s9952_s26  ;;  %v4591_v22 = vpop.f32.mrb[56].mxu0 }
 0x240   : > { %v4593_v1 = vpop.f32.mrb[57].mxu0 }
 0x241   : > { %v4614_v51 = vmax.f32 %v4591_v22, %v4593_v1  ;;  %v4595_v34 = vpop.f32.mrb[58].mxu0 }
 0x242   : > { %v4597_v35 = vpop.f32.mrb[59].mxu0 }
 0x243   : > { %6106 = vrot.lane.b32.xlu1 %v11706_v31, %s9951_s25  ;;  %v4618_v45 = vmax.f32 %v4610_v47, %v4614_v51  ;;  %v4615_v3 = vmax.f32 %v4595_v34, %v4597_v35  ;;  %v6275_v34 = vld [vmem:[#allocation4] sm:$0xff] }
 0x245   : > { %v4629_v62 = vadd.f32 %v11590_v50, %v4618_v45  ;;  %v4619_v8 = vmax.f32 %v4611_v5, %v4615_v3 }
 0x247   : > { %v4630_v26 = vadd.f32 %v11590_v50, %v4619_v8  ;;  %v4633_v6 = vmax.f32 %v4629_v62, 0.0 }
 0x249   : > { %v4634_v28 = vmax.f32 %v4630_v26, 0.0 }
 0x24b   : > { %v4637_v33 = vpack.c.bf16 %v4634_v28, %v4633_v6  ;;  %v6000_v32 = vpop.permute.xlu1 %5999  ;;  %v9833_v28 = vld [vmem:[%s12680_s3 + $0x50] sm:$0xff]  }
 0x24c   : > { %v11724_v41 = vpop.f32.mrb[52].mxu1  ;;  %6048 = vst.msk [vmem:[#allocation4 + $0x8] sm:$0xff] %vm6047_vm11, %v6000_v32 }
 0x24d   : > { %v11727_v53 = vpop.f32.mrb[53].mxu1  ;;  %4639 = vst.msk [vmem:[#allocation3 + $0x60] sm:$0xff] %vm3222_vm7, %v4637_v33 }
 0x24e   : > { %v4848_v58 = vmax.f32 %v11724_v41, %v11727_v53  ;;  %v11732_v48 = vpop.f32.mrb[54].mxu1  ;;  %v9834_v41 = vld [vmem:[%s12680_s3 + $0x10] sm:$0xff]  }
 0x24f   : > { %v11734_v2 = vpop.f32.mrb[55].mxu1  ;;  %v4601_v13 = vpop.f32.mrb[60].mxu0 }
 0x250   : > { %v4849_v0 = vmax.f32 %v11732_v48, %v11734_v2  ;;  %v4603_v19 = vpop.f32.mrb[61].mxu0  ;;  %v9836_v48 = vld [vmem:[%s12680_s3 + $0x58] sm:$0xff]  }
 0x251   : > { %v4616_v47 = vmax.f32 %v4601_v13, %v4603_v19  ;;  %v4605_v57 = vpop.f32.mrb[62].mxu0 }
 0x252   : > { %v4607_v61 = vpop.f32.mrb[63].mxu0 }
 0x253   : > { %v4620_v5 = vmax.f32 %v4612_v4, %v4616_v47  ;;  %v4617_v38 = vmax.f32 %v4605_v57, %v4607_v61 }
 0x254   : > { %v11738_v18 = vld [vmem:[#allocation3 + $0x60] sm:$0xff] }
 0x255   : > { %v5833_v40 = vld [vmem:[#allocation3 + $0x60] sm:$0xff]  ;;  %v4631_v23 = vadd.f32 %v11590_v50, %v4620_v5  ;;  %v4621_v44 = vmax.f32 %v4613_v56, %v4617_v38  ;;  %6218 = vrot.lane.b32.xlu0 %v11738_v18, %s9952_s26 }
 0x256   : > { %5849 = vst.msk [vmem:[#allocation4 + $0x120] sm:$0xff] %vm3222_vm7, %v5833_v40  ;;  %v9837_v40 = vld [vmem:[%s12680_s3 + $0x18] sm:$0xff]  }
 0x257   : > { %v4632_v16 = vadd.f32 %v11590_v50, %v4621_v44  ;;  %v4827_v63 = vpop.f32.mrb[56].mxu1  ;;  %v4635_v30 = vmax.f32 %v4631_v23, 0.0 }
 0x258   : > { %v4829_v52 = vpop.f32.mrb[57].mxu1 }
 0x259   : > { %v4636_v60 = vmax.f32 %v4632_v16, 0.0  ;;  %v4850_v17 = vmax.f32 %v4827_v63, %v4829_v52  ;;  %v4831_v24 = vpop.f32.mrb[58].mxu1  ;;  %5893 = vrot.lane.b32.xlu0 %v11525_v46, %s9949_s20  ;;  %v9839_v16 = vld [vmem:[%s12680_s3 + $0x60] sm:$0xff]   ;;  %v9842_v52 = vld [vmem:[%s12680_s3 + $0x68] sm:$0xff]  }
 0x25a   : > { %v4833_v25 = vpop.f32.mrb[59].mxu1 }
 0x25b   : > { %v4638_v29 = vpack.c.bf16 %v4636_v60, %v4635_v30  ;;  %v4854_v49 = vmax.f32 %v4846_v54, %v4850_v17  ;;  %v4851_v12 = vmax.f32 %v4831_v24, %v4833_v25  ;;  %v9828_v54 = vld [vmem:[%s12680_s3] sm:$0xff]   ;;  %v9843_v24 = vld [vmem:[%s12680_s3 + $0x28] sm:$0xff]  }
 0x25d   : > { %4640 = vst.msk [vmem:[#allocation3 + $0x68] sm:$0xff] %vm3222_vm7, %v4638_v29  ;;  %v4865_v36 = vadd.f32 %v11590_v50, %v4854_v49  ;;  %v4855_v55 = vmax.f32 %v4847_v21, %v4851_v12  ;;  %5895 = vrot.lane.b32.xlu0 %v11575_v42, %s9949_s20  ;;  %v9845_v29 = vld [vmem:[%s12680_s3 + $0x70] sm:$0xff]  }
 0x25f   : > { %v4866_v4 = vadd.f32 %v11590_v50, %v4855_v55  ;;  %v6097_v27 = vpop.permute.xlu0 %6096  ;;  %v4869_v46 = vmax.f32 %v4865_v36, 0.0  ;;  %v9846_v36 = vld [vmem:[%s12680_s3 + $0x30] sm:$0xff]   ;;  %v9849_v55 = vld [vmem:[%s12680_s3 + $0x78] sm:$0xff]  }
 0x260   : > { %6145 = vst.msk [vmem:[#allocation4 + $0x8] sm:$0xff] %vm6144_vm12, %v6097_v27 }
 0x261   : > { %6147 = vst.msk [vmem:[#allocation4 + $0x10] sm:$0xff] %vm6146_vm13, %v6097_v27  ;;  %v4870_v11 = vmax.f32 %v4866_v4, 0.0  ;;  %6108 = vrot.lane.b32.xlu0 %v11738_v18, %s9951_s25  ;;  %v9850_v4 = vld [vmem:[%s12680_s3 + $0x38] sm:$0xff]  }
 0x263   : > { %v4873_v56 = vpack.c.bf16 %v4870_v11, %v4869_v46 }
 0x264   : > { %v11756_v7 = vld [vmem:[#allocation3 + $0x68] sm:$0xff] }
 0x265   : > { %v5834_v9 = vld [vmem:[#allocation3 + $0x68] sm:$0xff]  ;;  %4875 = vst.msk [vmem:[#allocation3 + $0x70] sm:$0xff] %vm3222_vm7, %v4873_v56  ;;  %6220 = vrot.lane.b32.xlu1 %v11756_v7, %s9952_s26 }
 0x266   : > { %5850 = vst.msk [vmem:[#allocation4 + $0x138] sm:$0xff] %vm3222_vm7, %v5834_v9 }
 0x267   : > { %v11762_v42 = vpop.f32.mrb[64].mxu0  ;;  %v4837_v39 = vpop.f32.mrb[60].mxu1  ;;  %v6276_v21 = vld [vmem:[#allocation4 + $0x8] sm:$0xff] }
 0x268   : > { %v11767_v15 = vpop.f32.mrb[65].mxu0  ;;  %v4839_v22 = vpop.f32.mrb[61].mxu1  ;;  %6516 = vmatprep.mubr.bf16.mxu0 %v6276_v21 }
 0x269   : > { %v5082_v1 = vmax.f32 %v11762_v42, %v11767_v15  ;;  %v11774_v51 = vpop.f32.mrb[66].mxu0  ;;  %v4852_v35 = vmax.f32 %v4837_v39, %v4839_v22  ;;  %v4841_v45 = vpop.f32.mrb[62].mxu1  ;;  %6517 = vmatmul.mubr.bf16.vlgmr.msra.gmra.mrb[96].mxu0 %v6275_v34  ;;  %6007 = vrot.lane.b32.xlu1 %v11632_v10, %s9950_s28  ;;  %v11907_v39 = vld [vmem:[%s12680_s3 + $0x80] sm:$0xff]  }
 0x26a   : > { %v11778_v3 = vpop.f32.mrb[67].mxu0  ;;  %v4843_v62 = vpop.f32.mrb[63].mxu1  ;;  %9132 = vmatpush3.bf16.msra.mxu0 %v9828_v54 }
 0x26b   : > { %v5083_v8 = vmax.f32 %v11774_v51, %v11778_v3  ;;  %v4856_v26 = vmax.f32 %v4848_v58, %v4852_v35  ;;  %v4853_v6 = vmax.f32 %v4841_v45, %v4843_v62  ;;  %9133 = vmatprep.subr.bf16.mxu0 %v9830_v37 }
 0x26c   : > { %v11791_v33 = vld [vmem:[#allocation3 + $0x70] sm:$0xff] }
 0x26d   : > { %v5835_v32 = vld [vmem:[#allocation3 + $0x70] sm:$0xff]  ;;  %v4867_v13 = vadd.f32 %v11590_v50, %v4856_v26  ;;  %v4857_v19 = vmax.f32 %v4849_v0, %v4853_v6  ;;  %6009 = vrot.lane.b32.xlu1 %v11666_v43, %s9950_s28  ;;  %6222 = vrot.lane.b32.xlu0 %v11791_v33, %s9952_s26 }
 0x26e   : > { %5851 = vst.msk [vmem:[#allocation4 + $0x150] sm:$0xff] %vm3222_vm7, %v5835_v32  ;;  %9134 = vmatpush3.bf16.msra.mxu0 %v9831_v14 }
 0x26f   : > { %v4868_v53 = vadd.f32 %v11590_v50, %v4857_v19  ;;  %v11806_v58 = vpop.f32.mrb[64].mxu1  ;;  %v11808_v47 = vpop.permute.xlu1 %6098  ;;  %9135 = vmatprep.subr.bf16.mxu0 %v9833_v28  ;;  %v4871_v0 = vmax.f32 %v4867_v13, 0.0 }
 0x270   : > { %6149 = vst.msk [vmem:[#allocation4 + $0x28] sm:$0xff] %vm6146_vm13, %v11808_v47  ;;  %v11815_v2 = vpop.f32.mrb[65].mxu1 }
 0x271   : > { %v4872_v57 = vmax.f32 %v4868_v53, 0.0  ;;  %v5318_v61 = vmax.f32 %v11806_v58, %v11815_v2  ;;  %v11819_v5 = vpop.f32.mrb[66].mxu1  ;;  %5901 = vrot.lane.b32.xlu1 %v11674_v20, %s9949_s20  ;;  %5897 = vrot.lane.b32.xlu0 %v11632_v10, %s9949_s20  ;;  %v9840_v10 = vld [vmem:[%s12680_s3 + $0x20] sm:$0xff]  }
 0x272   : > { %v11825_v38 = vpop.f32.mrb[67].mxu1  ;;  %9136 = vmatpush3.bf16.msra.mxu0 %v9834_v41 }
 0x273   : > { %v4874_v23 = vpack.c.bf16 %v4872_v57, %v4871_v0  ;;  %v5319_v44 = vmax.f32 %v11819_v5, %v11825_v38  ;;  %9137 = vmatprep.subr.bf16.mxu0 %v9836_v48 }
 0x275   : > { %4876 = vst.msk [vmem:[#allocation3 + $0x78] sm:$0xff] %vm3222_vm7, %v4874_v23  ;;  %6015 = vrot.lane.b32.xlu1 %v11738_v18, %s9950_s28  ;;  %6011 = vrot.lane.b32.xlu0 %v11674_v20, %s9950_s28 }
 0x276   : > { %9138 = vmatpush3.bf16.msra.mxu0 %v9837_v40 }
 0x277   : > { %9139 = vmatprep.subr.bf16.mxu0 %v9839_v16 }
 0x278   : > { %v11843_v63 = vpop.f32.mrb[68].mxu0 }
 0x279   : > { %v11848_v30 = vpop.f32.mrb[69].mxu0  ;;  %6110 = vrot.lane.b32.xlu1 %v11756_v7, %s9951_s25  ;;  %6112 = vrot.lane.b32.xlu0 %v11791_v33, %s9951_s25 }
 0x27a   : > { %v5084_v60 = vmax.f32 %v11843_v63, %v11848_v30  ;;  %v11852_v17 = vpop.f32.mrb[70].mxu0  ;;  %9140 = vmatpush3.bf16.msra.mxu0 %v9840_v10 }
 0x27b   : > { %v11858_v20 = vpop.f32.mrb[71].mxu0  ;;  %9141 = vmatprep.subr.bf16.mxu0 %v9842_v52 }
 0x27c   : > { %v5085_v25 = vmax.f32 %v11852_v17, %v11858_v20  ;;  %v11868_v49 = vld [vmem:[#allocation3 + $0x78] sm:$0xff] }
 0x27d   : > { %v5836_v12 = vld [vmem:[#allocation3 + $0x78] sm:$0xff]  ;;  %6224 = vrot.lane.b32.xlu1 %v11868_v49, %s9952_s26  ;;  %5903 = vrot.lane.b32.xlu0 %v11706_v31, %s9949_s20 }
 0x27e   : > { %5852 = vst.msk [vmem:[#allocation4 + $0x168] sm:$0xff] %vm3222_vm7, %v5836_v12  ;;  %9142 = vmatpush3.bf16.msra.mxu0 %v9843_v24 }
 0x27f   : > { %9143 = vmatprep.subr.bf16.mxu0 %v9845_v29 }
 0x281   : > { %5899 = vrot.lane.b32.xlu1 %v11666_v43, %s9949_s20  ;;  %5905 = vrot.lane.b32.xlu0 %v11738_v18, %s9949_s20 }
 0x282   : > { %9144 = vmatpush3.bf16.msra.mxu0 %v9846_v36 }
 0x283   : > { %9145 = vmatprep.subr.bf16.mxu0 %v9849_v55 }
 0x285   : > { %6013 = vrot.lane.b32.xlu1 %v11706_v31, %s9950_s28  ;;  %6017 = vrot.lane.b32.xlu0 %v11756_v7, %s9950_s28 }
 0x286   : > { %9146 = vmatpush3.bf16.msra.mxu0 %v9850_v4  ;;  %v9832_v4 = vld [vmem:[%s12680_s3 + $0x90] sm:$0xff]  }
 0x287   : > { %9376 = vmatprep.subr.bf16.mxu0 %v11907_v39 }
 0x288   : > { %v11892_v27 = vpop.f32.mrb[68].mxu1  ;;  %v5063_v46 = vpop.f32.mrb[72].mxu0 }
 0x289   : > { %v11894_v43 = vpop.f32.mrb[69].mxu1  ;;  %v5065_v11 = vpop.f32.mrb[73].mxu0  ;;  %6019 = vrot.lane.b32.xlu1 %v11791_v33, %s9950_s28 }
 0x28a   : > { %v5320_v18 = vmax.f32 %v11892_v27, %v11894_v43  ;;  %v11898_v56 = vpop.f32.mrb[70].mxu1  ;;  %v5086_v9 = vmax.f32 %v5063_v46, %v5065_v11  ;;  %v5067_v54 = vpop.f32.mrb[74].mxu0 }
 0x28b   : > { %v11902_v31 = vpop.f32.mrb[71].mxu1  ;;  %v5069_v21 = vpop.f32.mrb[75].mxu0 }
 0x28c   : > { %v5321_v37 = vmax.f32 %v11898_v56, %v11902_v31  ;;  %v5090_v22 = vmax.f32 %v5082_v1, %v5086_v9  ;;  %v5087_v34 = vmax.f32 %v5067_v54, %v5069_v21  ;;  %v6211_v35 = vpop.permute.xlu0 %6210  ;;  %v9838_v56 = vld [vmem:[%s12680_s3 + $0xa0] sm:$0xff]  }
 0x28d   : > { %6259 = vst.msk [vmem:[#allocation4 + $0x10] sm:$0xff] %vm6258_vm14, %v6211_v35  ;;  %6114 = vrot.lane.b32.xlu1 %v11868_v49, %s9951_s25 }
 0x28e   : > { %v5101_v45 = vadd.f32 %v11590_v50, %v5090_v22  ;;  %v5091_v62 = vmax.f32 %v5083_v8, %v5087_v34 }
 0x290   : > { %v5102_v14 = vadd.f32 %v11590_v50, %v5091_v62  ;;  %v5888_v26 = vpop.permute.xlu0 %5887  ;;  %v5105_v42 = vmax.f32 %v5101_v45, 0.0 }
 0x291   : > { %5937 = vst.msk [vmem:[#allocation4 + $0x18] sm:$0xff] %vm5933_vm8, %v5888_v26  ;;  %5907 = vrot.lane.b32.xlu1 %v11756_v7, %s9949_s20 }
 0x292   : > { %5938 = vst.msk [vmem:[#allocation4 + $0x20] sm:$0xff] %vm5935_vm9, %v5888_v26  ;;  %v5106_v15 = vmax.f32 %v5102_v14, 0.0 }
 0x294   : > { %v5109_v1 = vpack.c.bf16 %v5106_v15, %v5105_v42  ;;  %v6101_v6 = vpop.permute.xlu0 %6100  ;;  %v6277_v51 = vld [vmem:[#allocation4 + $0x10] sm:$0xff] }
 0x295   : > { %6151 = vst.msk [vmem:[#allocation4 + $0x40] sm:$0xff] %vm6146_vm13, %v6101_v6  ;;  %9346 = vmatprep.mubr.msk.bf16.mxu1 %vm6467_vm15, %v6277_v51  ;;  %v9835_v51 = vld [vmem:[%s12680_s3 + $0x98] sm:$0xff]  }
 0x296   : > { %5111 = vst.msk [vmem:[#allocation3 + $0x80] sm:$0xff] %vm3222_vm7, %v5109_v1 }
 0x298   : > { %v5299_v3 = vpop.f32.mrb[72].mxu1  ;;  %v5073_v8 = vpop.f32.mrb[76].mxu0  ;;  %v6278_v45 = vld [vmem:[#allocation4 + $0x18] sm:$0xff] }
 0x299   : > { %v5301_v28 = vpop.f32.mrb[73].mxu1  ;;  %v5075_v32 = vpop.f32.mrb[77].mxu0 }
 0x29a   : > { %v5322_v13 = vmax.f32 %v5299_v3, %v5301_v28  ;;  %v5303_v19 = vpop.f32.mrb[74].mxu1  ;;  %v5088_v41 = vmax.f32 %v5073_v8, %v5075_v32  ;;  %v5077_v53 = vpop.f32.mrb[78].mxu0 }
 0x29b   : > { %v5305_v48 = vpop.f32.mrb[75].mxu1  ;;  %v5079_v0 = vpop.f32.mrb[79].mxu0 }
 0x29c   : > { %v5326_v7 = vmax.f32 %v5318_v61, %v5322_v13  ;;  %v5323_v57 = vmax.f32 %v5303_v19, %v5305_v48  ;;  %v5092_v40 = vmax.f32 %v5084_v60, %v5088_v41  ;;  %v5089_v23 = vmax.f32 %v5077_v53, %v5079_v0  ;;  %v9841_v53 = vld [vmem:[%s12680_s3 + $0xa8] sm:$0xff]  }
 0x29d   : > { %v6213_v16 = vpop.permute.xlu1 %6212  ;;  %v11941_v24 = vld [vmem:[#allocation3 + $0x80] sm:$0xff] }
 0x29e   : > { %v5337_v10 = vadd.f32 %v11590_v50, %v5326_v7  ;;  %v5327_v52 = vmax.f32 %v5319_v44, %v5323_v57  ;;  %6260 = vst.msk [vmem:[#allocation4 + $0x28] sm:$0xff] %vm6258_vm14, %v6213_v16  ;;  %v5103_v58 = vadd.f32 %v11590_v50, %v5092_v40  ;;  %v5093_v2 = vmax.f32 %v5085_v25, %v5089_v23  ;;  %v9829_v25 = vld [vmem:[%s12680_s3 + $0x88] sm:$0xff]  }
 0x29f   : > { %6116 = vrot.lane.b32.xlu1 %v11941_v24, %s9951_s25  ;;  %6226 = vrot.lane.b32.xlu0 %v11941_v24, %s9952_s26  ;;  %v6215_v38 = vpop.permute.xlu0 %6214 }
 0x2a0   : > { %v5338_v61 = vadd.f32 %v11590_v50, %v5327_v52  ;;  %v5104_v5 = vadd.f32 %v11590_v50, %v5093_v2  ;;  %v5341_v63 = vmax.f32 %v5337_v10, 0.0  ;;  %6261 = vst.msk [vmem:[#allocation4 + $0x40] sm:$0xff] %vm6258_vm14, %v6215_v38  ;;  %v5107_v60 = vmax.f32 %v5103_v58, 0.0 }
 0x2a1   : > { %v6002_v44 = vpop.permute.xlu1 %6001 }
 0x2a2   : > { %v5342_v30 = vmax.f32 %v5338_v61, 0.0  ;;  %6049 = vst.msk [vmem:[#allocation4 + $0x20] sm:$0xff] %vm6047_vm11, %v6002_v44  ;;  %v5108_v17 = vmax.f32 %v5104_v5, 0.0 }
 0x2a3   : > { %6148 = vst.msk [vmem:[#allocation4 + $0x20] sm:$0xff] %vm6144_vm12, %v11808_v47  ;;  %6023 = vrot.lane.b32.xlu1 %v11941_v24, %s9950_s28  ;;  %v5890_v12 = vpop.permute.xlu0 %5889 }
 0x2a4   : > { %v5345_v20 = vpack.c.bf16 %v5342_v30, %v5341_v63  ;;  %v5110_v29 = vpack.c.bf16 %v5108_v17, %v5107_v60  ;;  %5939 = vst.msk [vmem:[#allocation4 + $0x30] sm:$0xff] %vm5933_vm8, %v5890_v12  ;;  %v9847_v60 = vld [vmem:[%s12680_s3 + $0x40] sm:$0xff]  }
 0x2a5   : > { %v6004_v36 = vpop.permute.xlu1 %6003  ;;  %v6280_v55 = vld [vmem:[#allocation4 + $0x28] sm:$0xff]  ;;  %5940 = vst.msk [vmem:[#allocation4 + $0x38] sm:$0xff] %vm5935_vm9, %v5890_v12 }
 0x2a6   : > { %5347 = vst.msk [vmem:[#allocation3 + $0x90] sm:$0xff] %vm3222_vm7, %v5345_v20  ;;  %9347 = vmatmul.mubr.msk.bf16.vlgmr.msra.gmra.mrb[96].mxu1 %vm6467_vm15, %v6280_v55  ;;  %5112 = vst.msk [vmem:[#allocation3 + $0x88] sm:$0xff] %vm3222_vm7, %v5110_v29 }
 0x2a7   : > { %6050 = vst.msk [vmem:[#allocation4 + $0x38] sm:$0xff] %vm6047_vm11, %v6004_v36  ;;  %9355 = vmatpush3.bf16.msra.mxu1 %v11716_v59  ;;  %v11975_v11 = vpop.permute.xlu0 %6104  ;;  %v6283_v9 = vld [vmem:[#allocation4 + $0x40] sm:$0xff] }
 0x2a8   : > { %6150 = vst.msk [vmem:[#allocation4 + $0x38] sm:$0xff] %vm6144_vm12, %v6101_v6  ;;  %v11970_v47 = vpop.f32.mrb[80].mxu0  ;;  %9356 = vmatprep.subr.bf16.mxu1 %v9829_v25  ;;  %v5309_v46 = vpop.f32.mrb[76].mxu1  ;;  %9350 = vmatprep.mubr.msk.bf16.mxu1 %vm6467_vm15, %v6283_v9 }
 0x2a9   : > { %6155 = vst.msk [vmem:[#allocation4 + $0x70] sm:$0xff] %vm6146_vm13, %v11975_v11  ;;  %v6006_v54 = vpop.permute.xlu1 %6005  ;;  %v5311_v21 = vpop.f32.mrb[77].mxu1 }
 0x2aa   : > { %v6279_v59 = vld [vmem:[#allocation4 + $0x20] sm:$0xff]  ;;  %v5324_v22 = vmax.f32 %v5309_v46, %v5311_v21  ;;  %v11980_v34 = vpop.f32.mrb[81].mxu0  ;;  %v5313_v35 = vpop.f32.mrb[78].mxu1 }
 0x2ab   : > { %6524 = vmatprep.mubr.bf16.mxu0 %v6279_v59  ;;  %9357 = vmatpush3.bf16.msra.mxu1 %v9829_v25  ;;  %v5554_v62 = vmax.f32 %v11970_v47, %v11980_v34  ;;  %v11984_v14 = vpop.f32.mrb[82].mxu0  ;;  %v5315_v26 = vpop.f32.mrb[79].mxu1  ;;  %v6281_v41 = vld [vmem:[#allocation4 + $0x30] sm:$0xff]  ;;  %v12088_v46 = vld [vmem:[%s12679_s2] ss:$0 sm:$0xff] }
 0x2ac   : > { %6525 = vmatmul.mubr.bf16.gmra.mrb[100].mxu0 %v6278_v45  ;;  %9358 = vmatprep.subr.bf16.mxu1 %v9832_v4  ;;  %v5328_v42 = vmax.f32 %v5320_v18, %v5324_v22  ;;  %v5325_v15 = vmax.f32 %v5313_v35, %v5315_v26  ;;  %v11989_v1 = vpop.f32.mrb[83].mxu0  ;;  %v5892_v6 = vpop.permute.xlu0 %5891 }
 0x2ad   : > { %v5555_v3 = vmax.f32 %v11984_v14, %v11989_v1  ;;  %v6103_v8 = vpop.permute.xlu1 %6102  ;;  %5941 = vst.msk [vmem:[#allocation4 + $0x48] sm:$0xff] %vm5933_vm8, %v5892_v6  ;;  %v11998_v28 = vld [vmem:[#allocation3 + $0x88] sm:$0xff] }
 0x2ae   : > { %5942 = vst.msk [vmem:[#allocation4 + $0x50] sm:$0xff] %vm5935_vm9, %v5892_v6  ;;  %v5339_v27 = vadd.f32 %v11590_v50, %v5328_v42  ;;  %v5329_v43 = vmax.f32 %v5321_v37, %v5325_v15  ;;  %6118 = vrot.lane.b32.xlu1 %v11998_v28, %s9951_s25  ;;  %6228 = vrot.lane.b32.xlu0 %v11998_v28, %s9952_s26  ;;  %v6188_v37 = vld [vmem:[#allocation3 + $0x90] sm:$0xff] }
 0x2af   : > { %6153 = vst.msk [vmem:[#allocation4 + $0x58] sm:$0xff] %vm6146_vm13, %v6103_v8  ;;  %v6282_v18 = vld [vmem:[#allocation4 + $0x38] sm:$0xff]  ;;  %9359 = vmatpush3.bf16.msra.mxu1 %v9832_v4 }
 0x2b0   : > { %6051 = vst.msk [vmem:[#allocation4 + $0x50] sm:$0xff] %vm6047_vm11, %v6006_v54  ;;  %6532 = vmatprep.mubr.bf16.mxu0 %v6282_v18  ;;  %v5340_v32 = vadd.f32 %v11590_v50, %v5329_v43  ;;  %9360 = vmatprep.subr.bf16.mxu1 %v9835_v51  ;;  %v5343_v13 = vmax.f32 %v5339_v27, 0.0 }
 0x2b1   : > { %6152 = vst.msk [vmem:[#allocation4 + $0x50] sm:$0xff] %vm6144_vm12, %v6103_v8  ;;  %v6217_v31 = vpop.permute.xlu1 %6216 }
 0x2b2   : > { %v5344_v19 = vmax.f32 %v5340_v32, 0.0  ;;  %6262 = vst.msk [vmem:[#allocation4 + $0x58] sm:$0xff] %vm6258_vm14, %v6217_v31  ;;  %6230 = vrot.lane.b32.xlu1 %v6188_v37, %s9952_s26  ;;  %6021 = vrot.lane.b32.xlu0 %v11868_v49, %s9950_s28 }
 0x2b3   : > { %9361 = vmatpush3.bf16.msra.mxu1 %v9835_v51 }
 0x2b4   : > { %6533 = vmatmul.mubr.bf16.gmra.mrb[104].mxu0 %v6281_v41  ;;  %v5346_v50 = vpack.c.bf16 %v5344_v19, %v5343_v13  ;;  %9362 = vmatprep.subr.bf16.mxu1 %v9838_v56  ;;  %v6284_v61 = vld [vmem:[#allocation4 + $0x48] sm:$0xff] }
 0x2b5   : > { %v12022_v48 = vpop.permute.xlu1 %6106 }
 0x2b6   : > { %5348 = vst.msk [vmem:[#allocation3 + $0x98] sm:$0xff] %vm3222_vm7, %v5346_v50  ;;  %5911 = vrot.lane.b32.xlu1 %v11868_v49, %s9949_s20  ;;  %5909 = vrot.lane.b32.xlu0 %v11791_v33, %s9949_s20  ;;  %v9844_v33 = vld [vmem:[%s12680_s3 + $0xb0] ss:$0 sps:$4 sm:$0xff]  }
 0x2b7   : > { %6157 = vst.msk [vmem:[#allocation4 + $0x88] sm:$0xff] %vm6146_vm13, %v12022_v48  ;;  %9363 = vmatpush3.bf16.msra.mxu1 %v9838_v56  ;;  %v6883_v30 = vsel %vm6480_vm10, %v9844_v33, 0 }
 0x2b8   : > { %v6285_v7 = vld [vmem:[#allocation4 + $0x50] sm:$0xff]  ;;  %v12031_v0 = vpop.f32.mrb[80].mxu1  ;;  %v12033_v57 = vpop.f32.mrb[84].mxu0  ;;  %9364 = vmatprep.subr.bf16.mxu1 %v9841_v53 }
 0x2b9   : > { %6540 = vmatprep.mubr.bf16.mxu0 %v6285_v7  ;;  %v12035_v40 = vpop.f32.mrb[81].mxu1  ;;  %v12037_v23 = vpop.f32.mrb[85].mxu0  ;;  %v6286_v10 = vld [vmem:[#allocation4 + $0x58] sm:$0xff] }
 0x2ba   : > { %v5790_v16 = vmax.f32 %v12031_v0, %v12035_v40  ;;  %v12041_v49 = vpop.f32.mrb[82].mxu1  ;;  %v5556_v52 = vmax.f32 %v12033_v57, %v12037_v23  ;;  %9351 = vmatmul.mubr.msk.bf16.gmra.mrb[100].mxu1 %vm6467_vm15, %v6286_v10  ;;  %v12049_v58 = vpop.f32.mrb[86].mxu0  ;;  %6027 = vrot.lane.b32.xlu1 %v6188_v37, %s9950_s28  ;;  %v9848_v0 = vld [vmem:[%s12680_s3] sm:$0xff]   ;;  %v9851_v40 = vld [vmem:[%s12680_s3 + $0x48] sm:$0xff]  }
 0x2bb   : > { %v12052_v2 = vpop.f32.mrb[83].mxu1  ;;  %6120 = vrot.lane.b32.xlu0 %v6188_v37, %s9951_s25  ;;  %v12055_v5 = vpop.f32.mrb[87].mxu0  ;;  %9365 = vmatpush3.bf16.msra.mxu1 %v9841_v53 }
 0x2bc   : > { %v5791_v38 = vmax.f32 %v12041_v49, %v12052_v2  ;;  %6541 = vmatmul.mubr.bf16.gmra.mrb[108].mxu0 %v6284_v61  ;;  %v5557_v44 = vmax.f32 %v12049_v58, %v12055_v5  ;;  %9461 = vmatprep.subr.msk.bf16.mxu1 %vm6480_vm10, %v9844_v33 }
 0x2bd   : > { %v12061_v63 = vld [vmem:[#allocation3 + $0x98] sm:$0xff] }
 0x2be   : > { %6122 = vrot.lane.b32.xlu1 %v12061_v63, %s9951_s25 }
 0x2bf   : > { %5913 = vrot.lane.b32.xlu0 %v11941_v24, %s9949_s20  ;;  %9367 = vmatpush3.bf16.msra.mxu1 %v6883_v30 }
 0x2c0   : > { %9182 = vmatprep.subr.bf16.mxu1 %v9847_v60 }
 0x2c3   : > { %6232 = vrot.lane.b32.xlu0 %v12061_v63, %s9952_s26 }
 0x2c7   : > { %6025 = vrot.lane.b32.xlu0 %v11998_v28, %s9950_s28  ;;  %v6219_v25 = vpop.permute.xlu0 %6218 }
 0x2c8   : > { %v12076_v17 = vpop.f32.mrb[84].mxu1  ;;  %v5535_v20 = vpop.f32.mrb[88].mxu0  ;;  %6263 = vst.msk [vmem:[#allocation4 + $0x70] sm:$0xff] %vm6258_vm14, %v6219_v25  ;;  %v9852_v25 = vld [vmem:[%s12680_s3 + $0x8] sm:$0xff]  }
 0x2c9   : > { %v5537_v29 = vpop.f32.mrb[89].mxu0  ;;  %v12079_v12 = vpop.f32.mrb[85].mxu1 }
 0x2ca   : > { %v5558_v36 = vmax.f32 %v5535_v20, %v5537_v29  ;;  %v5792_v24 = vmax.f32 %v12076_v17, %v12079_v12  ;;  %v5539_v55 = vpop.f32.mrb[90].mxu0  ;;  %v12083_v4 = vpop.f32.mrb[86].mxu1 }
 0x2cb   : > { %v5541_v9 = vpop.f32.mrb[91].mxu0  ;;  %v12090_v54 = vpop.f32.mrb[87].mxu1 }
 0x2cc   : > { %v5562_v21 = vmax.f32 %v5554_v62, %v5558_v36  ;;  %v5559_v59 = vmax.f32 %v5539_v55, %v5541_v9  ;;  %v5793_v22 = vmax.f32 %v12083_v4, %v12090_v54  ;;  %v5894_v35 = vpop.permute.xlu0 %5893  ;;  %v9853_v36 = vld [vmem:[%s12680_s3 + $0x50] sm:$0xff]   ;;  %v9855_v4 = vld [vmem:[%s12680_s3 + $0x58] sm:$0xff]  }
 0x2cd   : > { %5943 = vst.msk [vmem:[#allocation4 + $0x60] sm:$0xff] %vm5933_vm8, %v5894_v35 }
 0x2ce   : > { %5944 = vst.msk [vmem:[#allocation4 + $0x68] sm:$0xff] %vm5935_vm9, %v5894_v35  ;;  %v5573_v45 = vadd.f32 %v12088_v46, %v5562_v21  ;;  %v5563_v26 = vmax.f32 %v5555_v3, %v5559_v59 }
 0x2cf   : > { %v6680_v47 = vld [vmem:[#allocation4 + $0x70] sm:$0xff] }
 0x2d0   : > { %v5574_v42 = vadd.f32 %v12088_v46, %v5563_v26  ;;  %v5896_v15 = vpop.permute.xlu0 %5895  ;;  %9368 = vmatprep.mubr.msk.bf16.mxu1 %vm6467_vm15, %v6680_v47  ;;  %v5577_v34 = vmax.f32 %v5573_v45, 0.0  ;;  %v9866_v26 = vld [vmem:[%s12680_s3 + $0x88] sm:$0xff]  }
 0x2d1   : > { %5945 = vst.msk [vmem:[#allocation4 + $0x78] sm:$0xff] %vm5933_vm8, %v5896_v15 }
 0x2d2   : > { %5946 = vst.msk [vmem:[#allocation4 + $0x80] sm:$0xff] %vm5935_vm9, %v5896_v15  ;;  %v5578_v62 = vmax.f32 %v5574_v42, 0.0 }
 0x2d4   : > { %v5581_v6 = vpack.c.bf16 %v5578_v62, %v5577_v34  ;;  %v12107_v51 = vpop.permute.xlu0 %6108  ;;  %v6678_v12 = vld [vmem:[#allocation4 + $0x60] sm:$0xff]  ;;  %v9867_v62 = vld [vmem:[%s12680_s3 + $0x90] sm:$0xff]  }
 0x2d5   : > { %6159 = vst.msk [vmem:[#allocation4 + $0xa0] sm:$0xff] %vm6146_vm13, %v12107_v51 }
 0x2d6   : > { %5583 = vst.msk [vmem:[#allocation3 + $0xa0] sm:$0xff] %vm3222_vm7, %v5581_v6 }
 0x2d7   : > { %v6221_v3 = vpop.permute.xlu1 %6220 }
 0x2d8   : > { %v5771_v14 = vpop.f32.mrb[88].mxu1  ;;  %v5545_v1 = vpop.f32.mrb[92].mxu0  ;;  %6264 = vst.msk [vmem:[#allocation4 + $0x88] sm:$0xff] %vm6258_vm14, %v6221_v3  ;;  %v9857_v3 = vld [vmem:[%s12680_s3 + $0x60] sm:$0xff]  }
 0x2d9   : > { %v5547_v8 = vpop.f32.mrb[93].mxu0  ;;  %v5773_v27 = vpop.f32.mrb[89].mxu1 }
 0x2da   : > { %v5560_v43 = vmax.f32 %v5545_v1, %v5547_v8  ;;  %v5794_v18 = vmax.f32 %v5771_v14, %v5773_v27  ;;  %v5549_v32 = vpop.f32.mrb[94].mxu0  ;;  %v5775_v56 = vpop.f32.mrb[90].mxu1 }
 0x2db   : > { %v5551_v31 = vpop.f32.mrb[95].mxu0  ;;  %v5777_v37 = vpop.f32.mrb[91].mxu1 }
 0x2dc   : > { %v5564_v13 = vmax.f32 %v5556_v52, %v5560_v43  ;;  %v5798_v19 = vmax.f32 %v5790_v16, %v5794_v18  ;;  %v5561_v41 = vmax.f32 %v5549_v32, %v5551_v31  ;;  %v5795_v50 = vmax.f32 %v5775_v56, %v5777_v37  ;;  %v6008_v53 = vpop.permute.xlu1 %6007  ;;  %v9870_v43 = vld [vmem:[%s12680_s3 + $0x98] sm:$0xff]   ;;  %v9858_v32 = vld [vmem:[%s12680_s3 + $0x20] sm:$0xff]   ;;  %v9859_v31 = vld [vmem:[%s12680_s3 + $0x68] sm:$0xff]  }
 0x2dd   : > { %6052 = vst.msk [vmem:[#allocation4 + $0x68] sm:$0xff] %vm6047_vm11, %v6008_v53  ;;  %v6190_v7 = vld [vmem:[#allocation3 + $0xa0] sm:$0xff]  ;;  %v6681_v18 = vld [vmem:[#allocation4 + $0x78] sm:$0xff]  ;;  %v9861_v53 = vld [vmem:[%s12680_s3 + $0x70] sm:$0xff]  }
 0x2de   : > { %v5575_v10 = vadd.f32 %v12088_v46, %v5564_v13  ;;  %v5809_v33 = vadd.f32 %v12088_v46, %v5798_v19  ;;  %v5565_v61 = vmax.f32 %v5557_v44, %v5561_v41  ;;  %v5799_v57 = vmax.f32 %v5791_v38, %v5795_v50  ;;  %6154 = vst.msk [vmem:[#allocation4 + $0x68] sm:$0xff] %vm6144_vm12, %v11975_v11  ;;  %v9873_v13 = vld [vmem:[%s12680_s3 + $0xa0] sm:$0xff]   ;;  %v9860_v41 = vld [vmem:[%s12680_s3 + $0x28] sm:$0xff]  }
 0x2df   : > { %6234 = vrot.lane.b32.xlu0 %v6190_v7, %s9952_s26  ;;  %v6683_v58 = vld [vmem:[#allocation4 + $0x88] sm:$0xff]  ;;  %v6223_v11 = vpop.permute.xlu0 %6222 }
 0x2e0   : > { %v5576_v23 = vadd.f32 %v12088_v46, %v5565_v61  ;;  %v5810_v16 = vadd.f32 %v12088_v46, %v5799_v57  ;;  %v5781_v52 = vpop.f32.mrb[92].mxu1  ;;  %v6010_v49 = vpop.permute.xlu1 %6009  ;;  %v5579_v2 = vmax.f32 %v5575_v10, 0.0  ;;  %9369 = vmatmul.mubr.msk.bf16.vlgmr.msra.gmra.mrb[104].mxu1 %vm6467_vm15, %v6683_v58  ;;  %v5813_v38 = vmax.f32 %v5809_v33, 0.0  ;;  %6265 = vst.msk [vmem:[#allocation4 + $0xa0] sm:$0xff] %vm6258_vm14, %v6223_v11  ;;  %v9876_v10 = vld [vmem:[%s12680_s3 + $0xa8] sm:$0xff]   ;;  %v9862_v61 = vld [vmem:[%s12680_s3 + $0x30] sm:$0xff]  }
 0x2e1   : > { %6053 = vst.msk [vmem:[#allocation4 + $0x80] sm:$0xff] %vm6047_vm11, %v6010_v49  ;;  %v5783_v5 = vpop.f32.mrb[93].mxu1  ;;  %9183 = vmatpush3.bf16.msra.mxu1 %v9848_v0  ;;  %v9864_v49 = vld [vmem:[%s12680_s3 + $0x38] sm:$0xff]  }
 0x2e2   : > { %v5580_v44 = vmax.f32 %v5576_v23, 0.0  ;;  %v5814_v30 = vmax.f32 %v5810_v16, 0.0  ;;  %6156 = vst.msk [vmem:[#allocation4 + $0x80] sm:$0xff] %vm6144_vm12, %v12022_v48  ;;  %v5796_v60 = vmax.f32 %v5781_v52, %v5783_v5  ;;  %v5785_v20 = vpop.f32.mrb[94].mxu1  ;;  %9184 = vmatprep.subr.bf16.mxu1 %v9851_v40  ;;  %v9863_v40 = vld [vmem:[%s12680_s3 + $0x78] sm:$0xff]   ;;  %v9869_v5 = vld [vmem:[%s12680_s3] sm:$0xff]  }
 0x2e3   : > { %6124 = vrot.lane.b32.xlu0 %v6190_v7, %s9951_s25  ;;  %v5787_v29 = vpop.f32.mrb[95].mxu1  ;;  %v5898_v35 = vpop.permute.xlu0 %5897  ;;  %v9879_v52 = vld [vmem:[%s12680_s3 + $0xb0] ss:$0 sps:$4 sm:$0xff]  }
 0x2e4   : > { %v5582_v55 = vpack.c.bf16 %v5580_v44, %v5579_v2  ;;  %v5817_v9 = vpack.c.bf16 %v5814_v30, %v5813_v38  ;;  %v5800_v48 = vmax.f32 %v5792_v24, %v5796_v60  ;;  %v5797_v21 = vmax.f32 %v5785_v20, %v5787_v29  ;;  %v5902_v59 = vpop.permute.xlu1 %5901  ;;  %5947 = vst.msk [vmem:[#allocation4 + $0x90] sm:$0xff] %vm5933_vm8, %v5898_v35  ;;  %v9854_v24 = vld [vmem:[%s12680_s3 + $0x10] sm:$0xff]   ;;  %v9868_v2 = vld [vmem:[%s12680_s3 + $0x40] sm:$0xff]   ;;  %v9871_v44 = vld [vmem:[%s12680_s3 + $0x48] sm:$0xff]  }
 0x2e5   : > { %5951 = vst.msk [vmem:[#allocation4 + $0xc0] sm:$0xff] %vm5933_vm8, %v5902_v59  ;;  %v6679_v45 = vld [vmem:[#allocation4 + $0x68] sm:$0xff]  ;;  %9185 = vmatpush3.bf16.msra.mxu1 %v9852_v25  ;;  %v7292_v11 = vsel %vm6480_vm10, %v9879_v52, 0 }
 0x2e6   : > { %5952 = vst.msk [vmem:[#allocation4 + $0xc8] sm:$0xff] %vm5935_vm9, %v5902_v59  ;;  %v5811_v42 = vadd.f32 %v12088_v46, %v5800_v48  ;;  %v5801_v17 = vmax.f32 %v5793_v22, %v5797_v21  ;;  %5948 = vst.msk [vmem:[#allocation4 + $0x98] sm:$0xff] %vm5935_vm9, %v5898_v35  ;;  %6917 = vmatprep.mubr.bf16.mxu0 %v6679_v45  ;;  %9186 = vmatprep.subr.bf16.mxu1 %v9853_v36  ;;  %v9872_v25 = vld [vmem:[%s12680_s3 + $0x8] sm:$0xff]   ;;  %v9874_v36 = vld [vmem:[%s12680_s3 + $0x50] sm:$0xff]  }
 0x2e7   : > { %5584 = vst.msk [vmem:[#allocation3 + $0xa8] sm:$0xff] %vm3222_vm7, %v5582_v55  ;;  %5819 = vst.msk [vmem:[#allocation3 + $0xb0] sm:$0xff] %vm3222_vm7, %v5817_v9  ;;  %6918 = vmatmul.mubr.bf16.vlgmr.msra.gmra.mrb[112].mxu0 %v6678_v12  ;;  %v6012_v54 = vpop.permute.xlu0 %6011  ;;  %v6686_v22 = vld [vmem:[#allocation4 + $0xa0] sm:$0xff]  ;;  %v9875_v55 = vld [vmem:[%s12680_s3 + $0x10] sm:$0xff]  }
 0x2e8   : > { %v5812_v15 = vadd.f32 %v12088_v46, %v5801_v17  ;;  %v6016_v47 = vpop.permute.xlu1 %6015  ;;  %9377 = vmatpush3.bf16.msra.mxu0 %v11907_v39  ;;  %v5815_v6 = vmax.f32 %v5811_v42, 0.0  ;;  %6054 = vst.msk [vmem:[#allocation4 + $0x98] sm:$0xff] %vm6047_vm11, %v6012_v54  ;;  %9372 = vmatprep.mubr.msk.bf16.mxu1 %vm6467_vm15, %v6686_v22  ;;  %v9856_v39 = vld [vmem:[%s12680_s3 + $0x18] sm:$0xff]   ;;  %v9880_v35 = vld [vmem:[%s12680_s3 + $0x60] sm:$0xff]   ;;  %v9882_v17 = vld [vmem:[%s12680_s3 + $0x68] sm:$0xff]  }
 0x2e9   : > { %6056 = vst.msk [vmem:[#allocation4 + $0xc8] sm:$0xff] %vm6047_vm11, %v6016_v47  ;;  %v6682_v34 = vld [vmem:[#allocation4 + $0x80] sm:$0xff]  ;;  %9378 = vmatprep.subr.bf16.mxu0 %v9866_v26  ;;  %9187 = vmatpush3.bf16.msra.mxu1 %v9854_v24  ;;  %v9877_v48 = vld [vmem:[%s12680_s3 + $0x58] sm:$0xff]   ;;  %v9883_v12 = vld [vmem:[%s12680_s3 + $0x28] sm:$0xff]  }
 0x2ea   : > { %v5816_v14 = vmax.f32 %v5812_v15, 0.0  ;;  %6925 = vmatprep.mubr.bf16.mxu0 %v6682_v34  ;;  %6158 = vst.msk [vmem:[#allocation4 + $0x98] sm:$0xff] %vm6144_vm12, %v12107_v51  ;;  %9188 = vmatprep.subr.bf16.mxu1 %v9855_v4  ;;  %v9878_v59 = vld [vmem:[%s12680_s3 + $0x18] sm:$0xff]   ;;  %v9881_v45 = vld [vmem:[%s12680_s3 + $0x20] sm:$0xff]   ;;  %v9884_v24 = vld [vmem:[%s12680_s3 + $0x70] sm:$0xff]  }
 0x2eb   : > { %v6113_v8 = vpop.permute.xlu0 %6112  ;;  %v6684_v33 = vld [vmem:[#allocation4 + $0x90] sm:$0xff]  ;;  %v9886_v54 = vld [vmem:[%s12680_s3 + $0x78] sm:$0xff]  }
 0x2ec   : > { %v5818_v46 = vpack.c.bf16 %v5816_v14, %v5815_v6  ;;  %v12186_v1 = vpop.permute.xlu1 %6110  ;;  %9379 = vmatpush3.bf16.msra.mxu0 %v9866_v26  ;;  %6162 = vst.msk [vmem:[#allocation4 + $0xc8] sm:$0xff] %vm6144_vm12, %v6113_v8  ;;  %v7087_v30 = vld [vmem:[#allocation4 + $0xc0] sm:$0xff]  ;;  %v9885_v15 = vld [vmem:[%s12680_s3 + $0x30] sm:$0xff]   ;;  %v9887_v34 = vld [vmem:[%s12680_s3 + $0x38] sm:$0xff]  }
 0x2ed   : > { %6161 = vst.msk [vmem:[#allocation4 + $0xb8] sm:$0xff] %vm6146_vm13, %v12186_v1  ;;  %9380 = vmatprep.subr.bf16.mxu0 %v9867_v62  ;;  %6163 = vst.msk [vmem:[#allocation4 + $0xd0] sm:$0xff] %vm6146_vm13, %v6113_v8  ;;  %9189 = vmatpush3.bf16.msra.mxu1 %v9856_v39 }
 0x2ee   : > { %v6191_v27 = vld [vmem:[#allocation3 + $0xa8] sm:$0xff]  ;;  %v6192_v51 = vld [vmem:[#allocation3 + $0xb0] sm:$0xff]  ;;  %5820 = vst.msk [vmem:[#allocation3 + $0xb8] sm:$0xff] %vm3222_vm7, %v5818_v46  ;;  %9190 = vmatprep.subr.bf16.mxu1 %v9857_v3 }
 0x2ef   : > { %6236 = vrot.lane.b32.xlu1 %v6191_v27, %s9952_s26  ;;  %6238 = vrot.lane.b32.xlu0 %v6192_v51, %s9952_s26  ;;  %v5904_v37 = vpop.permute.xlu0 %5903  ;;  %v9890_v51 = vld [vmem:[%s12680_s3 + $0x90] sm:$0xff]  }
 0x2f0   : > { %6926 = vmatmul.mubr.bf16.gmra.mrb[116].mxu0 %v6681_v18  ;;  %v6225_v56 = vpop.permute.xlu1 %6224  ;;  %5953 = vst.msk [vmem:[#allocation4 + $0xd8] sm:$0xff] %vm5933_vm8, %v5904_v37 }
 0x2f1   : > { %9381 = vmatpush3.bf16.msra.mxu0 %v9867_v62  ;;  %6266 = vst.msk [vmem:[#allocation4 + $0xb8] sm:$0xff] %vm6258_vm14, %v6225_v56  ;;  %v6685_v19 = vld [vmem:[#allocation4 + $0x98] sm:$0xff]  ;;  %9191 = vmatpush3.bf16.msra.mxu1 %v9858_v32 }
 0x2f2   : > { %9382 = vmatprep.subr.bf16.mxu0 %v9870_v43  ;;  %5954 = vst.msk [vmem:[#allocation4 + $0xe0] sm:$0xff] %vm5935_vm9, %v5904_v37  ;;  %6933 = vmatprep.mubr.bf16.mxu0 %v6685_v19  ;;  %v9891_v37 = vld [vmem:[%s12680_s3 + $0x98] sm:$0xff]  }
 0x2f3   : > { %6126 = vrot.lane.b32.xlu1 %v6191_v27, %s9951_s25  ;;  %5915 = vrot.lane.b32.xlu0 %v11998_v28, %s9949_s20  ;;  %v5906_v7 = vpop.permute.xlu0 %5905  ;;  %v7088_v16 = vld [vmem:[#allocation4 + $0xc8] sm:$0xff] }
 0x2f4   : > { %v5900_v50 = vpop.permute.xlu1 %5899  ;;  %9192 = vmatprep.subr.bf16.mxu1 %v9859_v31  ;;  %5955 = vst.msk [vmem:[#allocation4 + $0xf0] sm:$0xff] %vm5933_vm8, %v5906_v7 }
 0x2f5   : > { %9383 = vmatpush3.bf16.msra.mxu0 %v9870_v43  ;;  %5949 = vst.msk [vmem:[#allocation4 + $0xa8] sm:$0xff] %vm5933_vm8, %v5900_v50  ;;  %v6193_v28 = vld [vmem:[#allocation3 + $0xb8] sm:$0xff]  ;;  %9193 = vmatpush3.bf16.msra.mxu1 %v9860_v41  ;;  %v9892_v41 = vld [vmem:[%s12680_s3 + $0xa0] sm:$0xff]  }
 0x2f6   : > { %5950 = vst.msk [vmem:[#allocation4 + $0xb0] sm:$0xff] %vm5935_vm9, %v5900_v50  ;;  %9384 = vmatprep.subr.bf16.mxu0 %v9873_v13  ;;  %5956 = vst.msk [vmem:[#allocation4 + $0xf8] sm:$0xff] %vm5935_vm9, %v5906_v7  ;;  %9194 = vmatprep.subr.bf16.mxu1 %v9861_v53 }
 0x2f7   : > { %6240 = vrot.lane.b32.xlu1 %v6193_v28, %s9952_s26  ;;  %v6018_v23 = vpop.permute.xlu0 %6017  ;;  %v7090_v21 = vld [vmem:[#allocation4 + $0xd8] sm:$0xff]  ;;  %v9893_v28 = vld [vmem:[%s12680_s3 + $0xa8] sm:$0xff]  }
 0x2f8   : > { %6934 = vmatmul.mubr.bf16.gmra.mrb[120].mxu0 %v6684_v33  ;;  %v6014_v57 = vpop.permute.xlu1 %6013  ;;  %v6689_v0 = vld [vmem:[#allocation4 + $0xb8] sm:$0xff]  ;;  %6057 = vst.msk [vmem:[#allocation4 + $0xe0] sm:$0xff] %vm6047_vm11, %v6018_v23  ;;  %v9894_v33 = vld [vmem:[%s12680_s3 + $0xb0] ss:$0 sps:$4 sm:$0xff]  }
 0x2f9   : > { %9385 = vmatpush3.bf16.msra.mxu0 %v9873_v13  ;;  %6055 = vst.msk [vmem:[#allocation4 + $0xb0] sm:$0xff] %vm6047_vm11, %v6014_v57  ;;  %9373 = vmatmul.mubr.msk.bf16.gmra.mrb[108].mxu1 %vm6467_vm15, %v6689_v0 }
 0x2fa   : > { %9386 = vmatprep.subr.bf16.mxu0 %v9876_v10  ;;  %6160 = vst.msk [vmem:[#allocation4 + $0xb0] sm:$0xff] %vm6144_vm12, %v12186_v1  ;;  %7326 = vmatprep.mubr.bf16.mxu1 %v7088_v16  ;;  %v9889_v1 = vld [vmem:[%s12680_s3 + $0x88] sm:$0xff]  }
 0x2fb   : > { %6029 = vrot.lane.b32.xlu1 %v12061_v63, %s9950_s28  ;;  %9195 = vmatpush3.bf16.msra.mxu1 %v9862_v61  ;;  %v12258_v63 = vld [vmem:[%s12680_s3 + $0x80] sm:$0xff]   ;;  %v7093_v22 = vld [vmem:[#allocation4 + $0xf0] sm:$0xff] }
 0x2fc   : > { %v6020_v58 = vpop.permute.xlu1 %6019  ;;  %9196 = vmatprep.subr.bf16.mxu1 %v9863_v40  ;;  %v6687_v20 = vld [vmem:[#allocation4 + $0xa8] sm:$0xff] }
 0x2fd   : > { %9387 = vmatpush3.bf16.msra.mxu0 %v9876_v10  ;;  %6058 = vst.msk [vmem:[#allocation4 + $0xf8] sm:$0xff] %vm6047_vm11, %v6020_v58 }
 0x2fe   : > { %9462 = vmatprep.subr.msk.bf16.mxu0 %vm6480_vm10, %v9879_v52  ;;  %v7692_v52 = vsel %vm6480_vm10, %v9894_v33, 0 }
 0x2ff   : > { %9197 = vmatpush3.bf16.msra.mxu1 %v9864_v49 }
 0x300   : > { %v6115_v38 = vpop.permute.xlu1 %6114  ;;  %9233 = vmatprep.subr.bf16.mxu1 %v9868_v2 }
 0x301   : > { %9389 = vmatpush3.bf16.msra.mxu0 %v7292_v11  ;;  %6164 = vst.msk [vmem:[#allocation4 + $0xe0] sm:$0xff] %vm6144_vm12, %v6115_v38  ;;  %v6688_v60 = vld [vmem:[#allocation4 + $0xb0] sm:$0xff] }
 0x302   : > { %6165 = vst.msk [vmem:[#allocation4 + $0xe8] sm:$0xff] %vm6146_vm13, %v6115_v38  ;;  %9398 = vmatprep.subr.bf16.mxu0 %v12258_v63  ;;  %7327 = vmatmul.mubr.bf16.vlgmr.msra.gmra.mrb[112].mxu1 %v7087_v30 }
 0x303   : > { %6941 = vmatprep.mubr.bf16.mxu0 %v6688_v60  ;;  %9234 = vmatpush3.bf16.msra.mxu1 %v9869_v5 }
 0x304   : > { %6942 = vmatmul.mubr.bf16.gmra.mrb[124].mxu0 %v6687_v20  ;;  %v5908_v29 = vpop.permute.xlu1 %5907  ;;  %9235 = vmatprep.subr.bf16.mxu1 %v9871_v44 }
 0x305   : > { %5957 = vst.msk [vmem:[#allocation4 + $0x108] sm:$0xff] %vm5933_vm8, %v5908_v29 }
 0x306   : > { %5958 = vst.msk [vmem:[#allocation4 + $0x110] sm:$0xff] %vm5935_vm9, %v5908_v29 }
 0x307   : > { %9236 = vmatpush3.bf16.msra.mxu1 %v9872_v25 }
 0x308   : > { %v7091_v9 = vld [vmem:[#allocation4 + $0xe0] sm:$0xff]  ;;  %9237 = vmatprep.subr.bf16.mxu1 %v9874_v36 }
 0x309   : > { %7334 = vmatprep.mubr.bf16.mxu1 %v7091_v9 }
 0x30a   : > { %7335 = vmatmul.mubr.bf16.gmra.mrb[116].mxu1 %v7090_v21 }
 0x30b   : > { %9238 = vmatpush3.bf16.msra.mxu1 %v9875_v55 }
 0x30c   : > { %9239 = vmatprep.subr.bf16.mxu1 %v9877_v48  ;;  %v7096_v31 = vld [vmem:[#allocation4 + $0x108] sm:$0xff] }
 0x30f   : > { %9240 = vmatpush3.bf16.msra.mxu1 %v9878_v59 }
 0x310   : > { %9241 = vmatprep.subr.bf16.mxu1 %v9880_v35 }
 0x311   : > { %v6117_v26 = vpop.permute.xlu1 %6116  ;;  %v6227_v42 = vpop.permute.xlu0 %6226 }
 0x312   : > { %6166 = vst.msk [vmem:[#allocation4 + $0xf8] sm:$0xff] %vm6144_vm12, %v6117_v26 }
 0x313   : > { %6167 = vst.msk [vmem:[#allocation4 + $0x100] sm:$0xff] %vm6146_vm13, %v6117_v26  ;;  %9242 = vmatpush3.bf16.msra.mxu1 %v9881_v45 }
 0x314   : > { %6267 = vst.msk [vmem:[#allocation4 + $0xd0] sm:$0xff] %vm6258_vm14, %v6227_v42  ;;  %9243 = vmatprep.subr.bf16.mxu1 %v9882_v17 }
 0x315   : > { %v6024_v62 = vpop.permute.xlu1 %6023 }
 0x317   : > { %9244 = vmatpush3.bf16.msra.mxu1 %v9883_v12 }
 0x318   : > { %9245 = vmatprep.subr.bf16.mxu1 %v9884_v24 }
 0x319   : > { %v7094_v47 = vld [vmem:[#allocation4 + $0xf8] sm:$0xff] }
 0x31a   : > { %7342 = vmatprep.mubr.bf16.mxu1 %v7094_v47 }
 0x31b   : > { %v7089_v4 = vld [vmem:[#allocation4 + $0xd0] sm:$0xff]  ;;  %7343 = vmatmul.mubr.bf16.gmra.mrb[120].mxu1 %v7093_v22 }
 0x31c   : > { %9390 = vmatprep.mubr.msk.bf16.mxu0 %vm6467_vm15, %v7089_v4  ;;  %9246 = vmatpush3.bf16.msra.mxu1 %v9885_v15 }
 0x31d   : > { %9247 = vmatprep.subr.bf16.mxu1 %v9886_v54 }
 0x320   : > { %9248 = vmatpush3.bf16.msra.mxu1 %v9887_v34  ;;  %v6119_v6 = vpop.permute.xlu1 %6118  ;;  %v6229_v14 = vpop.permute.xlu0 %6228 }
 0x321   : > { %6169 = vst.msk [vmem:[#allocation4 + $0x118] sm:$0xff] %vm6146_vm13, %v6119_v6 }
 0x322   : > { %6268 = vst.msk [vmem:[#allocation4 + $0xe8] sm:$0xff] %vm6258_vm14, %v6229_v14 }
 0x324   : > { %v6231_v39 = vpop.permute.xlu1 %6230  ;;  %v6022_v46 = vpop.permute.xlu0 %6021 }
 0x325   : > { %6269 = vst.msk [vmem:[#allocation4 + $0x100] sm:$0xff] %vm6258_vm14, %v6231_v39 }
 0x326   : > { %6059 = vst.msk [vmem:[#allocation4 + $0x110] sm:$0xff] %vm6047_vm11, %v6022_v46 }
 0x327   : > { %6168 = vst.msk [vmem:[#allocation4 + $0x110] sm:$0xff] %vm6144_vm12, %v6119_v6 }
 0x328   : > { %v5912_v3 = vpop.permute.xlu1 %5911  ;;  %v5910_v8 = vpop.permute.xlu0 %5909 }
 0x329   : > { %v7092_v27 = vld [vmem:[#allocation4 + $0xe8] sm:$0xff]  ;;  %5961 = vst.msk [vmem:[#allocation4 + $0x138] sm:$0xff] %vm5933_vm8, %v5912_v3  ;;  %5959 = vst.msk [vmem:[#allocation4 + $0x120] sm:$0xff] %vm5933_vm8, %v5910_v8 }
 0x32a   : > { %5962 = vst.msk [vmem:[#allocation4 + $0x140] sm:$0xff] %vm5935_vm9, %v5912_v3  ;;  %5960 = vst.msk [vmem:[#allocation4 + $0x128] sm:$0xff] %vm5935_vm9, %v5910_v8  ;;  %9391 = vmatmul.mubr.msk.bf16.vlgmr.msra.gmra.mrb[128].mxu0 %vm6467_vm15, %v7092_v27 }
 0x32b   : > { %6060 = vst.msk [vmem:[#allocation4 + $0x128] sm:$0xff] %vm6047_vm11, %v6024_v62  ;;  %9399 = vmatpush3.bf16.msra.mxu0 %v12258_v63 }
 0x32c   : > { %9400 = vmatprep.subr.bf16.mxu0 %v9889_v1  ;;  %v6028_v43 = vpop.permute.xlu1 %6027  ;;  %v7095_v18 = vld [vmem:[#allocation4 + $0x100] sm:$0xff] }
 0x32d   : > { %v6121_v32 = vpop.permute.xlu0 %6120  ;;  %9394 = vmatprep.mubr.msk.bf16.mxu0 %vm6467_vm15, %v7095_v18 }
 0x32e   : > { %v7097_v56 = vld [vmem:[#allocation4 + $0x110] sm:$0xff]  ;;  %6170 = vst.msk [vmem:[#allocation4 + $0x128] sm:$0xff] %vm6144_vm12, %v6121_v32 }
 0x32f   : > { %6171 = vst.msk [vmem:[#allocation4 + $0x130] sm:$0xff] %vm6146_vm13, %v6121_v32  ;;  %7350 = vmatprep.mubr.bf16.mxu1 %v7097_v56  ;;  %9401 = vmatpush3.bf16.msra.mxu0 %v9889_v1 }
 0x330   : > { %7351 = vmatmul.mubr.bf16.gmra.mrb[124].mxu1 %v7096_v31  ;;  %9402 = vmatprep.subr.bf16.mxu0 %v9890_v51  ;;  %v6123_v13 = vpop.permute.xlu1 %6122  ;;  %v7487_v7 = vld [vmem:[#allocation4 + $0x120] sm:$0xff]  ;;  %v7490_v2 = vld [vmem:[#allocation4 + $0x138] sm:$0xff] }
 0x331   : > { %6173 = vst.msk [vmem:[#allocation4 + $0x148] sm:$0xff] %vm6146_vm13, %v6123_v13  ;;  %v5914_v19 = vpop.permute.xlu0 %5913 }
 0x332   : > { %5963 = vst.msk [vmem:[#allocation4 + $0x150] sm:$0xff] %vm5933_vm8, %v5914_v19 }
 0x333   : > { %5964 = vst.msk [vmem:[#allocation4 + $0x158] sm:$0xff] %vm5935_vm9, %v5914_v19  ;;  %9403 = vmatpush3.bf16.msra.mxu0 %v9890_v51 }
 0x334   : > { %6062 = vst.msk [vmem:[#allocation4 + $0x158] sm:$0xff] %vm6047_vm11, %v6028_v43  ;;  %9404 = vmatprep.subr.bf16.mxu0 %v9891_v37 }
 0x335   : > { %v6233_v50 = vpop.permute.xlu0 %6232  ;;  %v7488_v53 = vld [vmem:[#allocation4 + $0x128] sm:$0xff] }
 0x336   : > { %6270 = vst.msk [vmem:[#allocation4 + $0x118] sm:$0xff] %vm6258_vm14, %v6233_v50  ;;  %7726 = vmatprep.mubr.bf16.mxu1 %v7488_v53 }
 0x337   : > { %9405 = vmatpush3.bf16.msra.mxu0 %v9891_v37 }
 0x338   : > { %7727 = vmatmul.mubr.bf16.vlgmr.msra.gmra.mrb[128].mxu1 %v7487_v7  ;;  %9406 = vmatprep.subr.bf16.mxu0 %v9892_v41 }
 0x339   : > { %v6026_v10 = vpop.permute.xlu0 %6025  ;;  %v7493_v44 = vld [vmem:[#allocation4 + $0x150] sm:$0xff] }
 0x33a   : > { %6061 = vst.msk [vmem:[#allocation4 + $0x140] sm:$0xff] %vm6047_vm11, %v6026_v10 }
 0x33b   : > { %9407 = vmatpush3.bf16.msra.mxu0 %v9892_v41  ;;  %6172 = vst.msk [vmem:[#allocation4 + $0x140] sm:$0xff] %vm6144_vm12, %v6123_v13 }
 0x33c   : > { %9408 = vmatprep.subr.bf16.mxu0 %v9893_v28  ;;  %v9096_v61 = vpop.f32.mrb[96].mxu0 }
 0x33d   : > { %v7098_v57 = vld [vmem:[#allocation4 + $0x118] sm:$0xff]  ;;  %v9097_v0 = vpop.f32.mrb[97].mxu0 }
 0x33e   : > { %9395 = vmatmul.mubr.msk.bf16.gmra.mrb[132].mxu0 %vm6467_vm15, %v7098_v57  ;;  %v9098_v40 = vadd.f32 %v9097_v0, %v9096_v61  ;;  %v9099_v23 = vpop.f32.mrb[98].mxu0 }
 0x33f   : > { %9409 = vmatpush3.bf16.msra.mxu0 %v9893_v28  ;;  %v9100_v16 = vpop.f32.mrb[99].mxu0 }
 0x340   : > { %9463 = vmatprep.subr.msk.bf16.mxu0 %vm6480_vm10, %v9894_v33  ;;  %v9101_v49 = vadd.f32 %v9100_v16, %v9099_v23 }
 0x342   : > { %v7491_v58 = vld [vmem:[#allocation4 + $0x140] sm:$0xff] }
 0x343   : > { %7734 = vmatprep.mubr.bf16.mxu1 %v7491_v58  ;;  %9411 = vmatpush3.bf16.msra.mxu0 %v7692_v52 }
 0x344   : > { %7735 = vmatmul.mubr.bf16.gmra.mrb[132].mxu1 %v7490_v2 }
 0x351   : > { %v6235_v11 = vpop.permute.xlu0 %6234 }
 0x352   : > { %6271 = vst.msk [vmem:[#allocation4 + $0x130] sm:$0xff] %vm6258_vm14, %v6235_v11 }
 0x355   : > { %v6125_v63 = vpop.permute.xlu0 %6124 }
 0x356   : > { %6174 = vst.msk [vmem:[#allocation4 + $0x158] sm:$0xff] %vm6144_vm12, %v6125_v63 }
 0x357   : > { %6175 = vst.msk [vmem:[#allocation4 + $0x160] sm:$0xff] %vm6146_vm13, %v6125_v63 }
 0x359   : > { %v7489_v5 = vld [vmem:[#allocation4 + $0x130] sm:$0xff] }
 0x35a   : > { %9412 = vmatprep.mubr.msk.bf16.mxu0 %vm6467_vm15, %v7489_v5 }
 0x35d   : > { %v7494_v38 = vld [vmem:[#allocation4 + $0x158] sm:$0xff] }
 0x35e   : > { %7742 = vmatprep.mubr.bf16.mxu1 %v7494_v38 }
 0x35f   : > { %7743 = vmatmul.mubr.bf16.gmra.mrb[136].mxu1 %v7493_v44 }
 0x361   : > { %v6237_v30 = vpop.permute.xlu1 %6236  ;;  %v6239_v60 = vpop.permute.xlu0 %6238 }
 0x362   : > { %6272 = vst.msk [vmem:[#allocation4 + $0x148] sm:$0xff] %vm6258_vm14, %v6237_v30  ;;  %6273 = vst.msk [vmem:[#allocation4 + $0x160] sm:$0xff] %vm6258_vm14, %v6239_v60 }
 0x365   : > { %v6127_v20 = vpop.permute.xlu1 %6126  ;;  %v5916_v25 = vpop.permute.xlu0 %5915 }
 0x366   : > { %6177 = vst.msk [vmem:[#allocation4 + $0x178] sm:$0xff] %vm6146_vm13, %v6127_v20 }
 0x367   : > { %5965 = vst.msk [vmem:[#allocation4 + $0x168] sm:$0xff] %vm5933_vm8, %v5916_v25 }
 0x368   : > { %5966 = vst.msk [vmem:[#allocation4 + $0x170] sm:$0xff] %vm5935_vm9, %v5916_v25 }
 0x369   : > { %v6241_v29 = vpop.permute.xlu1 %6240  ;;  %v7492_v36 = vld [vmem:[#allocation4 + $0x148] sm:$0xff]  ;;  %v7495_v55 = vld [vmem:[#allocation4 + $0x160] sm:$0xff] }
 0x36a   : > { %6274 = vst.msk [vmem:[#allocation4 + $0x178] sm:$0xff] %vm6258_vm14, %v6241_v29  ;;  %9413 = vmatmul.mubr.msk.bf16.vlgmr.msra.gmra.mrb[136].mxu0 %vm6467_vm15, %v7492_v36 }
 0x36b   : > { %9416 = vmatprep.mubr.msk.bf16.mxu0 %vm6467_vm15, %v7495_v55 }
 0x36d   : > { %v6030_v9 = vpop.permute.xlu1 %6029 }
 0x36e   : > { %6063 = vst.msk [vmem:[#allocation4 + $0x170] sm:$0xff] %vm6047_vm11, %v6030_v9  ;;  %v7496_v59 = vld [vmem:[#allocation4 + $0x168] sm:$0xff] }
 0x36f   : > { %6176 = vst.msk [vmem:[#allocation4 + $0x170] sm:$0xff] %vm6144_vm12, %v6127_v20 }
 0x371   : > { %v7498_v48 = vld [vmem:[#allocation4 + $0x178] sm:$0xff] }
 0x372   : > { %9417 = vmatmul.mubr.msk.bf16.gmra.mrb[140].mxu0 %vm6467_vm15, %v7498_v48 }
 0x376   : > { %v7497_v21 = vld [vmem:[#allocation4 + $0x170] sm:$0xff] }
 0x377   : > { %7750 = vmatprep.mubr.bf16.mxu1 %v7497_v21 }
 0x378   : > { %7751 = vmatmul.mubr.bf16.gmra.mrb[140].mxu1 %v7496_v59 }
 0x379   : > { %v9348_v35 = vpop.f32.mrb[96].mxu1 }
 0x37a   : > { %v6583_v45 = vpop.f32.mrb[97].mxu1 }
 0x37b   : > { %v12372_v26 = vadd.f32 %v9098_v40, %v6583_v45  ;;  %v9349_v42 = vpop.f32.mrb[98].mxu1 }
 0x37c   : > { %v6586_v17 = vpop.f32.mrb[99].mxu1 }
 0x37d   : > { %v12374_v12 = vadd.f32 %v9101_v49, %v6586_v17 }
 0x37f   : > { %v9102_v24 = vpop.f32.mrb[100].mxu0 }
 0x380   : > { %v9103_v15 = vpop.f32.mrb[101].mxu0 }
 0x381   : > { %v9104_v47 = vadd.f32 %v9103_v15, %v9102_v24  ;;  %v9105_v4 = vpop.f32.mrb[102].mxu0 }
 0x382   : > { %v9106_v54 = vpop.f32.mrb[103].mxu0 }
 0x383   : > { %v12376_v22 = vadd.f32 %v9348_v35, %v9104_v47  ;;  %v9107_v34 = vadd.f32 %v9106_v54, %v9105_v4 }
 0x385   : > { %v12378_v62 = vadd.f32 %v9349_v42, %v9107_v34 }
 0x387   : > { %v9108_v6 = vpop.f32.mrb[104].mxu0 }
 0x388   : > { %v9109_v14 = vpop.f32.mrb[105].mxu0 }
 0x389   : > { %v9110_v39 = vadd.f32 %v9109_v14, %v9108_v6  ;;  %v9111_v46 = vpop.f32.mrb[106].mxu0 }
 0x38a   : > { %v9112_v1 = vpop.f32.mrb[107].mxu0 }
 0x38b   : > { %v9113_v3 = vadd.f32 %v9112_v1, %v9111_v46 }
 0x38d   : > { %v9352_v8 = vpop.f32.mrb[100].mxu1 }
 0x38e   : > { %v6599_v27 = vpop.f32.mrb[101].mxu1 }
 0x38f   : > { %v9114_v51 = vpop.f32.mrb[108].mxu0  ;;  %v12380_v43 = vadd.f32 %v9110_v39, %v6599_v27  ;;  %v9353_v18 = vpop.f32.mrb[102].mxu1 }
 0x390   : > { %v9115_v32 = vpop.f32.mrb[109].mxu0  ;;  %v6602_v31 = vpop.f32.mrb[103].mxu1 }
 0x391   : > { %v9116_v56 = vadd.f32 %v9115_v32, %v9114_v51  ;;  %v9117_v37 = vpop.f32.mrb[110].mxu0  ;;  %v12382_v13 = vadd.f32 %v9113_v3, %v6602_v31 }
 0x392   : > { %v9118_v19 = vpop.f32.mrb[111].mxu0 }
 0x393   : > { %v12384_v41 = vadd.f32 %v9352_v8, %v9116_v56  ;;  %v9119_v50 = vadd.f32 %v9118_v19, %v9117_v37 }
 0x395   : > { %v12386_v53 = vadd.f32 %v9353_v18, %v9119_v50 }
 0x3b3   : > { %v9370_v7 = vpop.f32.mrb[104].mxu1 }
 0x3b4   : > { %v6984_v28 = vpop.f32.mrb[105].mxu1 }
 0x3b5   : > { %v9371_v10 = vpop.f32.mrb[106].mxu1 }
 0x3b6   : > { %v6987_v33 = vpop.f32.mrb[107].mxu1 }
 0x3ba   : > { %v9147_v61 = vpop.f32.mrb[112].mxu0 }
 0x3bb   : > { %v9148_v57 = vpop.f32.mrb[113].mxu0 }
 0x3bc   : > { %v9149_v0 = vadd.f32 %v9148_v57, %v9147_v61  ;;  %v9150_v40 = vpop.f32.mrb[114].mxu0 }
 0x3bd   : > { %v9151_v23 = vpop.f32.mrb[115].mxu0 }
 0x3be   : > { %v12388_v16 = vadd.f32 %v9149_v0, %v6984_v28  ;;  %v9152_v52 = vadd.f32 %v9151_v23, %v9150_v40 }
 0x3c0   : > { %v12390_v49 = vadd.f32 %v9152_v52, %v6987_v33  ;;  %7019 = vrot.lane.b32.xlu0 %v12388_v16, %s9953_s29 }
 0x3c2   : > { %7021 = vrot.lane.b32.xlu1 %v12390_v49, %s9953_s29 }
 0x3c3   : > { %v9153_v58 = vpop.f32.mrb[116].mxu0 }
 0x3c4   : > { %v9154_v2 = vpop.f32.mrb[117].mxu0 }
 0x3c5   : > { %v9155_v11 = vadd.f32 %v9154_v2, %v9153_v58  ;;  %v9156_v63 = vpop.f32.mrb[118].mxu0 }
 0x3c6   : > { %v9157_v5 = vpop.f32.mrb[119].mxu0 }
 0x3c7   : > { %v12396_v38 = vadd.f32 %v9370_v7, %v9155_v11  ;;  %v9158_v44 = vadd.f32 %v9157_v5, %v9156_v63 }
 0x3c9   : > { %v12398_v30 = vadd.f32 %v9371_v10, %v9158_v44 }
 0x3cb   : > { %v9159_v60 = vpop.f32.mrb[120].mxu0 }
 0x3cc   : > { %v9160_v20 = vpop.f32.mrb[121].mxu0  ;;  %v9374_v36 = vpop.f32.mrb[108].mxu1 }
 0x3cd   : > { %v9161_v25 = vadd.f32 %v9160_v20, %v9159_v60  ;;  %v9162_v29 = vpop.f32.mrb[122].mxu0  ;;  %v7000_v9 = vpop.f32.mrb[109].mxu1 }
 0x3ce   : > { %v9163_v55 = vpop.f32.mrb[123].mxu0  ;;  %v9375_v59 = vpop.f32.mrb[110].mxu1 }
 0x3cf   : > { %v9164_v48 = vadd.f32 %v9163_v55, %v9162_v29  ;;  %v12400_v21 = vadd.f32 %v9161_v25, %v7000_v9  ;;  %v7003_v35 = vpop.f32.mrb[111].mxu1 }
 0x3d1   : > { %v12402_v45 = vadd.f32 %v9164_v48, %v7003_v35  ;;  %7039 = vrot.lane.b32.xlu0 %v12400_v21, %s9953_s29 }
 0x3d3   : > { %7041 = vrot.lane.b32.xlu1 %v12402_v45, %s9953_s29 }
 0x3d5   : > { %v9198_v42 = vpop.f32.mrb[112].mxu1 }
 0x3d6   : > { %v9199_v17 = vpop.f32.mrb[113].mxu1 }
 0x3d7   : > { %v9165_v24 = vpop.f32.mrb[124].mxu0  ;;  %v9200_v15 = vadd.f32 %v9199_v17, %v9198_v42  ;;  %v9201_v47 = vpop.f32.mrb[114].mxu1 }
 0x3d8   : > { %v9166_v4 = vpop.f32.mrb[125].mxu0  ;;  %v9202_v34 = vpop.f32.mrb[115].mxu1 }
 0x3d9   : > { %v9167_v54 = vadd.f32 %v9166_v4, %v9165_v24  ;;  %v9168_v6 = vpop.f32.mrb[126].mxu0  ;;  %v9203_v14 = vadd.f32 %v9202_v34, %v9201_v47 }
 0x3da   : > { %v9169_v39 = vpop.f32.mrb[127].mxu0 }
 0x3db   : > { %v12408_v46 = vadd.f32 %v9374_v36, %v9167_v54  ;;  %v9170_v1 = vadd.f32 %v9169_v39, %v9168_v6 }
 0x3dd   : > { %v12410_v3 = vadd.f32 %v9375_v59, %v9170_v1  ;;  %v9204_v8 = vpop.f32.mrb[116].mxu1 }
 0x3de   : > { %v9205_v27 = vpop.f32.mrb[117].mxu1 }
 0x3df   : > { %v9206_v51 = vadd.f32 %v9205_v27, %v9204_v8  ;;  %v9207_v18 = vpop.f32.mrb[118].mxu1 }
 0x3e0   : > { %v9208_v32 = vpop.f32.mrb[119].mxu1 }
 0x3e1   : > { %v9209_v56 = vadd.f32 %v9208_v32, %v9207_v18 }
 0x3ee   : > { %v9210_v31 = vpop.f32.mrb[120].mxu1 }
 0x3ef   : > { %v9211_v37 = vpop.f32.mrb[121].mxu1 }
 0x3f0   : > { %v9212_v19 = vadd.f32 %v9211_v37, %v9210_v31  ;;  %v9213_v50 = vpop.f32.mrb[122].mxu1 }
 0x3f1   : > { %v9214_v7 = vpop.f32.mrb[123].mxu1 }
 0x3f2   : > { %v9215_v28 = vadd.f32 %v9214_v7, %v9213_v50 }
 0x3fd   : > { %v9392_v10 = vpop.f32.mrb[128].mxu0 }
 0x3fe   : > { %v12412_v33 = vadd.f32 %v9392_v10, %v9206_v51  ;;  %v7393_v61 = vpop.f32.mrb[129].mxu0 }
 0x3ff   : > { %v12414_v57 = vadd.f32 %v9200_v15, %v7393_v61  ;;  %v9393_v0 = vpop.f32.mrb[130].mxu0 }
 0x400   : > { %v12416_v40 = vadd.f32 %v9393_v0, %v9209_v56  ;;  %v7396_v23 = vpop.f32.mrb[131].mxu0 }
 0x401   : > { %v12418_v52 = vadd.f32 %v9203_v14, %v7396_v23 }
 0x403   : > { %v9216_v58 = vpop.f32.mrb[124].mxu1 }
 0x404   : > { %v9217_v2 = vpop.f32.mrb[125].mxu1 }
 0x405   : > { %v9218_v11 = vadd.f32 %v9217_v2, %v9216_v58  ;;  %v9219_v63 = vpop.f32.mrb[126].mxu1 }
 0x406   : > { %v9220_v5 = vpop.f32.mrb[127].mxu1 }
 0x407   : > { %v9221_v44 = vadd.f32 %v9220_v5, %v9219_v63 }
 0x40b   : > { %v9249_v60 = vpop.f32.mrb[128].mxu1 }
 0x40c   : > { %v9250_v20 = vpop.f32.mrb[129].mxu1 }
 0x40d   : > { %v9251_v25 = vadd.f32 %v9250_v20, %v9249_v60  ;;  %v9252_v29 = vpop.f32.mrb[130].mxu1 }
 0x40e   : > { %v9253_v36 = vpop.f32.mrb[131].mxu1 }
 0x40f   : > { %v9254_v55 = vadd.f32 %v9253_v36, %v9252_v29 }
 0x411   : > { %v9396_v9 = vpop.f32.mrb[132].mxu0 }
 0x412   : > { %v12420_v48 = vadd.f32 %v9396_v9, %v9218_v11  ;;  %v7409_v59 = vpop.f32.mrb[133].mxu0 }
 0x413   : > { %v12422_v35 = vadd.f32 %v9212_v19, %v7409_v59  ;;  %v9397_v42 = vpop.f32.mrb[134].mxu0 }
 0x414   : > { %v12424_v17 = vadd.f32 %v9397_v42, %v9221_v44  ;;  %v7412_v24 = vpop.f32.mrb[135].mxu0 }
 0x415   : > { %v12426_v15 = vadd.f32 %v9215_v28, %v7412_v24 }
 0x417   : > { %v9255_v47 = vpop.f32.mrb[132].mxu1 }
 0x418   : > { %v9256_v4 = vpop.f32.mrb[133].mxu1 }
 0x419   : > { %v9257_v54 = vadd.f32 %v9256_v4, %v9255_v47  ;;  %v9258_v34 = vpop.f32.mrb[134].mxu1 }
 0x41a   : > { %v9259_v6 = vpop.f32.mrb[135].mxu1 }
 0x41b   : > { %v9260_v14 = vadd.f32 %v9259_v6, %v9258_v34 }
 0x432   : > { %v9261_v39 = vpop.f32.mrb[136].mxu1 }
 0x433   : > { %v9262_v1 = vpop.f32.mrb[137].mxu1 }
 0x434   : > { %v9263_v8 = vadd.f32 %v9262_v1, %v9261_v39  ;;  %v9264_v27 = vpop.f32.mrb[138].mxu1  ;;  %v7022_v36 = vpop.permute.xlu1 %7021  ;;  %v9898_v39 = vld [vmem:[%s12682_s5 + $0x8] sm:$0xff]   ;;  %v9899_v1 = vld [vmem:[%s12682_s5 + $0x50] sm:$0xff]  }
 0x435   : > { %v9265_v51 = vpop.f32.mrb[139].mxu1  ;;  %v7032_v24 = vmax.f32 %v12390_v49, %v7022_v36  ;;  %v9895_v49 = vld [vmem:[%s12682_s5 + $0x40] sm:$0xff]  }
 0x436   : > { %v9266_v18 = vadd.f32 %v9265_v51, %v9264_v27  ;;  %9284 = vmatprep.subr.bf16.mxu0 %v9895_v49  ;;  %v9900_v51 = vld [vmem:[%s12682_s5 + $0x10] sm:$0xff]  }
 0x43d   : > { %v9414_v32 = vpop.f32.mrb[136].mxu0 }
 0x43e   : > { %v12428_v56 = vadd.f32 %v9414_v32, %v9257_v54  ;;  %v7793_v31 = vpop.f32.mrb[137].mxu0 }
 0x43f   : > { %v12430_v37 = vadd.f32 %v9251_v25, %v7793_v31  ;;  %v9415_v19 = vpop.f32.mrb[138].mxu0  ;;  %v9902_v31 = vld [vmem:[%s12682_s5 + $0x18] sm:$0xff]  }
 0x440   : > { %v12432_v50 = vadd.f32 %v9415_v19, %v9260_v14  ;;  %v7796_v7 = vpop.f32.mrb[139].mxu0  ;;  %v9903_v19 = vld [vmem:[%s12682_s5 + $0x60] sm:$0xff]  }
 0x441   : > { %v12434_v28 = vadd.f32 %v9254_v55, %v7796_v7  ;;  %7828 = vrot.lane.b32.xlu0 %v12430_v37, %s9953_s29  ;;  %v7020_v55 = vpop.permute.xlu0 %7019  ;;  %v9904_v7 = vld [vmem:[%s12682_s5 + $0x20] sm:$0xff]  }
 0x442   : > { %v7031_v4 = vmax.f32 %v12388_v16, %v7020_v55  ;;  %v9896_v16 = vld [vmem:[%s12682_s5] sm:$0xff]  }
 0x443   : > { %7830 = vrot.lane.b32.xlu1 %v12434_v28, %s9953_s29  ;;  %9285 = vmatpush3.bf16.msra.mxu0 %v9896_v16 }
 0x445   : > { %v9418_v10 = vpop.f32.mrb[140].mxu0  ;;  %7832 = vrot.lane.b32.xlu0 %v12428_v56, %s9953_s29  ;;  %v7042_v9 = vpop.permute.xlu1 %7041 }
 0x446   : > { %v7809_v61 = vpop.f32.mrb[141].mxu0  ;;  %v7040_v59 = vpop.permute.xlu0 %7039  ;;  %v7052_v42 = vmax.f32 %v12402_v45, %v7042_v9  ;;  %v12497_v45 = vld [vmem:[%s12681_s4] ss:$0 sm:$0xff] }
 0x447   : > { %v12442_v0 = vadd.f32 %v9263_v8, %v7809_v61  ;;  %v9419_v23 = vpop.f32.mrb[142].mxu0  ;;  %7834 = vrot.lane.b32.xlu1 %v12432_v50, %s9953_s29  ;;  %v7051_v47 = vmax.f32 %v12400_v21, %v7040_v59  ;;  %v9897_v21 = vld [vmem:[%s12682_s5 + $0x48] sm:$0xff]  }
 0x448   : > { %v7812_v58 = vpop.f32.mrb[143].mxu0  ;;  %v7056_v54 = vmax.f32 %v7032_v24, %v7052_v42  ;;  %9286 = vmatprep.subr.bf16.mxu0 %v9897_v21  ;;  %v9906_v61 = vld [vmem:[%s12682_s5 + $0x28] sm:$0xff]  }
 0x449   : > { %v12446_v2 = vadd.f32 %v9266_v18, %v7812_v58  ;;  %7848 = vrot.lane.b32.xlu0 %v12442_v0, %s9953_s29  ;;  %v7055_v34 = vmax.f32 %v7031_v4, %v7051_v47  ;;  %9287 = vmatpush3.bf16.msra.mxu0 %v9898_v39  ;;  %v9901_v18 = vld [vmem:[%s12682_s5 + $0x58] sm:$0xff]  }
 0x44a   : > { %v7067_v6 = vadd.f32 %v12497_v45, %v7056_v54  ;;  %9288 = vmatprep.subr.bf16.mxu0 %v9899_v1  ;;  %v9910_v47 = vld [vmem:[%s12682_s5 + $0x38] sm:$0xff]  }
 0x44b   : > { %v9267_v11 = vpop.f32.mrb[140].mxu1  ;;  %7850 = vrot.lane.b32.xlu1 %v12446_v2, %s9953_s29  ;;  %v7066_v14 = vadd.f32 %v12497_v45, %v7055_v34 }
 0x44c   : > { %v9268_v63 = vpop.f32.mrb[141].mxu1  ;;  %v7071_v8 = vmax.f32 %v7067_v6, 0.0 }
 0x44d   : > { %v9269_v5 = vadd.f32 %v9268_v63, %v9267_v11  ;;  %v9270_v44 = vpop.f32.mrb[142].mxu1  ;;  %7023 = vrot.lane.b32.xlu0 %v12396_v38, %s9953_s29  ;;  %v7070_v27 = vmax.f32 %v7066_v14, 0.0  ;;  %9289 = vmatpush3.bf16.msra.mxu0 %v9900_v51 }
 0x44e   : > { %v9271_v60 = vpop.f32.mrb[143].mxu1  ;;  %9290 = vmatprep.subr.bf16.mxu0 %v9901_v18 }
 0x44f   : > { %v12454_v20 = vadd.f32 %v9418_v10, %v9269_v5  ;;  %v9272_v25 = vadd.f32 %v9271_v60, %v9270_v44  ;;  %7025 = vrot.lane.b32.xlu1 %v12398_v30, %s9953_s29  ;;  %v7074_v32 = vpack.c.bf16 %v7071_v8, %v7070_v27  ;;  %v9905_v10 = vld [vmem:[%s12682_s5 + $0x68] sm:$0xff]   ;;  %v9907_v44 = vld [vmem:[%s12682_s5 + $0x70] sm:$0xff]  }
 0x450   : > { %v9908_v60 = vld [vmem:[%s12682_s5 + $0x30] sm:$0xff]  }
 0x451   : > { %v12458_v29 = vadd.f32 %v9419_v23, %v9272_v25  ;;  %7852 = vrot.lane.b32.xlu0 %v12454_v20, %s9953_s29  ;;  %9291 = vmatpush3.bf16.msra.mxu0 %v9902_v31  ;;  %v9909_v25 = vld [vmem:[%s12682_s5 + $0x78] sm:$0xff]  }
 0x452   : > { %9292 = vmatprep.subr.bf16.mxu0 %v9903_v19 }
 0x453   : > { %7854 = vrot.lane.b32.xlu1 %v12458_v29, %s9953_s29 }
 0x455   : > { %7043 = vrot.lane.b32.xlu0 %v12408_v46, %s9953_s29  ;;  %9293 = vmatpush3.bf16.msra.mxu0 %v9904_v7 }
 0x456   : > { %9294 = vmatprep.subr.bf16.mxu0 %v9905_v10 }
 0x457   : > { %7045 = vrot.lane.b32.xlu1 %v12410_v3, %s9953_s29 }
 0x459   : > { %7428 = vrot.lane.b32.xlu0 %v12414_v57, %s9953_s29  ;;  %9295 = vmatpush3.bf16.msra.mxu0 %v9906_v61 }
 0x45a   : > { %9296 = vmatprep.subr.bf16.mxu0 %v9907_v44 }
 0x45b   : > { %7430 = vrot.lane.b32.xlu1 %v12418_v52, %s9953_s29 }
 0x45d   : > { %7448 = vrot.lane.b32.xlu0 %v12422_v35, %s9953_s29  ;;  %9297 = vmatpush3.bf16.msra.mxu0 %v9908_v60 }
 0x45e   : > { %9298 = vmatprep.subr.bf16.mxu0 %v9909_v25 }
 0x45f   : > { %7450 = vrot.lane.b32.xlu1 %v12426_v15, %s9953_s29 }
 0x461   : > { %6618 = vrot.lane.b32.xlu0 %v12372_v26, %s9953_s29  ;;  %9299 = vmatpush3.bf16.msra.mxu0 %v9910_v47  ;;  %v9913_v47 = vld [vmem:[%s12684_s7 + $0x10] sm:$0xff]  }
 0x463   : > { %6620 = vrot.lane.b32.xlu1 %v12374_v12, %s9953_s29 }
 0x465   : > { %6638 = vrot.lane.b32.xlu0 %v12380_v43, %s9953_s29 }
 0x467   : > { %6640 = vrot.lane.b32.xlu1 %v12382_v13, %s9953_s29 }
 0x469   : > { %7432 = vrot.lane.b32.xlu0 %v12412_v33, %s9953_s29 }
 0x46b   : > { %7434 = vrot.lane.b32.xlu1 %v12416_v40, %s9953_s29 }
 0x46d   : > { %7452 = vrot.lane.b32.xlu0 %v12420_v48, %s9953_s29 }
 0x46f   : > { %7454 = vrot.lane.b32.xlu1 %v12424_v17, %s9953_s29 }
 0x471   : > { %6622 = vrot.lane.b32.xlu0 %v12376_v22, %s9953_s29 }
 0x473   : > { %6624 = vrot.lane.b32.xlu1 %v12378_v62, %s9953_s29 }
 0x475   : > { %6642 = vrot.lane.b32.xlu0 %v12384_v41, %s9953_s29 }
 0x477   : > { %6644 = vrot.lane.b32.xlu1 %v12386_v53, %s9953_s29 }
 0x47b   : > { %7078 = vrot.lane.b32.xlu1 %v7074_v32, %s9953_s29 }
 0x4b3   : > { %v7829_v23 = vpop.permute.xlu0 %7828 }
 0x4b4   : > { %v7840_v36 = vmax.f32 %v12430_v37, %v7829_v23 }
 0x4b5   : > { %v7831_v58 = vpop.permute.xlu1 %7830 }
 0x4b6   : > { %v7841_v59 = vmax.f32 %v12434_v28, %v7831_v58 }
 0x4b7   : > { %v7833_v11 = vpop.permute.xlu0 %7832 }
 0x4b8   : > { %v7842_v28 = vmax.f32 %v12428_v56, %v7833_v11 }
 0x4b9   : > { %v7835_v63 = vpop.permute.xlu1 %7834 }
 0x4ba   : > { %v7843_v14 = vmax.f32 %v12432_v50, %v7835_v63 }
 0x4bb   : > { %v7849_v5 = vpop.permute.xlu0 %7848 }
 0x4bc   : > { %v7860_v55 = vmax.f32 %v12442_v0, %v7849_v5  ;;  %v9912_v5 = vld [vmem:[%s12684_s7 + $0x8] sm:$0xff]  }
 0x4bd   : > { %v7851_v9 = vpop.permute.xlu1 %7850 }
 0x4be   : > { %v7864_v42 = vmax.f32 %v7840_v36, %v7860_v55  ;;  %v7861_v24 = vmax.f32 %v12446_v2, %v7851_v9 }
 0x4bf   : > { %v7024_v4 = vpop.permute.xlu0 %7023 }
 0x4c0   : > { %v7875_v54 = vadd.f32 %v12497_v45, %v7864_v42  ;;  %v7865_v34 = vmax.f32 %v7841_v59, %v7861_v24  ;;  %v7033_v51 = vmax.f32 %v12396_v38, %v7024_v4 }
 0x4c1   : > { %v7026_v37 = vpop.permute.xlu1 %7025 }
 0x4c2   : > { %v7876_v0 = vadd.f32 %v12497_v45, %v7865_v34  ;;  %v7879_v16 = vmax.f32 %v7875_v54, 0.0 }
 0x4c3   : > { %v7853_v49 = vpop.permute.xlu0 %7852 }
 0x4c4   : > { %v7880_v21 = vmax.f32 %v7876_v0, 0.0  ;;  %v7862_v2 = vmax.f32 %v12454_v20, %v7853_v49  ;;  %v7034_v20 = vmax.f32 %v12398_v30, %v7026_v37  ;;  %v9911_v30 = vld [vmem:[%s12684_s7] sm:$0xff]  }
 0x4c5   : > { %v7855_v6 = vpop.permute.xlu1 %7854  ;;  %9420 = vmatprep.subr.bf16.mxu1 %v9911_v30 }
 0x4c6   : > { %v7883_v39 = vpack.c.bf16 %v7880_v21, %v7879_v16  ;;  %v7866_v1 = vmax.f32 %v7842_v28, %v7862_v2  ;;  %v7863_v8 = vmax.f32 %v12458_v29, %v7855_v6  ;;  %9421 = vmatpush3.bf16.msra.mxu1 %v9911_v30 }
 0x4c7   : > { %v7044_v27 = vpop.permute.xlu0 %7043  ;;  %9422 = vmatprep.subr.bf16.mxu1 %v9912_v5 }
 0x4c8   : > { %v7877_v18 = vadd.f32 %v12497_v45, %v7866_v1  ;;  %v7867_v32 = vmax.f32 %v7843_v14, %v7863_v8  ;;  %v7053_v31 = vmax.f32 %v12408_v46, %v7044_v27  ;;  %7887 = vrot.lane.b32.xlu0 %v7883_v39, %s9953_s29 }
 0x4c9   : > { %v7046_v56 = vpop.permute.xlu1 %7045 }
 0x4ca   : > { %v7878_v19 = vadd.f32 %v12497_v45, %v7867_v32  ;;  %v7057_v50 = vmax.f32 %v7033_v51, %v7053_v31  ;;  %v7054_v7 = vmax.f32 %v12410_v3, %v7046_v56  ;;  %v7881_v29 = vmax.f32 %v7877_v18, 0.0  ;;  %9423 = vmatpush3.bf16.msra.mxu1 %v9912_v5 }
 0x4cb   : > { %v7429_v10 = vpop.permute.xlu0 %7428  ;;  %9424 = vmatprep.subr.bf16.mxu1 %v9913_v47 }
 0x4cc   : > { %v7882_v61 = vmax.f32 %v7878_v19, 0.0  ;;  %v7068_v38 = vadd.f32 %v12497_v45, %v7057_v50  ;;  %v7058_v23 = vmax.f32 %v7034_v20, %v7054_v7  ;;  %v7440_v60 = vmax.f32 %v12414_v57, %v7429_v10 }
 0x4cd   : > { %v7431_v58 = vpop.permute.xlu1 %7430 }
 0x4ce   : > { %v7884_v11 = vpack.c.bf16 %v7882_v61, %v7881_v29  ;;  %v7069_v46 = vadd.f32 %v12497_v45, %v7058_v23  ;;  %v7072_v3 = vmax.f32 %v7068_v38, 0.0  ;;  %v7441_v9 = vmax.f32 %v12418_v52, %v7431_v58  ;;  %9425 = vmatpush3.bf16.msra.mxu1 %v9913_v47  ;;  %v9919_v47 = vld [vmem:[%s12686_s9] sm:$0xff]  }
 0x4cf   : > { %v7449_v63 = vpop.permute.xlu0 %7448  ;;  %9440 = vmatprep.subr.bf16.mxu0 %v9919_v47 }
 0x4d0   : > { %v7073_v44 = vmax.f32 %v7069_v46, 0.0  ;;  %v7460_v25 = vmax.f32 %v12422_v35, %v7449_v63  ;;  %7889 = vrot.lane.b32.xlu0 %v7884_v11, %s9953_s29 }
 0x4d1   : > { %v7451_v36 = vpop.permute.xlu1 %7450 }
 0x4d2   : > { %v7075_v55 = vpack.c.bf16 %v7073_v44, %v7072_v3  ;;  %v7464_v59 = vmax.f32 %v7440_v60, %v7460_v25  ;;  %v7461_v42 = vmax.f32 %v12426_v15, %v7451_v36 }
 0x4d3   : > { %v6619_v24 = vpop.permute.xlu0 %6618 }
 0x4d4   : > { %v7475_v57 = vadd.f32 %v12497_v45, %v7464_v59  ;;  %v7465_v35 = vmax.f32 %v7441_v9, %v7461_v42  ;;  %7080 = vrot.lane.b32.xlu1 %v7075_v55, %s9953_s29  ;;  %v6630_v37 = vmax.f32 %v12372_v26, %v6619_v24  ;;  %v9914_v55 = vld [vmem:[%s12684_s7 + $0x18] sm:$0xff]   ;;  %v9915_v9 = vld [vmem:[%s12684_s7 + $0x20] sm:$0xff]   ;;  %v9916_v59 = vld [vmem:[%s12684_s7 + $0x28] sm:$0xff]  }
 0x4d5   : > { %v6621_v4 = vpop.permute.xlu1 %6620  ;;  %9426 = vmatprep.subr.bf16.mxu1 %v9914_v55  ;;  %v9917_v42 = vld [vmem:[%s12684_s7 + $0x30] sm:$0xff]   ;;  %v9918_v24 = vld [vmem:[%s12684_s7 + $0x38] sm:$0xff]  }
 0x4d6   : > { %v7476_v54 = vadd.f32 %v12497_v45, %v7465_v35  ;;  %v7479_v34 = vmax.f32 %v7475_v57, 0.0  ;;  %v6631_v28 = vmax.f32 %v12374_v12, %v6621_v4  ;;  %9427 = vmatpush3.bf16.msra.mxu1 %v9914_v55  ;;  %v9920_v57 = vld [vmem:[%s12686_s9 + $0x8] sm:$0xff]   ;;  %v9921_v35 = vld [vmem:[%s12686_s9 + $0x10] sm:$0xff]   ;;  %v9922_v4 = vld [vmem:[%s12686_s9 + $0x18] sm:$0xff]  }
 0x4d7   : > { %v6639_v52 = vpop.permute.xlu0 %6638  ;;  %9428 = vmatprep.subr.bf16.mxu1 %v9915_v9 }
 0x4d8   : > { %v7480_v15 = vmax.f32 %v7476_v54, 0.0  ;;  %v6650_v0 = vmax.f32 %v12380_v43, %v6639_v52  ;;  %v9923_v54 = vld [vmem:[%s12686_s9 + $0x20] sm:$0xff]   ;;  %v9924_v52 = vld [vmem:[%s12686_s9 + $0x28] sm:$0xff]  }
 0x4d9   : > { %v6641_v49 = vpop.permute.xlu1 %6640 }
 0x4da   : > { %v6654_v16 = vmax.f32 %v6630_v37, %v6650_v0  ;;  %v6651_v21 = vmax.f32 %v12382_v13, %v6641_v49  ;;  %v7483_v2 = vpack.c.bf16 %v7480_v15, %v7479_v34  ;;  %9429 = vmatpush3.bf16.msra.mxu1 %v9915_v9  ;;  %v9043_v15 = vld [vmem:[%s12683_s6] ss:$0 sm:$0xff] }
 0x4db   : > { %v7433_v6 = vpop.permute.xlu0 %7432  ;;  %9430 = vmatprep.subr.bf16.mxu1 %v9916_v59 }
 0x4dc   : > { %v6665_v14 = vadd.f32 %v12497_v45, %v6654_v16  ;;  %v6655_v39 = vmax.f32 %v6631_v28, %v6651_v21  ;;  %7485 = vst.msk [vmem:[#allocation5 + $0x8] sm:$0xff] %vm6675_vm0, %v7483_v2  ;;  %v7442_v51 = vmax.f32 %v12412_v33, %v7433_v6 }
 0x4dd   : > { %v7435_v1 = vpop.permute.xlu1 %7434 }
 0x4de   : > { %v6666_v26 = vadd.f32 %v12497_v45, %v6655_v39  ;;  %v6669_v43 = vmax.f32 %v6665_v14, 0.0  ;;  %v7443_v13 = vmax.f32 %v12416_v40, %v7435_v1  ;;  %9431 = vmatpush3.bf16.msra.mxu1 %v9916_v59 }
 0x4df   : > { %v7453_v8 = vpop.permute.xlu0 %7452  ;;  %9432 = vmatprep.subr.bf16.mxu1 %v9917_v42 }
 0x4e0   : > { %v6670_v27 = vmax.f32 %v6666_v26, 0.0  ;;  %v7462_v12 = vmax.f32 %v12420_v48, %v7453_v8 }
 0x4e1   : > { %v7455_v18 = vpop.permute.xlu1 %7454 }
 0x4e2   : > { %v7466_v32 = vmax.f32 %v7442_v51, %v7462_v12  ;;  %v7463_v31 = vmax.f32 %v12424_v17, %v7455_v18  ;;  %v6673_v56 = vpack.c.bf16 %v6670_v27, %v6669_v43  ;;  %9433 = vmatpush3.bf16.msra.mxu1 %v9917_v42 }
 0x4e3   : > { %v6623_v20 = vpop.permute.xlu0 %6622  ;;  %9434 = vmatprep.subr.bf16.mxu1 %v9918_v24 }
 0x4e4   : > { %v7477_v19 = vadd.f32 %v12497_v45, %v7466_v32  ;;  %v7467_v50 = vmax.f32 %v7443_v13, %v7463_v31  ;;  %6676 = vst.msk [vmem:[#allocation5] sm:$0xff] %vm6675_vm0, %v6673_v56  ;;  %v6632_v48 = vmax.f32 %v12376_v22, %v6623_v20  ;;  %v9925_v56 = vld [vmem:[%s12686_s9 + $0x30] sm:$0xff]   ;;  %v9926_v20 = vld [vmem:[%s12686_s9 + $0x38] sm:$0xff]  }
 0x4e5   : > { %v6625_v7 = vpop.permute.xlu1 %6624 }
 0x4e6   : > { %v7478_v10 = vadd.f32 %v12497_v45, %v7467_v50  ;;  %v7481_v33 = vmax.f32 %v7477_v19, 0.0  ;;  %v6633_v17 = vmax.f32 %v12378_v62, %v6625_v7  ;;  %9435 = vmatpush3.bf16.msra.mxu1 %v9918_v24  ;;  %v9060_v19 = vld [vmem:[%s12685_s8] ss:$0 sm:$0xff] }
 0x4e7   : > { %v6643_v29 = vpop.permute.xlu0 %6642 }
 0x4e8   : > { %v7482_v61 = vmax.f32 %v7478_v10, 0.0  ;;  %v6652_v40 = vmax.f32 %v12384_v41, %v6643_v29 }
 0x4e9   : > { %v6645_v38 = vpop.permute.xlu1 %6644 }
 0x4ea   : > { %v6656_v23 = vmax.f32 %v6632_v48, %v6652_v40  ;;  %v6653_v58 = vmax.f32 %v12386_v53, %v6645_v38  ;;  %v7484_v11 = vpack.c.bf16 %v7482_v61, %v7481_v33 }
 0x4ec   : > { %v6667_v46 = vadd.f32 %v12497_v45, %v6656_v23  ;;  %v6657_v63 = vmax.f32 %v6633_v17, %v6653_v58  ;;  %7486 = vst.msk [vmem:[#allocation5 + $0x18] sm:$0xff] %vm6675_vm0, %v7484_v11 }
 0x4ed   : > { %v7079_v30 = vpop.permute.xlu1 %7078 }
 0x4ee   : > { %v6668_v5 = vadd.f32 %v12497_v45, %v6657_v63  ;;  %7085 = vst.msk [vmem:[#allocation5] sm:$0xff] %vm7084_vm1, %v7079_v30  ;;  %v6671_v22 = vmax.f32 %v6667_v46, 0.0  ;;  %v9069_v63 = vld [vmem:[%s12687_s10] ss:$0 sm:$0xff] }
 0x4f0   : > { %v6672_v41 = vmax.f32 %v6668_v5, 0.0 }
 0x4f2   : > { %v6674_v3 = vpack.c.bf16 %v6672_v41, %v6671_v22 }
 0x4f4   : > { %6677 = vst.msk [vmem:[#allocation5 + $0x10] sm:$0xff] %vm6675_vm0, %v6674_v3 }
 0x4f5   : > { %v7895_v60 = vld [vmem:[#allocation5] sm:$0xff] }
 0x53a   : > { %v7888_v62 = vpop.permute.xlu0 %7887 }
 0x53b   : > { %7893 = vst.msk [vmem:[#allocation5 + $0x8] sm:$0xff] %vm7084_vm1, %v7888_v62 }
 0x542   : > { %v7890_v53 = vpop.permute.xlu0 %7889  ;;  %v7896_v44 = vld [vmem:[#allocation5 + $0x8] sm:$0xff] }
 0x543   : > { %7894 = vst.msk [vmem:[#allocation5 + $0x18] sm:$0xff] %vm7084_vm1, %v7890_v53  ;;  %8066 = vmatprep.mubr.bf16.mxu0 %v7896_v44 }
 0x544   : > { %8067 = vmatmul.mubr.bf16.vlgmr.msra.gmra.mrb[144].mxu0 %v7895_v60 }
 0x545   : > { %9441 = vmatpush3.bf16.msra.mxu0 %v9919_v47 }
 0x546   : > { %v7081_v25 = vpop.permute.xlu1 %7080  ;;  %9442 = vmatprep.subr.bf16.mxu0 %v9920_v57 }
 0x547   : > { %7086 = vst.msk [vmem:[#allocation5 + $0x10] sm:$0xff] %vm7084_vm1, %v7081_v25 }
 0x549   : > { %9443 = vmatpush3.bf16.msra.mxu0 %v9920_v57 }
 0x54a   : > { %v7898_v45 = vld [vmem:[#allocation5 + $0x18] sm:$0xff]  ;;  %9444 = vmatprep.subr.bf16.mxu0 %v9921_v35 }
 0x54b   : > { %8074 = vmatprep.mubr.bf16.mxu0 %v7898_v45 }
 0x54d   : > { %9445 = vmatpush3.bf16.msra.mxu0 %v9921_v35 }
 0x54e   : > { %v7897_v36 = vld [vmem:[#allocation5 + $0x10] sm:$0xff]  ;;  %9446 = vmatprep.subr.bf16.mxu0 %v9922_v4 }
 0x54f   : > { %8075 = vmatmul.mubr.bf16.gmra.mrb[148].mxu0 %v7897_v36 }
 0x551   : > { %9447 = vmatpush3.bf16.msra.mxu0 %v9922_v4 }
 0x552   : > { %9448 = vmatprep.subr.bf16.mxu0 %v9923_v54 }
 0x555   : > { %9449 = vmatpush3.bf16.msra.mxu0 %v9923_v54 }
 0x556   : > { %9450 = vmatprep.subr.bf16.mxu0 %v9924_v52 }
 0x559   : > { %9451 = vmatpush3.bf16.msra.mxu0 %v9924_v52 }
 0x55a   : > { %9452 = vmatprep.subr.bf16.mxu0 %v9925_v56 }
 0x55d   : > { %9453 = vmatpush3.bf16.msra.mxu0 %v9925_v56 }
 0x55e   : > { %9454 = vmatprep.subr.bf16.mxu0 %v9926_v20 }
 0x561   : > { %9455 = vmatpush3.bf16.msra.mxu0 %v9926_v20 }
 0x617   : > { %v9300_v34 = vpop.f32.mrb[144].mxu0 }
 0x618   : > { %v9301_v37 = vpop.f32.mrb[145].mxu0 }
 0x619   : > { %v9302_v0 = vadd.f32 %v9301_v37, %v9300_v34  ;;  %v9303_v49 = vpop.f32.mrb[146].mxu0 }
 0x61a   : > { %v9304_v28 = vpop.f32.mrb[147].mxu0 }
 0x61b   : > { %v8069_v16 = vadd.f32 %v9302_v0, %v9043_v15  ;;  %v9305_v21 = vadd.f32 %v9304_v28, %v9303_v49 }
 0x61d   : > { %v8072_v2 = vadd.f32 %v9305_v21, %v9043_v15  ;;  %v8083_v6 = vmax.f32 %v8069_v16, 0.0 }
 0x61f   : > { %v8084_v14 = vmax.f32 %v8072_v2, 0.0 }
 0x621   : > { %v8087_v39 = vpack.c.bf16 %v8084_v14, %v8083_v6 }
 0x622   : > { %v9306_v1 = vpop.f32.mrb[148].mxu0 }
 0x623   : > { %v9307_v26 = vpop.f32.mrb[149].mxu0  ;;  %9436 = vmatprep.mubr.bf16.mxu1 %v8087_v39 }
 0x624   : > { %v9308_v8 = vadd.f32 %v9307_v26, %v9306_v1  ;;  %v9309_v43 = vpop.f32.mrb[150].mxu0 }
 0x625   : > { %v9310_v27 = vpop.f32.mrb[151].mxu0 }
 0x626   : > { %v8077_v51 = vadd.f32 %v9308_v8, %v9043_v15  ;;  %v9311_v12 = vadd.f32 %v9310_v27, %v9309_v43 }
 0x628   : > { %v8080_v18 = vadd.f32 %v9311_v12, %v9043_v15  ;;  %v8085_v13 = vmax.f32 %v8077_v51, 0.0 }
 0x62a   : > { %v8086_v32 = vmax.f32 %v8080_v18, 0.0 }
 0x62c   : > { %v8088_v31 = vpack.c.bf16 %v8086_v32, %v8085_v13 }
 0x62e   : > { %9437 = vmatmul.mubr.bf16.vlgmr.msra.gmra.mrb[144].mxu1 %v8088_v31 }
 0x701   : > { %v9438_v50 = vpop.f32.mrb[144].mxu1 }
 0x702   : > { %v8203_v7 = vadd.f32 %v9438_v50, %v9060_v19  ;;  %v8194_v10 = vpop.f32.mrb[145].mxu1 }
 0x703   : > { %v8195_v29 = vadd.f32 %v9060_v19, %v8194_v10  ;;  %v9439_v33 = vpop.f32.mrb[146].mxu1 }
 0x704   : > { %v8206_v61 = vadd.f32 %v9439_v33, %v9060_v19  ;;  %v8197_v48 = vpop.f32.mrb[147].mxu1  ;;  %v8211_v38 = vmax.f32 %v8203_v7, 0.0 }
 0x705   : > { %v8198_v40 = vadd.f32 %v9060_v19, %v8197_v48  ;;  %v8209_v23 = vmax.f32 %v8195_v29, 0.0 }
 0x706   : > { %v8212_v17 = vmax.f32 %v8206_v61, 0.0 }
 0x707   : > { %v8210_v58 = vmax.f32 %v8198_v40, 0.0 }
 0x708   : > { %v8214_v11 = vpack.c.bf16 %v8212_v17, %v8211_v38 }
 0x709   : > { %v8213_v46 = vpack.c.bf16 %v8210_v58, %v8209_v23 }
 0x70b   : > { %9456 = vmatprep.mubr.bf16.mxu0 %v8213_v46 }
 0x70c   : > { %9457 = vmatmul.mubr.bf16.vlgmr.msra.gmra.mrb[152].mxu0 %v8214_v11 }
 0x7df   : > { %v9458_v30 = vpop.f32.mrb[152].mxu0 }
 0x7e0   : > { %v8320_v5 = vpop.f32.mrb[153].mxu0  ;;  %v8329_v53 = vadd.f32 %v9458_v30, %v9069_v63 }
 0x7e1   : > { %v8321_v22 = vadd.f32 %v9069_v63, %v8320_v5  ;;  %v9459_v41 = vpop.f32.mrb[154].mxu0 }
 0x7e2   : > { %v8323_v3 = vpop.f32.mrb[155].mxu0  ;;  %v8332_v44 = vadd.f32 %v9459_v41, %v9069_v63  ;;  %8337 = vst [vmem:[%s386_s22 + $0x10] sm:$0xff] %v8329_v53 }
 0x7e3   : > { %8335 = vst [vmem:[%s386_s22] sm:$0xff] %v8321_v22  ;;  %v8324_v62 = vadd.f32 %v9069_v63, %v8323_v3 }
 0x7e4   : > { %8338 = vst [vmem:[%s386_s22 + $0x18] sm:$0xff] %v8332_v44 }
 0x7e5   : > { %8336 = vst [vmem:[%s386_s22 + $0x8] sm:$0xff] %v8324_v62 }
 0x7e6 PF: > { %s21_s17 = sadd.s32 1, %s9943_s17  }
 0x7e7   : > { %p18_p5 = scmp.ge.s32.totalorder %s21_s17, 4  }
 0x7e9   :  { %20 = sbr.rel (!%p18_p5) target bundleno = 1 (0x1), region = 94 }

</bundles_post_ra>
